<compile_context>
chip_gen: v7x
topology: tpu7x:2x2x1
jax: 0.10.0
libtpu: 0.0.40
codegen_flags: <defaults>
</compile_context>

<pallas_src>
import functools
import numpy as np

import jax
import jax.numpy as jnp
from jax import lax
from jax.experimental import pallas as pl
from jax.experimental.pallas import tpu as pltpu


# ----------------------------------------------------------------------------
# Pallas kernel: one (group, batch-element) step.
# ----------------------------------------------------------------------------
def _rbkan_kernel(x_ref, wbase_ref, wexp_ref, wred_ref, grid_ref, out_ref,
                  cols_scr, *, H, W, KH, KW, pad, denom, eps):
    # x_ref    : (H, W, Cg)        NHWC slab of one sample / one group
    # wbase_ref: (KH*KW*Cg, Cog)   base conv, im2col rows = (kh*KW+kw)*Cg + c
    # wexp_ref : (Cg, Ce*G)        expand 1x1 conv, RBF-replicated (col = c*G + g)
    # wred_ref : (Ce*G, Cog)       reduce 1x1 conv (row = c*G + g)
    # grid_ref : (1, Ce*G)         RBF centres replicated per expanded channel
    # out_ref  : (H, W, Cog)
    # cols_scr : (H, W, KH*KW*Cg)  VMEM im2col staging buffer (zeros = halo)
    Cg = x_ref.shape[-1]
    HW = H * W
    inv_denom = 1.0 / denom

    x = x_ref[...].astype(jnp.float32)                          # (H, W, Cg)

    # ---- base path: SiLU -> KxK conv as ONE im2col matmul -------------------
    xs = x * jax.nn.sigmoid(x)                                  # SiLU (f32 VPU+EUP)
    cols_scr[...] = jnp.zeros_like(cols_scr)                    # zeros = conv padding
    for kh in range(KH):
        hs, he = max(0, pad - kh), min(H, H + pad - kh)
        for kw in range(KW):
            ws, we = max(0, pad - kw), min(W, W + pad - kw)
            tap = kh * KW + kw
            cols_scr[hs:he, ws:we, tap * Cg:(tap + 1) * Cg] = (
                xs[hs + kh - pad:he + kh - pad,
                   ws + kw - pad:we + kw - pad, :])
    cols = cols_scr[...].reshape(HW, KH * KW * Cg)              # (HW, KH*KW*Cg)
    base = jnp.dot(cols, wbase_ref[...].astype(jnp.float32),
                   preferred_element_type=jnp.float32)          # (HW, Cog)

    # ---- spline path: all G RBFs fused at Ce*G lane width --------------------
    x2d = x.reshape(HW, Cg)
    xe = jnp.dot(x2d, wexp_ref[...].astype(jnp.float32),
                 preferred_element_type=jnp.float32)            # (HW, Ce*G)
    # InstanceNorm2d (biased variance, eps) in a single pass: E[x], E[x^2].
    mean = jnp.mean(xe, axis=0, keepdims=True)                  # (1, Ce*G)
    msq = jnp.mean(xe * xe, axis=0, keepdims=True)
    var = msq - mean * mean
    xn = (xe - mean) * lax.rsqrt(var + eps)
    # one full-width (128-lane) exp for the entire RBF bank
    z = (xn - grid_ref[...].astype(jnp.float32)) * inv_denom
    basis = jnp.exp(-(z * z))                                   # (HW, Ce*G)
    spline = jnp.dot(basis, wred_ref[...].astype(jnp.float32),
                     preferred_element_type=jnp.float32)        # (HW, Cog)

    out_ref[...] = (base + spline).reshape(out_ref.shape).astype(out_ref.dtype)


# ----------------------------------------------------------------------------
# Wrapper: NCHW in, NCHW out (matches the PyTorch module).
# ----------------------------------------------------------------------------
def rbkan_forward(x_nchw, params, *, groups, kernel_size, padding, grid_vals,
                  denom, eps=1e-5):
    N, C, H, W = x_nchw.shape
    assert C % groups == 0
    Cg = C // groups
    KH = KW = int(kernel_size)
    pad = int(padding)
    G = int(len(grid_vals))
    Cog = params['base'][0].shape[0]
    Ce = params['expand'][0].shape[0]             # 4 * Cg
    CeG = Ce * G
    assert H + 2 * pad - KH + 1 == H and W + 2 * pad - KW + 1 == W, \
        "stride=1 size-preserving conv assumed"
    # TODO(synk): stride != 1, dilation != 1, dropout > 0 and ndim != 2 are not
    #             implemented (the module defaults used here do not need them).

    # NCHW -> (N*groups, H, W, Cg): channels-last so channel/RBF axes map to lanes.
    x_g = jnp.transpose(x_nchw.reshape(N, groups, Cg, H, W),
                        (0, 1, 3, 4, 2)).reshape(N * groups, H, W, Cg)

    # ---- weight layout prep (pure reshapes, done once in XLA) ----------------
    # base KxK conv  (Cog, Cg, KH, KW) -> (KH*KW*Cg, Cog), row = (kh*KW+kw)*Cg + c
    wb = jnp.stack([jnp.transpose(w, (2, 3, 1, 0)).reshape(KH * KW * Cg, Cog)
                    for w in params['base']])                      # (groups, KKC, Cog)
    # expand 1x1 conv (Ce, Cg, 1, 1) -> (Cg, Ce) -> RBF-replicated (Cg, Ce*G),
    # column index = c*G + g_rbf (matches PyTorch moveaxis/flatten ordering)
    we = jnp.stack([jnp.repeat(jnp.transpose(w[:, :, 0, 0], (1, 0)), G, axis=1)
                    for w in params['expand']])                    # (groups, Cg, Ce*G)
    # reduce 1x1 conv (Cog, Ce*G, 1, 1) -> (Ce*G, Cog), rows already c*G + g_rbf
    wr = jnp.stack([jnp.transpose(w[:, :, 0, 0], (1, 0))
                    for w in params['reduce']])                    # (groups, Ce*G, Cog)
    # RBF centre per expanded lane: grid_row[c*G + g] = grid[g]
    grid_row = jnp.tile(jnp.asarray(grid_vals, jnp.float32), Ce).reshape(1, CeG)

    kern = functools.partial(_rbkan_kernel, H=H, W=W, KH=KH, KW=KW, pad=pad,
                             denom=float(denom), eps=float(eps))

    out = pl.pallas_call(
        kern,
        out_shape=jax.ShapeDtypeStruct((N * groups, H, W, Cog), x_nchw.dtype),
        grid=(groups, N),                     # group-major: weights stay resident
        in_specs=[
            pl.BlockSpec((None, H, W, Cg),
                         lambda g, n: (n * groups + g, 0, 0, 0)),
            pl.BlockSpec((None, KH * KW * Cg, Cog), lambda g, n: (g, 0, 0)),
            pl.BlockSpec((None, Cg, CeG), lambda g, n: (g, 0, 0)),
            pl.BlockSpec((None, CeG, Cog), lambda g, n: (g, 0, 0)),
            pl.BlockSpec((1, CeG), lambda g, n: (0, 0)),
        ],
        out_specs=pl.BlockSpec((None, H, W, Cog),
                               lambda g, n: (n * groups + g, 0, 0, 0)),
        scratch_shapes=[pltpu.VMEM((H, W, KH * KW * Cg), jnp.float32)],
        compiler_params=pltpu.CompilerParams(
            dimension_semantics=("parallel", "parallel")),
    )(x_g, wb, we, wr, grid_row)

    # (N*groups, H, W, Cog) -> NCHW (single transpose pass in XLA).
    y = out.reshape(N, groups, H, W, Cog)
    y = jnp.transpose(y, (0, 1, 4, 2, 3)).reshape(N, groups * Cog, H, W)
    return y


# ----------------------------------------------------------------------------
# Pure-JAX reference (lax.conv) for correctness check.
# ----------------------------------------------------------------------------
def rbkan_reference(x_nchw, params, *, groups, padding, grid_vals, denom, eps=1e-5):
    N, C, H, W = x_nchw.shape
    Cg = C // groups
    dn = ('NCHW', 'OIHW', 'NCHW')
    grid = jnp.asarray(grid_vals, jnp.float32)
    outs = []
    for g in range(groups):
        xg = x_nchw[:, g * Cg:(g + 1) * Cg]
        base = lax.conv_general_dilated(
            jax.nn.silu(xg), params['base'][g], (1, 1),
            [(padding, padding), (padding, padding)], dimension_numbers=dn)
        xe = lax.conv_general_dilated(xg, params['expand'][g], (1, 1), 'VALID',
                                      dimension_numbers=dn)
        mean = jnp.mean(xe, axis=(2, 3), keepdims=True)
        var = jnp.mean((xe - mean) ** 2, axis=(2, 3), keepdims=True)
        xn = (xe - mean) / jnp.sqrt(var + eps)
        basis = jnp.exp(-(((xn[..., None] - grid) / denom) ** 2))     # (N,Ce,H,W,G)
        Ce, G = basis.shape[1], basis.shape[-1]
        basis = jnp.moveaxis(basis, -1, 2).reshape(N, Ce * G, H, W)
        spline = lax.conv_general_dilated(basis, params['reduce'][g], (1, 1),
                                          'VALID', dimension_numbers=dn)
        outs.append(base + spline)
    return jnp.concatenate(outs, axis=1)


# ----------------------------------------------------------------------------
# Deterministic parameter init (kaiming_uniform_, nonlinearity='linear': gain=1).
# ----------------------------------------------------------------------------
def _kaiming_uniform_linear(key, shape):
    fan_in = shape[1] * shape[2] * shape[3]
    bound = float(np.sqrt(3.0 / fan_in))
    return jax.random.uniform(key, shape, jnp.float32, -bound, bound)


if __name__ == "__main__":
    # RBKANNDLayer(nn.Conv2d, nn.InstanceNorm2d, 4, 8, 3, groups=1, padding=1,
    #              grid_size=8)
    batch, input_dim, output_dim = 2, 4, 8
    H = W = 16
    kernel_size, padding, groups = 3, 1, 1
    grid_size = 8
    grid_min, grid_max = -2.0, 2.0
    grid_vals = np.linspace(grid_min, grid_max, grid_size)
    denom = (grid_max - grid_min) / (grid_size - 1)

    Cg = input_dim // groups
    Cog = output_dim // groups
    Ce = 4 * Cg

    key = jax.random.PRNGKey(0)
    keys = jax.random.split(key, 1 + 3 * groups)
    x = jax.random.normal(keys[0], (batch, input_dim, H, W), jnp.float32)

    params = {'base': [], 'expand': [], 'reduce': []}
    for g in range(groups):
        kb, ke, kr = keys[1 + 3 * g], keys[2 + 3 * g], keys[3 + 3 * g]
        params['base'].append(
            _kaiming_uniform_linear(kb, (Cog, Cg, kernel_size, kernel_size)))
        params['expand'].append(_kaiming_uniform_linear(ke, (Ce, Cg, 1, 1)))
        params['reduce'].append(
            _kaiming_uniform_linear(kr, (Cog, grid_size * Ce, 1, 1)))
    # nn.InstanceNorm2d default has no affine params -> nothing to init.

    y = rbkan_forward(x, params, groups=groups, kernel_size=kernel_size,
                      padding=padding, grid_vals=grid_vals, denom=denom)
    y = jax.block_until_ready(y)

    y_ref = rbkan_reference(x, params, groups=groups, padding=padding,
                            grid_vals=grid_vals, denom=denom)
    y_ref = jax.block_until_ready(y_ref)

    assert y.shape == (batch, output_dim, H, W), y.shape
    np.testing.assert_allclose(np.asarray(y), np.asarray(y_ref),
                               rtol=1e-4, atol=1e-4)

    print("KERNEL_OK")
</pallas_src>

<mosaic_0001>
module attributes {stable_mosaic.version = 11 : i64} {
  func.func @_rbkan_kernel(%arg0: i32, %arg1: i32, %arg2: memref<1x16x16x4xf32, #tpu.memory_space<vmem>>, %arg3: memref<1x36x8xf32, #tpu.memory_space<vmem>>, %arg4: memref<1x4x128xf32, #tpu.memory_space<vmem>>, %arg5: memref<1x128x8xf32, #tpu.memory_space<vmem>>, %arg6: memref<1x128xf32, #tpu.memory_space<vmem>>, %arg7: memref<1x16x16x8xf32, #tpu.memory_space<vmem>>, %arg8: memref<16x16x36xf32, #tpu.memory_space<vmem>>) attributes {dimension_semantics = [#tpu.dimension_semantics<parallel>, #tpu.dimension_semantics<parallel>], iteration_bounds = array<i64: 1, 2>, scalar_prefetch = 0 : i64, scratch_operands = 1 : i64, tpu.core_type = #tpu.core_type<tc>, window_params = [{transform_indices = @transform_0, window_bounds = array<i64: 1, 16, 16, 4>}, {transform_indices = @transform_1, window_bounds = array<i64: 1, 36, 8>}, {transform_indices = @transform_2, window_bounds = array<i64: 1, 4, 128>}, {transform_indices = @transform_3, window_bounds = array<i64: 1, 128, 8>}, {pipeline_mode = #tpu.pipeline_mode<synchronous>, transform_indices = @transform_4, window_bounds = array<i64: 1, 128>}, {transform_indices = @transform_5, window_bounds = array<i64: 1, 16, 16, 8>}]} {
    %c0 = arith.constant 0 : index
    %c0_0 = arith.constant 0 : index
    %c0_1 = arith.constant 0 : index
    %c0_2 = arith.constant 0 : index
    %0 = vector.load %arg2[%c0, %c0_0, %c0_1, %c0_2] : memref<1x16x16x4xf32, #tpu.memory_space<vmem>>, vector<1x16x16x4xf32>
    %1 = vector.shape_cast %0 : vector<1x16x16x4xf32> to vector<16x16x4xf32>
    %2 = arith.negf %1 : vector<16x16x4xf32>
    %3 = math.exp %2 : vector<16x16x4xf32>
    %cst = arith.constant 1.000000e+00 : f32
    %4 = vector.broadcast %cst : f32 to vector<16x16x4xf32>
    %5 = arith.addf %4, %3 : vector<16x16x4xf32>
    %6 = arith.divf %4, %5 : vector<16x16x4xf32>
    %7 = arith.mulf %1, %6 : vector<16x16x4xf32>
    %cst_3 = arith.constant 0.000000e+00 : f32
    %8 = vector.broadcast %cst_3 : f32 to vector<16x16x36xf32>
    %c0_4 = arith.constant 0 : index
    %c0_5 = arith.constant 0 : index
    %c0_6 = arith.constant 0 : index
    %9 = vector.load %arg8[%c0_4, %c0_5, %c0_6] : memref<16x16x36xf32, #tpu.memory_space<vmem>>, vector<16x16x36xf32>
    tpu.vector_store %arg8[%c0_4, %c0_5, %c0_6], %8 {strides = array<i32>} : memref<16x16x36xf32, #tpu.memory_space<vmem>>, vector<16x16x36xf32>,
    %10 = vector.extract_strided_slice %7 {offsets = [0, 0, 0], sizes = [15, 15, 4], strides = [1, 1, 1]} : vector<16x16x4xf32> to vector<15x15x4xf32>
    %c1 = arith.constant 1 : index
    %c1_7 = arith.constant 1 : index
    %c0_8 = arith.constant 0 : index
    %11 = vector.load %arg8[%c1, %c1_7, %c0_8] : memref<16x16x36xf32, #tpu.memory_space<vmem>>, vector<15x15x4xf32>
    tpu.vector_store %arg8[%c1, %c1_7, %c0_8], %10 {strides = array<i32>} : memref<16x16x36xf32, #tpu.memory_space<vmem>>, vector<15x15x4xf32>,
    %12 = vector.extract_strided_slice %7 {offsets = [0, 0, 0], sizes = [15, 16, 4], strides = [1, 1, 1]} : vector<16x16x4xf32> to vector<15x16x4xf32>
    %c1_9 = arith.constant 1 : index
    %c0_10 = arith.constant 0 : index
    %c4 = arith.constant 4 : index
    %13 = vector.load %arg8[%c1_9, %c0_10, %c4] : memref<16x16x36xf32, #tpu.memory_space<vmem>>, vector<15x16x4xf32>
    tpu.vector_store %arg8[%c1_9, %c0_10, %c4], %12 {strides = array<i32>} : memref<16x16x36xf32, #tpu.memory_space<vmem>>, vector<15x16x4xf32>,
    %14 = vector.extract_strided_slice %7 {offsets = [0, 1, 0], sizes = [15, 15, 4], strides = [1, 1, 1]} : vector<16x16x4xf32> to vector<15x15x4xf32>
    %c1_11 = arith.constant 1 : index
    %c0_12 = arith.constant 0 : index
    %c8 = arith.constant 8 : index
    %15 = vector.load %arg8[%c1_11, %c0_12, %c8] : memref<16x16x36xf32, #tpu.memory_space<vmem>>, vector<15x15x4xf32>
    tpu.vector_store %arg8[%c1_11, %c0_12, %c8], %14 {strides = array<i32>} : memref<16x16x36xf32, #tpu.memory_space<vmem>>, vector<15x15x4xf32>,
    %16 = vector.extract_strided_slice %7 {offsets = [0, 0, 0], sizes = [16, 15, 4], strides = [1, 1, 1]} : vector<16x16x4xf32> to vector<16x15x4xf32>
    %c0_13 = arith.constant 0 : index
    %c1_14 = arith.constant 1 : index
    %c12 = arith.constant 12 : index
    %17 = vector.load %arg8[%c0_13, %c1_14, %c12] : memref<16x16x36xf32, #tpu.memory_space<vmem>>, vector<16x15x4xf32>
    tpu.vector_store %arg8[%c0_13, %c1_14, %c12], %16 {strides = array<i32>} : memref<16x16x36xf32, #tpu.memory_space<vmem>>, vector<16x15x4xf32>,
    %c0_15 = arith.constant 0 : index
    %c0_16 = arith.constant 0 : index
    %c16 = arith.constant 16 : index
    %18 = vector.load %arg8[%c0_15, %c0_16, %c16] : memref<16x16x36xf32, #tpu.memory_space<vmem>>, vector<16x16x4xf32>
    tpu.vector_store %arg8[%c0_15, %c0_16, %c16], %7 {strides = array<i32>} : memref<16x16x36xf32, #tpu.memory_space<vmem>>, vector<16x16x4xf32>,
    %19 = vector.extract_strided_slice %7 {offsets = [0, 1, 0], sizes = [16, 15, 4], strides = [1, 1, 1]} : vector<16x16x4xf32> to vector<16x15x4xf32>
    %c0_17 = arith.constant 0 : index
    %c0_18 = arith.constant 0 : index
    %c20 = arith.constant 20 : index
    %20 = vector.load %arg8[%c0_17, %c0_18, %c20] : memref<16x16x36xf32, #tpu.memory_space<vmem>>, vector<16x15x4xf32>
    tpu.vector_store %arg8[%c0_17, %c0_18, %c20], %19 {strides = array<i32>} : memref<16x16x36xf32, #tpu.memory_space<vmem>>, vector<16x15x4xf32>,
    %21 = vector.extract_strided_slice %7 {offsets = [1, 0, 0], sizes = [15, 15, 4], strides = [1, 1, 1]} : vector<16x16x4xf32> to vector<15x15x4xf32>
    %c0_19 = arith.constant 0 : index
    %c1_20 = arith.constant 1 : index
    %c24 = arith.constant 24 : index
    %22 = vector.load %arg8[%c0_19, %c1_20, %c24] : memref<16x16x36xf32, #tpu.memory_space<vmem>>, vector<15x15x4xf32>
    tpu.vector_store %arg8[%c0_19, %c1_20, %c24], %21 {strides = array<i32>} : memref<16x16x36xf32, #tpu.memory_space<vmem>>, vector<15x15x4xf32>,
    %23 = vector.extract_strided_slice %7 {offsets = [1, 0, 0], sizes = [15, 16, 4], strides = [1, 1, 1]} : vector<16x16x4xf32> to vector<15x16x4xf32>
    %c0_21 = arith.constant 0 : index
    %c0_22 = arith.constant 0 : index
    %c28 = arith.constant 28 : index
    %24 = vector.load %arg8[%c0_21, %c0_22, %c28] : memref<16x16x36xf32, #tpu.memory_space<vmem>>, vector<15x16x4xf32>
    tpu.vector_store %arg8[%c0_21, %c0_22, %c28], %23 {strides = array<i32>} : memref<16x16x36xf32, #tpu.memory_space<vmem>>, vector<15x16x4xf32>,
    %25 = vector.extract_strided_slice %7 {offsets = [1, 1, 0], sizes = [15, 15, 4], strides = [1, 1, 1]} : vector<16x16x4xf32> to vector<15x15x4xf32>
    %c0_23 = arith.constant 0 : index
    %c0_24 = arith.constant 0 : index
    %c32 = arith.constant 32 : index
    %26 = vector.load %arg8[%c0_23, %c0_24, %c32] : memref<16x16x36xf32, #tpu.memory_space<vmem>>, vector<15x15x4xf32>
    tpu.vector_store %arg8[%c0_23, %c0_24, %c32], %25 {strides = array<i32>} : memref<16x16x36xf32, #tpu.memory_space<vmem>>, vector<15x15x4xf32>,
    %c0_25 = arith.constant 0 : index
    %c0_26 = arith.constant 0 : index
    %c0_27 = arith.constant 0 : index
    %27 = vector.load %arg8[%c0_25, %c0_26, %c0_27] : memref<16x16x36xf32, #tpu.memory_space<vmem>>, vector<16x16x36xf32>
    %28 = vector.shape_cast %27 : vector<16x16x36xf32> to vector<256x36xf32>
    %c0_28 = arith.constant 0 : index
    %c0_29 = arith.constant 0 : index
    %c0_30 = arith.constant 0 : index
    %29 = vector.load %arg3[%c0_28, %c0_29, %c0_30] : memref<1x36x8xf32, #tpu.memory_space<vmem>>, vector<1x36x8xf32>
    %30 = vector.shape_cast %29 : vector<1x36x8xf32> to vector<36x8xf32>
    %cst_31 = arith.constant dense<0.000000e+00> : vector<256x8xf32>
    %31 = tpu.matmul %28, %30, %cst_31 {dimension_numbers = #tpu.dot_dimension_numbers<[1], [0], [0], [1], [0, 0, 1, 1], [], []>} : vector<256x36xf32>, vector<36x8xf32>, vector<256x8xf32> -> vector<256x8xf32>
    %32 = vector.shape_cast %1 : vector<16x16x4xf32> to vector<256x4xf32>
    %c0_32 = arith.constant 0 : index
    %c0_33 = arith.constant 0 : index
    %c0_34 = arith.constant 0 : index
    %33 = vector.load %arg4[%c0_32, %c0_33, %c0_34] : memref<1x4x128xf32, #tpu.memory_space<vmem>>, vector<1x4x128xf32>
    %34 = vector.shape_cast %33 : vector<1x4x128xf32> to vector<4x128xf32>
    %cst_35 = arith.constant dense<0.000000e+00> : vector<256x128xf32>
    %35 = tpu.matmul %32, %34, %cst_35 {dimension_numbers = #tpu.dot_dimension_numbers<[1], [0], [0], [1], [0, 0, 1, 1], [], []>} : vector<256x4xf32>, vector<4x128xf32>, vector<256x128xf32> -> vector<256x128xf32>
    %cst_36 = arith.constant dense<0.000000e+00> : vector<128xf32>
    %36 = vector.multi_reduction <add>, %35, %cst_36 [0] : vector<256x128xf32> to vector<128xf32>
    %37 = vector.shape_cast %36 : vector<128xf32> to vector<1x128xf32>
    %cst_37 = arith.constant 2.560000e+02 : f32
    %38 = vector.broadcast %cst_37 : f32 to vector<1x128xf32>
    %39 = arith.divf %37, %38 : vector<1x128xf32>
    %40 = arith.mulf %35, %35 : vector<256x128xf32>
    %cst_38 = arith.constant dense<0.000000e+00> : vector<128xf32>
    %41 = vector.multi_reduction <add>, %40, %cst_38 [0] : vector<256x128xf32> to vector<128xf32>
    %42 = vector.shape_cast %41 : vector<128xf32> to vector<1x128xf32>
    %cst_39 = arith.constant 2.560000e+02 : f32
    %43 = vector.broadcast %cst_39 : f32 to vector<1x128xf32>
    %44 = arith.divf %42, %43 : vector<1x128xf32>
    %45 = arith.mulf %39, %39 : vector<1x128xf32>
    %46 = arith.subf %44, %45 : vector<1x128xf32>
    %47 = vector.broadcast %39 : vector<1x128xf32> to vector<256x128xf32>
    %48 = arith.subf %35, %47 : vector<256x128xf32>
    %cst_40 = arith.constant 9.99999974E-6 : f32
    %49 = vector.broadcast %cst_40 : f32 to vector<1x128xf32>
    %50 = arith.addf %46, %49 : vector<1x128xf32>
    %51 = math.rsqrt %50 : vector<1x128xf32>
    %52 = vector.broadcast %51 : vector<1x128xf32> to vector<256x128xf32>
    %53 = arith.mulf %48, %52 : vector<256x128xf32>
    %c0_41 = arith.constant 0 : index
    %c0_42 = arith.constant 0 : index
    %54 = vector.load %arg6[%c0_41, %c0_42] : memref<1x128xf32, #tpu.memory_space<vmem>>, vector<1x128xf32>
    %55 = vector.broadcast %54 : vector<1x128xf32> to vector<256x128xf32>
    %56 = arith.subf %53, %55 : vector<256x128xf32>
    %cst_43 = arith.constant 1.750000e+00 : f32
    %57 = vector.broadcast %cst_43 : f32 to vector<256x128xf32>
    %58 = arith.mulf %56, %57 : vector<256x128xf32>
    %59 = arith.mulf %58, %58 : vector<256x128xf32>
    %cst_44 = arith.constant 0.000000e+00 : f32
    %60 = vector.broadcast %cst_44 : f32 to vector<256x128xf32>
    %61 = arith.subf %60, %59 : vector<256x128xf32>
    %62 = math.exp %61 : vector<256x128xf32>
    %c0_45 = arith.constant 0 : index
    %c0_46 = arith.constant 0 : index
    %c0_47 = arith.constant 0 : index
    %63 = vector.load %arg5[%c0_45, %c0_46, %c0_47] : memref<1x128x8xf32, #tpu.memory_space<vmem>>, vector<1x128x8xf32>
    %64 = vector.shape_cast %63 : vector<1x128x8xf32> to vector<128x8xf32>
    %cst_48 = arith.constant dense<0.000000e+00> : vector<256x8xf32>
    %65 = tpu.matmul %62, %64, %cst_48 {dimension_numbers = #tpu.dot_dimension_numbers<[1], [0], [0], [1], [0, 0, 1, 1], [], []>} : vector<256x128xf32>, vector<128x8xf32>, vector<256x8xf32> -> vector<256x8xf32>
    %66 = arith.addf %31, %65 : vector<256x8xf32>
    %67 = vector.shape_cast %66 : vector<256x8xf32> to vector<16x16x8xf32>
    %c0_49 = arith.constant 0 : index
    %c0_50 = arith.constant 0 : index
    %c0_51 = arith.constant 0 : index
    %c0_52 = arith.constant 0 : index
    %68 = vector.load %arg7[%c0_49, %c0_50, %c0_51, %c0_52] : memref<1x16x16x8xf32, #tpu.memory_space<vmem>>, vector<1x16x16x8xf32>
    %69 = vector.shape_cast %68 : vector<1x16x16x8xf32> to vector<16x16x8xf32>
    %70 = vector.shape_cast %67 : vector<16x16x8xf32> to vector<1x16x16x8xf32>
    tpu.vector_store %arg7[%c0_49, %c0_50, %c0_51, %c0_52], %70 {strides = array<i32>} : memref<1x16x16x8xf32, #tpu.memory_space<vmem>>, vector<1x16x16x8xf32>,
    return
  }
  func.func @transform_0(%arg0: i32, %arg1: i32) -> (i32, i32, i32, i32) {
    %c1_i32 = arith.constant 1 : i32
    %0 = arith.muli %arg1, %c1_i32 : i32
    %1 = arith.addi %0, %arg0 : i32
    %c0_i32 = arith.constant 0 : i32
    %c0_i32_0 = arith.constant 0 : i32
    %c0_i32_1 = arith.constant 0 : i32
    %c0_i32_2 = arith.constant 0 : i32
    return %1, %c0_i32, %c0_i32_0, %c0_i32_1 : i32, i32, i32, i32
  }
  func.func @transform_1(%arg0: i32, %arg1: i32) -> (i32, i32, i32) {
    %c0_i32 = arith.constant 0 : i32
    %c0_i32_0 = arith.constant 0 : i32
    %c0_i32_1 = arith.constant 0 : i32
    return %arg0, %c0_i32, %c0_i32_0 : i32, i32, i32
  }
  func.func @transform_2(%arg0: i32, %arg1: i32) -> (i32, i32, i32) {
    %c0_i32 = arith.constant 0 : i32
    %c0_i32_0 = arith.constant 0 : i32
    %c0_i32_1 = arith.constant 0 : i32
    return %arg0, %c0_i32, %c0_i32_0 : i32, i32, i32
  }
  func.func @transform_3(%arg0: i32, %arg1: i32) -> (i32, i32, i32) {
    %c0_i32 = arith.constant 0 : i32
    %c0_i32_0 = arith.constant 0 : i32
    %c0_i32_1 = arith.constant 0 : i32
    return %arg0, %c0_i32, %c0_i32_0 : i32, i32, i32
  }
  func.func @transform_4(%arg0: i32, %arg1: i32) -> (i32, i32) {
    %c0_i32 = arith.constant 0 : i32
    %c0_i32_0 = arith.constant 0 : i32
    %c0_i32_1 = arith.constant 0 : i32
    return %c0_i32, %c0_i32_0 : i32, i32
  }
  func.func @transform_5(%arg0: i32, %arg1: i32) -> (i32, i32, i32, i32) {
    %c1_i32 = arith.constant 1 : i32
    %0 = arith.muli %arg1, %c1_i32 : i32
    %1 = arith.addi %0, %arg0 : i32
    %c0_i32 = arith.constant 0 : i32
    %c0_i32_0 = arith.constant 0 : i32
    %c0_i32_1 = arith.constant 0 : i32
    %c0_i32_2 = arith.constant 0 : i32
    return %1, %c0_i32, %c0_i32_0, %c0_i32_1 : i32, i32, i32, i32
  }
}

</mosaic_0001>

<bundles_post_ra>
// kernel: tpu_custom_call.1
= control target key start
LH: loop header
LB: loop body
LE: loop exit
PB: predicated region body
PF: predicated region fallthrough
CT: control target
= control target key end

     0   :  { %s3907_s18 = smov 0   ;;  %s3909_s19 = smov 0   ;;  %s5681_s0 = inlined_call_operand.vmem [shape: f32[2,16,16,4], index: 0, kind: input, shape index: {}]   ;;  %s5682_s1 = inlined_call_operand.vmem [shape: f32[1,36,8], index: 1, kind: input, shape index: {}]   ;;  %s5683_s2 = inlined_call_operand.vmem [shape: f32[1,4,128], index: 2, kind: input, shape index: {}]   ;;  %s5684_s3 = inlined_call_operand.vmem [shape: f32[1,128,8], index: 3, kind: input, shape index: {}]   ;;  %s5685_s4 = inlined_call_operand.vmem [shape: f32[1,128], index: 4, kind: input, shape index: {}]   ;;  %s5686_s5 = inlined_call_operand.vmem [shape: f32[2,16,16,8], index: 5, kind: output, shape index: {}]  }
   0x1   :  { %s3911_s20 = smov 0  }
   0x2 LB: > { %s24_s21 = sadd.s32 1, %s3862_s19  ;;  %p3113_p0 = scmp.ge.s32.totalorder %s3866_s20, 1  ;;  %s3866_s20 = sphi %s3911_s20, %s15_s20   ;;  %s3862_s19 = sphi %s3909_s19, %s5697_s19   ;;  %s3858_s18 = sphi %s3907_s18, %s5696_s18  }
   0x3   : > { %p25_p1 = scmp.ge.s32.totalorder %s24_s21, 2  ;;  %p234_p2 = scmp.lt.s32.totalorder %s3866_s20, 3 }
   0x5   : > { %s5699_s21 = smov (%p25_p1, %s24_s21), 0  ;;  %p235_p3 = pnand %p3113_p0, %p234_p2 }
   0x7   : > { %238 = sbr.rel (%p235_p3) target bundleno = 876 (0x36c), region = 40 }
   0xe   : > { %v1694_v0 = vld [vmem:[%s5683_s2] sm:$0xf]  ;;  %vm1791_vm0 = vcmask 1043456   ;;  %p279_p4 = scmp.lt.s32.totalorder %s3858_s18, 1  ;;  %vm596_vm1 = vcmask 31744   ;;  %vm562_vm2 = vcmask 293888  }
   0xf   : > { %3339 = vmatprep.subr.msk.mxu0 %vm1791_vm0, %v1694_v0  ;;  %v3868_v47 = vmov 0.0   ;;  %vm598_vm3 = vcmask 30720   ;;  %s3869_s28 = smov 4   ;;  %s3870_s29 = smov 8   ;;  %vm748_vm4 = vcmask 64544   ;;  %vm869_vm5 = vcmask 97345  }
  0x10   : > { %3340 = vmatpush3.msk.msra.mxu0 %vm1791_vm0, %v1694_v0  ;;  %s5701_s18 = smov (!%p279_p4, %s3858_s18), 1  ;;  %567 = vst.msk [vmem:[#allocation2 + $0x20] sm:$0xff] %vm562_vm2, %v3868_v47  ;;  %568 = vst.msk [vmem:[#allocation2 + $0x28] sm:$0xff] %vm562_vm2, %v3868_v47  ;;  %s3871_s30 = smov 12   ;;  %vm871_vm6 = vcmask 97344   ;;  %vm999_vm7 = vcmask 130144  }
  0x11   : > { %s3219_s24 = sshll.u32 %s5701_s18, 8  ;;  %563 = vst.msk [vmem:[#allocation2] sm:$0xff] %vm562_vm2, %v3868_v47  ;;  %564 = vst.msk [vmem:[#allocation2 + $0x8] sm:$0xff] %vm562_vm2, %v3868_v47  ;;  %s3872_s6 = smov 16   ;;  %vm1001_vm8 = vcmask 129120   ;;  %vm1129_vm9 = vcmask 162944  }
  0x12   : > { %s3938_s27 = scalar_lea.vmem %s5681_s0, %s3219_s24  ;;  %565 = vst.msk [vmem:[#allocation2 + $0x10] sm:$0xff] %vm562_vm2, %v3868_v47  ;;  %566 = vst.msk [vmem:[#allocation2 + $0x18] sm:$0xff] %vm562_vm2, %v3868_v47  ;;  %s3873_s7 = smov 20   ;;  %vm1260_vm10 = vcmask 195744   ;;  %vm1258_vm11 = vcmask 195745   ;;  %vm1384_vm12 = vcmask 227520  }
  0x13   : > { %v3941_v1 = vld [vmem:[%s3938_s27] sm:$0xff]  ;;  %v3944_v2 = vld [vmem:[%s3938_s27 + $0x8] sm:$0xff]  ;;  %v3947_v3 = vld [vmem:[%s3938_s27 + $0x10] sm:$0xff]  ;;  %569 = vst.msk [vmem:[#allocation2 + $0x30] sm:$0xff] %vm562_vm2, %v3868_v47  ;;  %s3874_s8 = smov 24   ;;  %s3875_s9 = smov 28  }
  0x14   : > { %v3118_v4 = vmul.f32 -1.442695, %v3941_v1  ;;  %3341 = vmatprep.mubr.msk.f32.mxu0 %vm596_vm1, %v3941_v1  ;;  %v3119_v5 = vmul.f32 -1.442695, %v3944_v2  ;;  %v3120_v6 = vmul.f32 -1.442695, %v3947_v3 }
  0x15   : > { %3342 = vmatmul.mubr.msk.f32.vlgmr.msra.gmra.mrb[0].mxu0 %vm596_vm1, %v3944_v2  ;;  %v3957_v7 = vld [vmem:[%s3938_s27 + $0x18] sm:$0xff]  ;;  %v3960_v8 = vld [vmem:[%s3938_s27 + $0x20] sm:$0xff]  ;;  %v3963_v9 = vld [vmem:[%s3938_s27 + $0x28] sm:$0xff]  ;;  %570 = vst.msk [vmem:[#allocation2 + $0x38] sm:$0xff] %vm562_vm2, %v3868_v47  ;;  %s3876_s10 = smov 32   ;;  %vm1382_vm13 = vcmask 228544  }
  0x16   : > { %3648 = vpow2.f32 %v3118_v4  ;;  %3344 = vmatprep.mubr.msk.f32.mxu0 %vm596_vm1, %v3947_v3  ;;  %v3121_v10 = vmul.f32 -1.442695, %v3957_v7  ;;  %v3122_v11 = vmul.f32 -1.442695, %v3960_v8  ;;  %v3123_v12 = vmul.f32 -1.442695, %v3963_v9 }
  0x17   : > { %3650 = vpow2.f32 %v3119_v5  ;;  %v3971_v13 = vld [vmem:[%s3938_s27 + $0x30] sm:$0xff]  ;;  %v3974_v14 = vld [vmem:[%s3938_s27 + $0x38] sm:$0xff]  ;;  %v3977_v15 = vld [vmem:[%s3938_s27 + $0x40] sm:$0xff]  ;;  %571 = vst.msk [vmem:[#allocation2 + $0x40] sm:$0xff] %vm562_vm2, %v3868_v47  ;;  %vm1504_vm14 = vcmask 261344   ;;  %vm1627_vm15 = vcmask 294144  }
  0x18   : > { %3652 = vpow2.f32 %v3120_v6  ;;  %v3124_v16 = vmul.f32 -1.442695, %v3971_v13  ;;  %v3125_v17 = vmul.f32 -1.442695, %v3974_v14  ;;  %v3984_v18 = vld [vmem:[%s3938_s27 + $0x48] sm:$0xff]  ;;  %v3987_v19 = vld [vmem:[%s3938_s27 + $0x50] sm:$0xff] }
  0x19   : > { %3654 = vpow2.f32 %v3121_v10  ;;  %3345 = vmatmul.mubr.msk.f32.gmra.mrb[2].mxu0 %vm596_vm1, %v3957_v7  ;;  %v3126_v20 = vmul.f32 -1.442695, %v3977_v15  ;;  %v3993_v21 = vld [vmem:[%s3938_s27 + $0x58] sm:$0xff]  ;;  %v3127_v22 = vmul.f32 -1.442695, %v3984_v18  ;;  %v3997_v23 = vld [vmem:[%s3938_s27 + $0x60] sm:$0xff] }
  0x1a   : > { %3656 = vpow2.f32 %v3122_v11  ;;  %3347 = vmatprep.mubr.msk.f32.mxu0 %vm596_vm1, %v3960_v8  ;;  %v3128_v24 = vmul.f32 -1.442695, %v3987_v19  ;;  %v3129_v25 = vmul.f32 -1.442695, %v3993_v21  ;;  %v3130_v26 = vmul.f32 -1.442695, %v3997_v23 }
  0x1b   : > { %3658 = vpow2.f32 %v3123_v12  ;;  %v4017_v46 = vld [vmem:[%s3938_s27 + $0x68] sm:$0xff]  ;;  %572 = vst.msk [vmem:[#allocation2 + $0x48] sm:$0xff] %vm562_vm2, %v3868_v47  ;;  %573 = vst.msk [vmem:[#allocation2 + $0x50] sm:$0xff] %vm562_vm2, %v3868_v47  ;;  %v4054_v50 = vld [vmem:[%s3938_s27 + $0x70] sm:$0xff] }
  0x1c   : > { %3660 = vpow2.f32 %v3124_v16  ;;  %574 = vst.msk [vmem:[#allocation2 + $0x58] sm:$0xff] %vm562_vm2, %v3868_v47  ;;  %575 = vst.msk [vmem:[#allocation2 + $0x60] sm:$0xff] %vm562_vm2, %v3868_v47  ;;  %v4057_v53 = vld [vmem:[%s3938_s27 + $0x78] sm:$0xff]  ;;  %v3131_v56 = vmul.f32 -1.442695, %v4017_v46  ;;  %v4061_v57 = vld [vmem:[%s3938_s27 + $0x80] sm:$0xff] }
  0x1d   : > { %3348 = vmatmul.mubr.msk.f32.gmra.mrb[4].mxu0 %vm596_vm1, %v3963_v9  ;;  %3662 = vpow2.f32 %v3125_v17  ;;  %576 = vst.msk [vmem:[#allocation2 + $0x68] sm:$0xff] %vm562_vm2, %v3868_v47  ;;  %577 = vst.msk [vmem:[#allocation2 + $0x70] sm:$0xff] %vm562_vm2, %v3868_v47  ;;  %v3132_v60 = vmul.f32 -1.442695, %v4054_v50  ;;  %v4067_v61 = vld [vmem:[%s3938_s27 + $0x88] sm:$0xff]  ;;  %v4076_v4 = vld [vmem:[%s3938_s27 + $0x90] sm:$0xff] }
  0x1e   : > { %3350 = vmatprep.mubr.msk.f32.mxu0 %vm596_vm1, %v3971_v13  ;;  %3664 = vpow2.f32 %v3126_v20  ;;  %578 = vst.msk [vmem:[#allocation2 + $0x78] sm:$0xff] %vm562_vm2, %v3868_v47  ;;  %579 = vst.msk [vmem:[#allocation2 + $0x80] sm:$0xff] %vm562_vm2, %v3868_v47  ;;  %v3133_v0 = vmul.f32 -1.442695, %v4057_v53  ;;  %v3134_v10 = vmul.f32 -1.442695, %v4061_v57 }
  0x1f   : > { %3666 = vpow2.f32 %v3127_v22  ;;  %580 = vst.msk [vmem:[#allocation2 + $0x88] sm:$0xff] %vm562_vm2, %v3868_v47  ;;  %581 = vst.msk [vmem:[#allocation2 + $0x90] sm:$0xff] %vm562_vm2, %v3868_v47  ;;  %v3135_v16 = vmul.f32 -1.442695, %v4067_v61  ;;  %v4103_v22 = vld [vmem:[%s3938_s27 + $0xa8] sm:$0xff] }
  0x20   : > { %v3649_v27 = vpop.eup %3648  ;;  %3668 = vpow2.f32 %v3128_v24  ;;  %582 = vst.msk [vmem:[#allocation2 + $0x98] sm:$0xff] %vm562_vm2, %v3868_v47  ;;  %583 = vst.msk [vmem:[#allocation2 + $0xa0] sm:$0xff] %vm562_vm2, %v3868_v47 }
  0x21   : > { %v3651_v28 = vpop.eup %3650  ;;  %v434_v29 = vadd.f32 1.0, %v3649_v27  ;;  %3351 = vmatmul.mubr.msk.f32.gmra.mrb[6].mxu0 %vm596_vm1, %v3974_v14  ;;  %3670 = vpow2.f32 %v3129_v25  ;;  %584 = vst.msk [vmem:[#allocation2 + $0xa8] sm:$0xff] %vm562_vm2, %v3868_v47  ;;  %585 = vst.msk [vmem:[#allocation2 + $0xb0] sm:$0xff] %vm562_vm2, %v3868_v47 }
  0x22   : > { %v3653_v30 = vpop.eup %3652  ;;  %v435_v31 = vadd.f32 1.0, %v3651_v28  ;;  %3353 = vmatprep.mubr.msk.f32.mxu0 %vm596_vm1, %v3977_v15  ;;  %3672 = vpow2.f32 %v3130_v26  ;;  %586 = vst.msk [vmem:[#allocation2 + $0xb8] sm:$0xff] %vm562_vm2, %v3868_v47  ;;  %587 = vst.msk [vmem:[#allocation2 + $0xc0] sm:$0xff] %vm562_vm2, %v3868_v47  ;;  %v4116_v26 = vld [vmem:[%s3938_s27 + $0xb0] sm:$0xff] }
  0x23   : > { %v3655_v32 = vpop.eup %3654  ;;  %3674 = vrcp.f32 %v434_v29  ;;  %v436_v33 = vadd.f32 1.0, %v3653_v30  ;;  %588 = vst.msk [vmem:[#allocation2 + $0xc8] sm:$0xff] %vm562_vm2, %v3868_v47  ;;  %589 = vst.msk [vmem:[#allocation2 + $0xd0] sm:$0xff] %vm562_vm2, %v3868_v47  ;;  %v4125_v29 = vld [vmem:[%s3938_s27 + $0xb8] sm:$0xff] }
  0x24   : > { %v3657_v34 = vpop.eup %3656  ;;  %3676 = vrcp.f32 %v435_v31  ;;  %v437_v35 = vadd.f32 1.0, %v3655_v32  ;;  %590 = vst.msk [vmem:[#allocation2 + $0xd8] sm:$0xff] %vm562_vm2, %v3868_v47  ;;  %591 = vst.msk [vmem:[#allocation2 + $0xe0] sm:$0xff] %vm562_vm2, %v3868_v47  ;;  %v4136_v32 = vld [vmem:[%s3938_s27 + $0xc0] sm:$0xff] }
  0x25   : > { %v3659_v36 = vpop.eup %3658  ;;  %3678 = vrcp.f32 %v436_v33  ;;  %v438_v37 = vadd.f32 1.0, %v3657_v34  ;;  %3354 = vmatmul.mubr.msk.f32.gmra.mrb[8].mxu0 %vm596_vm1, %v3984_v18  ;;  %592 = vst.msk [vmem:[#allocation2 + $0xe8] sm:$0xff] %vm562_vm2, %v3868_v47  ;;  %593 = vst.msk [vmem:[#allocation2 + $0xf0] sm:$0xff] %vm562_vm2, %v3868_v47 }
  0x26   : > { %v3661_v38 = vpop.eup %3660  ;;  %3680 = vrcp.f32 %v437_v35  ;;  %v439_v39 = vadd.f32 1.0, %v3659_v36  ;;  %3356 = vmatprep.mubr.msk.f32.mxu0 %vm596_vm1, %v3987_v19  ;;  %594 = vst.msk [vmem:[#allocation2 + $0xf8] sm:$0xff] %vm562_vm2, %v3868_v47  ;;  %v4147_v35 = vld [vmem:[%s3938_s27 + $0xc8] sm:$0xff] }
  0x27   : > { %v3663_v40 = vpop.eup %3662  ;;  %3682 = vrcp.f32 %v438_v37  ;;  %v440_v41 = vadd.f32 1.0, %v3661_v38 }
  0x28   : > { %v3665_v42 = vpop.eup %3664  ;;  %3684 = vrcp.f32 %v439_v39  ;;  %v441_v43 = vadd.f32 1.0, %v3663_v40 }
  0x29   : > { %v3667_v44 = vpop.eup %3666  ;;  %3686 = vrcp.f32 %v440_v41  ;;  %v442_v45 = vadd.f32 1.0, %v3665_v42  ;;  %3357 = vmatmul.mubr.msk.f32.gmra.mrb[10].mxu0 %vm596_vm1, %v3993_v21  ;;  %v3143_v42 = vmul.f32 -1.442695, %v4147_v35 }
  0x2a   : > { %v3669_v48 = vpop.eup %3668  ;;  %3688 = vrcp.f32 %v441_v43  ;;  %v443_v49 = vadd.f32 1.0, %v3667_v44  ;;  %3359 = vmatprep.mubr.msk.f32.mxu0 %vm596_vm1, %v3997_v23 }
  0x2b   : > { %v3671_v51 = vpop.eup %3670  ;;  %3690 = vrcp.f32 %v442_v45  ;;  %v444_v52 = vadd.f32 1.0, %v3669_v48 }
  0x2c   : > { %v3673_v54 = vpop.eup %3672  ;;  %3692 = vrcp.f32 %v443_v49  ;;  %v445_v55 = vadd.f32 1.0, %v3671_v51 }
  0x2d   : > { %v3675_v58 = vpop.eup %3674  ;;  %3694 = vrcp.f32 %v444_v52  ;;  %v446_v59 = vadd.f32 1.0, %v3673_v54  ;;  %3360 = vmatmul.mubr.msk.f32.gmra.mrb[12].mxu0 %vm596_vm1, %v4017_v46 }
  0x2e   : > { %v3677_v62 = vpop.eup %3676  ;;  %v4070_v63 = vmul.f32 %v3675_v58, %v3941_v1  ;;  %3696 = vrcp.f32 %v445_v55  ;;  %3362 = vmatprep.mubr.msk.f32.mxu0 %vm596_vm1, %v4054_v50  ;;  %v4083_v1 = vld [vmem:[%s3938_s27 + $0x98] sm:$0xff] }
  0x2f   : > { %v3679_v5 = vpop.eup %3678  ;;  %v4079_v6 = vmul.f32 %v3677_v62, %v3944_v2  ;;  %3698 = vrcp.f32 %v446_v59  ;;  %v4092_v2 = vld [vmem:[%s3938_s27 + $0xa0] sm:$0xff] }
  0x30   : > { %v3681_v11 = vpop.eup %3680  ;;  %v4086_v12 = vmul.f32 %v3679_v5, %v3947_v3  ;;  %3700 = vpow2.f32 %v3131_v56  ;;  %658 = vrot.lane.b32.xlu0 %v4070_v63, %s3869_s28  ;;  %597 = vst.msk [vmem:[#allocation2 + $0x11] sm:$0xff] %vm596_vm1, %v4070_v63  ;;  %v3136_v3 = vmul.f32 -1.442695, %v4076_v4 }
  0x31   : > { %v3683_v17 = vpop.eup %3682  ;;  %v4097_v20 = vmul.f32 %v3681_v11, %v3957_v7  ;;  %3702 = vpow2.f32 %v3132_v60  ;;  %3363 = vmatmul.mubr.msk.f32.gmra.mrb[14].mxu0 %vm596_vm1, %v4057_v53  ;;  %599 = vst.msk [vmem:[#allocation2 + $0x19] sm:$0x7f] %vm598_vm3, %v4079_v6  ;;  %v3137_v7 = vmul.f32 -1.442695, %v4083_v1  ;;  %v4212_v11 = vld [vmem:[%s3938_s27 + $0xd0] sm:$0xff] }
  0x32   : > { %v3685_v24 = vpop.eup %3684  ;;  %v4108_v25 = vmul.f32 %v3683_v17, %v3960_v8  ;;  %662 = vrot.lane.b32.xlu1 %v4086_v12, %s3869_s28  ;;  %3704 = vpow2.f32 %v3133_v0  ;;  %3365 = vmatprep.mubr.msk.f32.mxu0 %vm596_vm1, %v4061_v57  ;;  %600 = vst.msk [vmem:[#allocation2 + $0x21] sm:$0xff] %vm596_vm1, %v4086_v12  ;;  %v3138_v8 = vmul.f32 -1.442695, %v4092_v2 }
  0x33   : > { %v3687_v27 = vpop.eup %3686  ;;  %v4121_v28 = vmul.f32 %v3685_v24, %v3963_v9  ;;  %3706 = vpow2.f32 %v3134_v10  ;;  %601 = vst.msk [vmem:[#allocation2 + $0x29] sm:$0x7f] %vm598_vm3, %v4097_v20  ;;  %v3139_v9 = vmul.f32 -1.442695, %v4103_v22 }
  0x34   : > { %v3689_v30 = vpop.eup %3688  ;;  %v4130_v31 = vmul.f32 %v3687_v27, %v3971_v13  ;;  %660 = vrot.lane.b32.xlu0 %v4079_v6, %s3869_s28  ;;  %3708 = vpow2.f32 %v3135_v16  ;;  %602 = vst.msk [vmem:[#allocation2 + $0x31] sm:$0xff] %vm596_vm1, %v4108_v25  ;;  %v3140_v13 = vmul.f32 -1.442695, %v4116_v26  ;;  %v4222_v27 = vld [vmem:[%s3938_s27 + $0xe0] sm:$0xff] }
  0x35   : > { %v3691_v33 = vpop.eup %3690  ;;  %v4141_v34 = vmul.f32 %v3689_v30, %v3974_v14  ;;  %3366 = vmatmul.mubr.msk.f32.gmra.mrb[16].mxu0 %vm596_vm1, %v4067_v61  ;;  %3710 = vpow2.f32 %v3136_v3  ;;  %603 = vst.msk [vmem:[#allocation2 + $0x39] sm:$0x7f] %vm598_vm3, %v4121_v28  ;;  %v3141_v14 = vmul.f32 -1.442695, %v4125_v29  ;;  %v4217_v3 = vld [vmem:[%s3938_s27 + $0xd8] sm:$0xff] }
  0x36   : > { %v3693_v36 = vpop.eup %3692  ;;  %v4152_v37 = vmul.f32 %v3691_v33, %v3977_v15  ;;  %664 = vrot.lane.b32.xlu1 %v4097_v20, %s3869_s28  ;;  %3368 = vmatprep.mubr.msk.f32.mxu0 %vm596_vm1, %v4076_v4  ;;  %3712 = vpow2.f32 %v3137_v7  ;;  %604 = vst.msk [vmem:[#allocation2 + $0x41] sm:$0xff] %vm596_vm1, %v4130_v31  ;;  %v3142_v15 = vmul.f32 -1.442695, %v4136_v32  ;;  %v4230_v33 = vld [vmem:[%s3938_s27 + $0xe8] sm:$0xff] }
  0x37   : > { %v3695_v38 = vpop.eup %3694  ;;  %v4162_v39 = vmul.f32 %v3693_v36, %v3984_v18  ;;  %3714 = vpow2.f32 %v3138_v8  ;;  %605 = vst.msk [vmem:[#allocation2 + $0x49] sm:$0x7f] %vm598_vm3, %v4141_v34 }
  0x38   : > { %v3697_v40 = vpop.eup %3696  ;;  %v4168_v41 = vmul.f32 %v3695_v38, %v3987_v19  ;;  %666 = vrot.lane.b32.xlu0 %v4108_v25, %s3869_s28  ;;  %3716 = vpow2.f32 %v3139_v9  ;;  %606 = vst.msk [vmem:[#allocation2 + $0x51] sm:$0xff] %vm596_vm1, %v4152_v37  ;;  %v3144_v9 = vmul.f32 -1.442695, %v4212_v11 }
  0x39   : > { %v3699_v18 = vpop.eup %3698  ;;  %v4176_v43 = vmul.f32 %v3697_v40, %v3993_v21  ;;  %3369 = vmatmul.mubr.msk.f32.gmra.mrb[18].mxu0 %vm596_vm1, %v4083_v1  ;;  %3718 = vpow2.f32 %v3140_v13  ;;  %607 = vst.msk [vmem:[#allocation2 + $0x59] sm:$0x7f] %vm598_vm3, %v4162_v39  ;;  %v3146_v40 = vmul.f32 -1.442695, %v4222_v27 }
  0x3a   : > { %v3701_v19 = vpop.eup %3700  ;;  %v4183_v44 = vmul.f32 %v3699_v18, %v3997_v23  ;;  %668 = vrot.lane.b32.xlu1 %v4121_v28, %s3869_s28  ;;  %3371 = vmatprep.mubr.msk.f32.mxu0 %vm596_vm1, %v4092_v2  ;;  %3720 = vpow2.f32 %v3141_v14  ;;  %608 = vst.msk [vmem:[#allocation2 + $0x61] sm:$0xff] %vm596_vm1, %v4168_v41  ;;  %v3145_v14 = vmul.f32 -1.442695, %v4217_v3 }
  0x3b   : > { %v3703_v21 = vpop.eup %3702  ;;  %v447_v45 = vadd.f32 1.0, %v3701_v19  ;;  %3722 = vpow2.f32 %v3142_v15  ;;  %609 = vst.msk [vmem:[#allocation2 + $0x69] sm:$0x7f] %vm598_vm3, %v4176_v43  ;;  %v3147_v19 = vmul.f32 -1.442695, %v4230_v33 }
  0x3c   : > { %v3705_v47 = vpop.eup %3704  ;;  %v448_v48 = vadd.f32 1.0, %v3703_v21  ;;  %670 = vrot.lane.b32.xlu0 %v4130_v31, %s3869_s28  ;;  %3724 = vpow2.f32 %v3143_v42  ;;  %610 = vst.msk [vmem:[#allocation2 + $0x71] sm:$0xff] %vm596_vm1, %v4183_v44 }
  0x3d   : > { %v3707_v23 = vpop.eup %3706  ;;  %3726 = vrcp.f32 %v447_v45  ;;  %v449_v49 = vadd.f32 1.0, %v3705_v47  ;;  %3372 = vmatmul.mubr.msk.f32.gmra.mrb[20].mxu0 %vm596_vm1, %v4103_v22  ;;  %v336_v47 = vld [vmem:[%s3938_s27 + $0xf0] sm:$0xff] }
  0x3e   : > { %v3709_v51 = vpop.eup %3708  ;;  %3728 = vrcp.f32 %v448_v48  ;;  %v450_v52 = vadd.f32 1.0, %v3707_v23  ;;  %672 = vrot.lane.b32.xlu1 %v4141_v34, %s3869_s28  ;;  %3374 = vmatprep.mubr.msk.f32.mxu0 %vm596_vm1, %v4116_v26 }
  0x3f   : > { %v3711_v54 = vpop.eup %3710  ;;  %3730 = vrcp.f32 %v449_v49  ;;  %v451_v55 = vadd.f32 1.0, %v3709_v51  ;;  %v337_v51 = vld [vmem:[%s3938_s27 + $0xf8] sm:$0xff] }
  0x40   : > { %v3713_v56 = vpop.eup %3712  ;;  %3732 = vrcp.f32 %v450_v52  ;;  %v452_v58 = vadd.f32 1.0, %v3711_v54  ;;  %674 = vrot.lane.b32.xlu0 %v4152_v37, %s3869_s28 }
  0x41   : > { %v3715_v59 = vpop.eup %3714  ;;  %3734 = vrcp.f32 %v451_v55  ;;  %v453_v60 = vadd.f32 1.0, %v3713_v56  ;;  %3375 = vmatmul.mubr.msk.f32.gmra.mrb[22].mxu0 %vm596_vm1, %v4125_v29 }
  0x42   : > { %v3717_v62 = vpop.eup %3716  ;;  %3736 = vrcp.f32 %v452_v58  ;;  %v454_v0 = vadd.f32 1.0, %v3715_v59  ;;  %676 = vrot.lane.b32.xlu1 %v4162_v39, %s3869_s28  ;;  %3377 = vmatprep.mubr.msk.f32.mxu0 %vm596_vm1, %v4136_v32 }
  0x43   : > { %v3719_v5 = vpop.eup %3718  ;;  %3738 = vrcp.f32 %v453_v60  ;;  %v455_v10 = vadd.f32 1.0, %v3717_v62 }
  0x44   : > { %v3721_v16 = vpop.eup %3720  ;;  %3740 = vrcp.f32 %v454_v0  ;;  %v456_v17 = vadd.f32 1.0, %v3719_v5  ;;  %678 = vrot.lane.b32.xlu0 %v4168_v41, %s3869_s28 }
  0x45   : > { %v3723_v24 = vpop.eup %3722  ;;  %3742 = vrcp.f32 %v455_v10  ;;  %v457_v7 = vadd.f32 1.0, %v3721_v16  ;;  %3378 = vmatmul.mubr.msk.f32.gmra.mrb[24].mxu0 %vm596_vm1, %v4147_v35 }
  0x46   : > { %v3725_v8 = vpop.eup %3724  ;;  %3744 = vrcp.f32 %v456_v17  ;;  %680 = vrot.lane.b32.xlu1 %v4176_v43, %s3869_s28  ;;  %v458_v30 = vadd.f32 1.0, %v3723_v24  ;;  %3380 = vmatprep.mubr.msk.f32.mxu0 %vm596_vm1, %v4212_v11 }
  0x47   : > { %v3727_v13 = vpop.eup %3726  ;;  %3746 = vrcp.f32 %v457_v7  ;;  %v459_v36 = vadd.f32 1.0, %v3725_v8 }
  0x48   : > { %v3729_v38 = vpop.eup %3728  ;;  %v4234_v15 = vmul.f32 %v3727_v13, %v4017_v46  ;;  %3748 = vrcp.f32 %v458_v30  ;;  %682 = vrot.lane.b32.xlu0 %v4183_v44, %s3869_s28 }
  0x49   : > { %v3731_v42 = vpop.eup %3730  ;;  %v4240_v18 = vmul.f32 %v3729_v38, %v4054_v50  ;;  %3750 = vrcp.f32 %v459_v36  ;;  %3381 = vmatmul.mubr.msk.f32.gmra.mrb[26].mxu0 %vm596_vm1, %v4217_v3 }
  0x4a   : > { %v3733_v21 = vpop.eup %3732  ;;  %v4246_v46 = vmul.f32 %v3731_v42, %v4057_v53  ;;  %684 = vrot.lane.b32.xlu1 %v4234_v15, %s3869_s28  ;;  %3752 = vpow2.f32 %v3144_v9  ;;  %3383 = vmatprep.mubr.msk.f32.mxu0 %vm596_vm1, %v4222_v27  ;;  %611 = vst.msk [vmem:[#allocation2 + $0x79] sm:$0x7f] %vm598_vm3, %v4234_v15 }
  0x4b   : > { %v3735_v50 = vpop.eup %3734  ;;  %v4255_v45 = vmul.f32 %v3733_v21, %v4061_v57  ;;  %3754 = vpow2.f32 %v3145_v14  ;;  %612 = vst.msk [vmem:[#allocation2 + $0x81] sm:$0xff] %vm596_vm1, %v4240_v18 }
  0x4c   : > { %v3737_v53 = vpop.eup %3736  ;;  %v4261_v48 = vmul.f32 %v3735_v50, %v4067_v61  ;;  %3756 = vpow2.f32 %v3146_v40  ;;  %686 = vrot.lane.b32.xlu0 %v4240_v18, %s3869_s28  ;;  %613 = vst.msk [vmem:[#allocation2 + $0x89] sm:$0x7f] %vm598_vm3, %v4246_v46 }
  0x4d   : > { %v3739_v23 = vpop.eup %3738  ;;  %v4268_v57 = vmul.f32 %v3737_v53, %v4076_v4  ;;  %3758 = vpow2.f32 %v3147_v19  ;;  %3384 = vmatmul.mubr.msk.f32.gmra.mrb[28].mxu0 %vm596_vm1, %v4230_v33  ;;  %614 = vst.msk [vmem:[#allocation2 + $0x91] sm:$0xff] %vm596_vm1, %v4255_v45 }
  0x4e   : > { %v3741_v61 = vpop.eup %3740  ;;  %v4275_v49 = vmul.f32 %v3739_v23, %v4083_v1  ;;  %688 = vrot.lane.b32.xlu1 %v4246_v46, %s3869_s28  ;;  %3386 = vmatprep.mubr.msk.f32.mxu0 %vm596_vm1, %v336_v47  ;;  %615 = vst.msk [vmem:[#allocation2 + $0x99] sm:$0x7f] %vm598_vm3, %v4261_v48 }
  0x4f   : > { %v3743_v4 = vpop.eup %3742  ;;  %v4284_v52 = vmul.f32 %v3741_v61, %v4092_v2  ;;  %616 = vst.msk [vmem:[#allocation2 + $0xa1] sm:$0xff] %vm596_vm1, %v4268_v57 }
  0x50   : > { %v3745_v54 = vpop.eup %3744  ;;  %v4289_v1 = vmul.f32 %v3743_v4, %v4103_v22  ;;  %690 = vrot.lane.b32.xlu0 %v4255_v45, %s3869_s28  ;;  %617 = vst.msk [vmem:[#allocation2 + $0xa9] sm:$0x7f] %vm598_vm3, %v4275_v49 }
  0x51   : > { %v3747_v55 = vpop.eup %3746  ;;  %v4296_v56 = vmul.f32 %v3745_v54, %v4116_v26  ;;  %3387 = vmatmul.mubr.msk.f32.gmra.mrb[30].mxu0 %vm596_vm1, %v337_v51  ;;  %618 = vst.msk [vmem:[#allocation2 + $0xb1] sm:$0xff] %vm596_vm1, %v4284_v52 }
  0x52   : > { %v3749_v2 = vpop.eup %3748  ;;  %v4302_v58 = vmul.f32 %v3747_v55, %v4125_v29  ;;  %692 = vrot.lane.b32.xlu1 %v4261_v48, %s3869_s28  ;;  %619 = vst.msk [vmem:[#allocation2 + $0xb9] sm:$0x7f] %vm598_vm3, %v4289_v1 }
  0x53   : > { %v3751_v22 = vpop.eup %3750  ;;  %v4309_v59 = vmul.f32 %v3749_v2, %v4136_v32  ;;  %620 = vst.msk [vmem:[#allocation2 + $0xc1] sm:$0xff] %vm596_vm1, %v4296_v56 }
  0x54   : > { %v3753_v26 = vpop.eup %3752  ;;  %v4314_v60 = vmul.f32 %v3751_v22, %v4147_v35  ;;  %694 = vrot.lane.b32.xlu0 %v4268_v57, %s3869_s28  ;;  %621 = vst.msk [vmem:[#allocation2 + $0xc9] sm:$0x7f] %vm598_vm3, %v4302_v58 }
  0x55   : > { %v3755_v29 = vpop.eup %3754  ;;  %v460_v62 = vadd.f32 1.0, %v3753_v26  ;;  %622 = vst.msk [vmem:[#allocation2 + $0xd1] sm:$0xff] %vm596_vm1, %v4309_v59 }
  0x56   : > { %v3757_v32 = vpop.eup %3756  ;;  %v461_v0 = vadd.f32 1.0, %v3755_v29  ;;  %696 = vrot.lane.b32.xlu1 %v4275_v49, %s3869_s28  ;;  %623 = vst.msk [vmem:[#allocation2 + $0xd9] sm:$0x7f] %vm598_vm3, %v4314_v60 }
  0x57   : > { %v3759_v35 = vpop.eup %3758  ;;  %3760 = vrcp.f32 %v460_v62  ;;  %v462_v5 = vadd.f32 1.0, %v3757_v32 }
  0x58   : > { %3762 = vrcp.f32 %v461_v0  ;;  %v463_v10 = vadd.f32 1.0, %v3759_v35  ;;  %698 = vrot.lane.b32.xlu0 %v4284_v52, %s3869_s28 }
  0x59   : > { %3764 = vrcp.f32 %v462_v5 }
  0x5a   : > { %3766 = vrcp.f32 %v463_v10  ;;  %700 = vrot.lane.b32.xlu1 %v4289_v1, %s3869_s28 }
  0x5c   : > { %702 = vrot.lane.b32.xlu0 %v4296_v56, %s3869_s28 }
  0x5e   : > { %704 = vrot.lane.b32.xlu1 %v4302_v58, %s3869_s28 }
  0x60   : > { %706 = vrot.lane.b32.xlu0 %v4309_v59, %s3869_s28 }
  0x61   : > { %v3761_v16 = vpop.eup %3760 }
  0x62   : > { %v3763_v17 = vpop.eup %3762  ;;  %v4337_v24 = vmul.f32 %v3761_v16, %v4212_v11  ;;  %708 = vrot.lane.b32.xlu1 %v4314_v60, %s3869_s28 }
  0x63   : > { %v3765_v7 = vpop.eup %3764  ;;  %v4342_v8 = vmul.f32 %v3763_v17, %v4217_v3 }
  0x64   : > { %v3767_v30 = vpop.eup %3766  ;;  %v4345_v9 = vmul.f32 %v3765_v7, %v4222_v27  ;;  %710 = vrot.lane.b32.xlu0 %v4337_v24, %s3869_s28  ;;  %624 = vst.msk [vmem:[#allocation2 + $0xe1] sm:$0xff] %vm596_vm1, %v4337_v24 }
  0x65   : > { %v4352_v11 = vmul.f32 %v3767_v30, %v4230_v33  ;;  %625 = vst.msk [vmem:[#allocation2 + $0xe9] sm:$0x7f] %vm598_vm3, %v4342_v8 }
  0x66   : > { %5691 = vst [vmem:[#allocation3_spill] sm:$0xff] %v4345_v9  ;;  %712 = vrot.lane.b32.xlu1 %v4342_v8, %s3869_s28  ;;  %626 = vst.msk [vmem:[#allocation2 + $0xf1] sm:$0xff] %vm596_vm1, %v4345_v9  ;;  %vm1625_vm1 = vcmask 294145  }
  0x67   : > { %5692 = vst [vmem:[#allocation4_spill] sm:$0xff] %v4352_v11  ;;  %627 = vst.msk [vmem:[#allocation2 + $0xf9] sm:$0x7f] %vm598_vm3, %v4352_v11 }
  0x68   : > { %714 = vrot.lane.b32.xlu0 %v4345_v9, %s3869_s28 }
  0x6a   : > { %716 = vrot.lane.b32.xlu1 %v4352_v11, %s3869_s28 }
  0x6c   : > { %779 = vrot.lane.b32.xlu0 %v4070_v63, %s3870_s29 }
  0x6e   : > { %781 = vrot.lane.b32.xlu1 %v4079_v6, %s3870_s29 }
  0x70   : > { %783 = vrot.lane.b32.xlu0 %v4086_v12, %s3870_s29 }
  0x72   : > { %785 = vrot.lane.b32.xlu1 %v4097_v20, %s3870_s29 }
  0x74   : > { %787 = vrot.lane.b32.xlu0 %v4108_v25, %s3870_s29 }
  0x76   : > { %789 = vrot.lane.b32.xlu1 %v4121_v28, %s3870_s29 }
  0x78   : > { %791 = vrot.lane.b32.xlu0 %v4130_v31, %s3870_s29 }
  0x7a   : > { %793 = vrot.lane.b32.xlu1 %v4141_v34, %s3870_s29 }
  0x7c   : > { %795 = vrot.lane.b32.xlu0 %v4152_v37, %s3870_s29 }
  0x7e   : > { %797 = vrot.lane.b32.xlu1 %v4162_v39, %s3870_s29 }
  0x80   : > { %799 = vrot.lane.b32.xlu0 %v4168_v41, %s3870_s29 }
  0x82   : > { %801 = vrot.lane.b32.xlu1 %v4176_v43, %s3870_s29 }
  0x84   : > { %803 = vrot.lane.b32.xlu0 %v4183_v44, %s3870_s29 }
  0x86   : > { %805 = vrot.lane.b32.xlu1 %v4234_v15, %s3870_s29 }
  0x88   : > { %807 = vrot.lane.b32.xlu0 %v4240_v18, %s3870_s29 }
  0x8a   : > { %809 = vrot.lane.b32.xlu1 %v4246_v46, %s3870_s29 }
  0x8c   : > { %811 = vrot.lane.b32.xlu0 %v4255_v45, %s3870_s29 }
  0x8e   : > { %813 = vrot.lane.b32.xlu1 %v4261_v48, %s3870_s29 }
  0x90   : > { %815 = vrot.lane.b32.xlu0 %v4268_v57, %s3870_s29 }
  0x92   : > { %817 = vrot.lane.b32.xlu1 %v4275_v49, %s3870_s29 }
  0x94   : > { %819 = vrot.lane.b32.xlu0 %v4284_v52, %s3870_s29 }
  0x96   : > { %821 = vrot.lane.b32.xlu1 %v4289_v1, %s3870_s29 }
  0x98   : > { %823 = vrot.lane.b32.xlu0 %v4296_v56, %s3870_s29 }
  0x9a   : > { %825 = vrot.lane.b32.xlu1 %v4302_v58, %s3870_s29 }
  0x9c   : > { %827 = vrot.lane.b32.xlu0 %v4309_v59, %s3870_s29 }
  0x9e   : > { %829 = vrot.lane.b32.xlu1 %v4314_v60, %s3870_s29 }
  0xa0   : > { %831 = vrot.lane.b32.xlu0 %v4337_v24, %s3870_s29 }
  0xa2   : > { %833 = vrot.lane.b32.xlu1 %v4342_v8, %s3870_s29  ;;  %v659_v3 = vpop.permute.xlu0 %658 }
  0xa3   : > { %749 = vst.msk [vmem:[#allocation2 + $0x10] sm:$0xff] %vm748_vm4, %v659_v3 }
  0xa4   : > { %v663_v27 = vpop.permute.xlu1 %662  ;;  %835 = vrot.lane.b32.xlu0 %v4345_v9, %s3870_s29 }
  0xa5   : > { %751 = vst.msk [vmem:[#allocation2 + $0x20] sm:$0xff] %vm748_vm4, %v663_v27 }
  0xa6   : > { %837 = vrot.lane.b32.xlu1 %v4352_v11, %s3870_s29  ;;  %v661_v33 = vpop.permute.xlu0 %660 }
  0xa7   : > { %750 = vst.msk [vmem:[#allocation2 + $0x18] sm:$0xff] %vm748_vm4, %v661_v33 }
  0xa8   : > { %v665_v13 = vpop.permute.xlu1 %664  ;;  %903 = vrot.lane.b32.xlu0 %v4070_v63, %s3871_s30 }
  0xa9   : > { %752 = vst.msk [vmem:[#allocation2 + $0x28] sm:$0xff] %vm748_vm4, %v665_v13 }
  0xaa   : > { %905 = vrot.lane.b32.xlu1 %v4079_v6, %s3871_s30  ;;  %v667_v36 = vpop.permute.xlu0 %666 }
  0xab   : > { %753 = vst.msk [vmem:[#allocation2 + $0x30] sm:$0xff] %vm748_vm4, %v667_v36 }
  0xac   : > { %v669_v14 = vpop.permute.xlu1 %668  ;;  %907 = vrot.lane.b32.xlu0 %v4086_v12, %s3871_s30 }
  0xad   : > { %754 = vst.msk [vmem:[#allocation2 + $0x38] sm:$0xff] %vm748_vm4, %v669_v14 }
  0xae   : > { %909 = vrot.lane.b32.xlu1 %v4097_v20, %s3871_s30  ;;  %v671_v38 = vpop.permute.xlu0 %670 }
  0xaf   : > { %755 = vst.msk [vmem:[#allocation2 + $0x40] sm:$0xff] %vm748_vm4, %v671_v38 }
  0xb0   : > { %v673_v40 = vpop.permute.xlu1 %672  ;;  %911 = vrot.lane.b32.xlu0 %v4108_v25, %s3871_s30 }
  0xb1   : > { %756 = vst.msk [vmem:[#allocation2 + $0x48] sm:$0xff] %vm748_vm4, %v673_v40 }
  0xb2   : > { %913 = vrot.lane.b32.xlu1 %v4121_v28, %s3871_s30  ;;  %v675_v42 = vpop.permute.xlu0 %674 }
  0xb3   : > { %757 = vst.msk [vmem:[#allocation2 + $0x50] sm:$0xff] %vm748_vm4, %v675_v42 }
  0xb4   : > { %v677_v19 = vpop.permute.xlu1 %676  ;;  %915 = vrot.lane.b32.xlu0 %v4130_v31, %s3871_s30 }
  0xb5   : > { %758 = vst.msk [vmem:[#allocation2 + $0x58] sm:$0xff] %vm748_vm4, %v677_v19 }
  0xb6   : > { %917 = vrot.lane.b32.xlu1 %v4141_v34, %s3871_s30  ;;  %v679_v21 = vpop.permute.xlu0 %678 }
  0xb7   : > { %759 = vst.msk [vmem:[#allocation2 + $0x60] sm:$0xff] %vm748_vm4, %v679_v21 }
  0xb8   : > { %v681_v50 = vpop.permute.xlu1 %680  ;;  %919 = vrot.lane.b32.xlu0 %v4152_v37, %s3871_s30 }
  0xb9   : > { %760 = vst.msk [vmem:[#allocation2 + $0x68] sm:$0xff] %vm748_vm4, %v681_v50 }
  0xba   : > { %921 = vrot.lane.b32.xlu1 %v4162_v39, %s3871_s30  ;;  %v683_v47 = vpop.permute.xlu0 %682 }
  0xbb   : > { %761 = vst.msk [vmem:[#allocation2 + $0x70] sm:$0xff] %vm748_vm4, %v683_v47 }
  0xbc   : > { %v685_v53 = vpop.permute.xlu1 %684  ;;  %923 = vrot.lane.b32.xlu0 %v4168_v41, %s3871_s30 }
  0xbd   : > { %762 = vst.msk [vmem:[#allocation2 + $0x78] sm:$0xff] %vm748_vm4, %v685_v53 }
  0xbe   : > { %925 = vrot.lane.b32.xlu1 %v4176_v43, %s3871_s30  ;;  %v687_v23 = vpop.permute.xlu0 %686 }
  0xbf   : > { %763 = vst.msk [vmem:[#allocation2 + $0x80] sm:$0xff] %vm748_vm4, %v687_v23 }
  0xc0   : > { %v689_v61 = vpop.permute.xlu1 %688  ;;  %927 = vrot.lane.b32.xlu0 %v4183_v44, %s3871_s30 }
  0xc1   : > { %764 = vst.msk [vmem:[#allocation2 + $0x88] sm:$0xff] %vm748_vm4, %v689_v61 }
  0xc2   : > { %929 = vrot.lane.b32.xlu1 %v4234_v15, %s3871_s30  ;;  %v691_v51 = vpop.permute.xlu0 %690 }
  0xc3   : > { %765 = vst.msk [vmem:[#allocation2 + $0x90] sm:$0xff] %vm748_vm4, %v691_v51  ;;  %v2396_v51 = vld [vmem:[%s5684_s3] sm:$0xff] }
  0xc4   : > { %v693_v4 = vpop.permute.xlu1 %692  ;;  %1033 = vrot.lane.b32.xlu0 %v4070_v63, %s3872_s6 }
  0xc5   : > { %766 = vst.msk [vmem:[#allocation2 + $0x98] sm:$0xff] %vm748_vm4, %v693_v4  ;;  %v2397_v4 = vld [vmem:[%s5684_s3 + $0x8] sm:$0xff] }
  0xc6   : > { %1035 = vrot.lane.b32.xlu1 %v4079_v6, %s3872_s6  ;;  %v695_v54 = vpop.permute.xlu0 %694 }
  0xc7   : > { %767 = vst.msk [vmem:[#allocation2 + $0xa0] sm:$0xff] %vm748_vm4, %v695_v54 }
  0xc8   : > { %v697_v55 = vpop.permute.xlu1 %696  ;;  %1162 = vrot.lane.b32.xlu0 %v4070_v63, %s3873_s7 }
  0xc9   : > { %768 = vst.msk [vmem:[#allocation2 + $0xa8] sm:$0xff] %vm748_vm4, %v697_v55  ;;  %v3527_v55 = vpack.c.bf16 %v2397_v4, %v2396_v51 }
  0xca   : > { %1164 = vrot.lane.b32.xlu1 %v4079_v6, %s3873_s7  ;;  %v699_v2 = vpop.permute.xlu0 %698 }
  0xcb   : > { %769 = vst.msk [vmem:[#allocation2 + $0xb0] sm:$0xff] %vm748_vm4, %v699_v2  ;;  %3567 = vmatprep.subr.bf16.mxu1 %v3527_v55  ;;  %3528 = vmatprep.subr.bf16.mxu0 %v3527_v55 }
  0xcc   : > { %v701_v22 = vpop.permute.xlu1 %700  ;;  %1292 = vrot.lane.b32.xlu0 %v4086_v12, %s3874_s8  ;;  %3575 = vmatpush3.bf16.msra.mxu1 %v3527_v55 }
  0xcd   : > { %770 = vst.msk [vmem:[#allocation2 + $0xb8] sm:$0xff] %vm748_vm4, %v701_v22  ;;  %3530 = vmatpush3.bf16.msra.mxu0 %v3527_v55 }
  0xce   : > { %1294 = vrot.lane.b32.xlu1 %v4097_v20, %s3874_s8  ;;  %v703_v26 = vpop.permute.xlu0 %702 }
  0xcf   : > { %771 = vst.msk [vmem:[#allocation2 + $0xc0] sm:$0xff] %vm748_vm4, %v703_v26 }
  0xd0   : > { %v705_v63 = vpop.permute.xlu1 %704  ;;  %1414 = vrot.lane.b32.xlu0 %v4086_v12, %s3875_s9 }
  0xd1   : > { %772 = vst.msk [vmem:[#allocation2 + $0xc8] sm:$0xff] %vm748_vm4, %v705_v63 }
  0xd2   : > { %1416 = vrot.lane.b32.xlu1 %v4097_v20, %s3875_s9  ;;  %v707_v6 = vpop.permute.xlu0 %706 }
  0xd3   : > { %773 = vst.msk [vmem:[#allocation2 + $0xd0] sm:$0xff] %vm748_vm4, %v707_v6 }
  0xd4   : > { %v709_v29 = vpop.permute.xlu1 %708  ;;  %1037 = vrot.lane.b32.xlu0 %v4086_v12, %s3872_s6 }
  0xd5   : > { %774 = vst.msk [vmem:[#allocation2 + $0xd8] sm:$0xff] %vm748_vm4, %v709_v29 }
  0xd6   : > { %1039 = vrot.lane.b32.xlu1 %v4097_v20, %s3872_s6  ;;  %v711_v62 = vpop.permute.xlu0 %710 }
  0xd7   : > { %775 = vst.msk [vmem:[#allocation2 + $0xe0] sm:$0xff] %vm748_vm4, %v711_v62 }
  0xd8   : > { %v713_v32 = vpop.permute.xlu1 %712  ;;  %1535 = vrot.lane.b32.xlu0 %v4086_v12, %s3876_s10 }
  0xd9   : > { %776 = vst.msk [vmem:[#allocation2 + $0xe8] sm:$0xff] %vm748_vm4, %v713_v32  ;;  %v2398_v32 = vld [vmem:[%s5684_s3 + $0x10] sm:$0xff] }
  0xda   : > { %1537 = vrot.lane.b32.xlu1 %v4097_v20, %s3876_s10  ;;  %v715_v0 = vpop.permute.xlu0 %714 }
  0xdb   : > { %777 = vst.msk [vmem:[#allocation2 + $0xf0] sm:$0xff] %vm748_vm4, %v715_v0  ;;  %v2399_v0 = vld [vmem:[%s5684_s3 + $0x18] sm:$0xff] }
  0xdc   : > { %v717_v35 = vpop.permute.xlu1 %716  ;;  %1166 = vrot.lane.b32.xlu0 %v4086_v12, %s3873_s7 }
  0xdd   : > { %778 = vst.msk [vmem:[#allocation2 + $0xf8] sm:$0xff] %vm748_vm4, %v717_v35 }
  0xde   : > { %1168 = vrot.lane.b32.xlu1 %v4097_v20, %s3873_s7  ;;  %v780_v5 = vpop.permute.xlu0 %779 }
  0xdf   : > { %870 = vst.msk [vmem:[#allocation2 + $0xf] sm:$0xfe] %vm869_vm5, %v780_v5  ;;  %v3531_v5 = vpack.c.bf16 %v2399_v0, %v2398_v32 }
  0xe0   : > { %v782_v10 = vpop.permute.xlu1 %781  ;;  %1296 = vrot.lane.b32.xlu0 %v4108_v25, %s3874_s8 }
  0xe1   : > { %872 = vst.msk [vmem:[#allocation2 + $0x17] sm:$0xff] %vm871_vm6, %v782_v10  ;;  %3568 = vmatprep.subr.bf16.mxu1 %v3531_v5  ;;  %3532 = vmatprep.subr.bf16.mxu0 %v3531_v5 }
  0xe2   : > { %1298 = vrot.lane.b32.xlu1 %v4121_v28, %s3874_s8  ;;  %v784_v12 = vpop.permute.xlu0 %783  ;;  %3576 = vmatpush3.bf16.msra.mxu1 %v3531_v5 }
  0xe3   : > { %873 = vst.msk [vmem:[#allocation2 + $0x1f] sm:$0xfe] %vm869_vm5, %v784_v12  ;;  %3534 = vmatpush3.bf16.msra.mxu0 %v3531_v5 }
  0xe4   : > { %v786_v16 = vpop.permute.xlu1 %785  ;;  %1418 = vrot.lane.b32.xlu0 %v4108_v25, %s3875_s9 }
  0xe5   : > { %874 = vst.msk [vmem:[#allocation2 + $0x27] sm:$0xff] %vm871_vm6, %v786_v16 }
  0xe6   : > { %1420 = vrot.lane.b32.xlu1 %v4121_v28, %s3875_s9  ;;  %v788_v20 = vpop.permute.xlu0 %787 }
  0xe7   : > { %875 = vst.msk [vmem:[#allocation2 + $0x2f] sm:$0xfe] %vm869_vm5, %v788_v20 }
  0xe8   : > { %v790_v17 = vpop.permute.xlu1 %789  ;;  %1041 = vrot.lane.b32.xlu0 %v4108_v25, %s3872_s6  ;;  %v4527_v7 = vpop.f32.mrb[0].mxu0 }
  0xe9   : > { %876 = vst.msk [vmem:[#allocation2 + $0x37] sm:$0xff] %vm871_vm6, %v790_v17  ;;  %v2060_v30 = vmul.f32 %v4527_v7, %v4527_v7  ;;  %v4532_v3 = vpop.f32.mrb[1].mxu0 }
  0xea   : > { %1043 = vrot.lane.b32.xlu1 %v4121_v28, %s3872_s6  ;;  %v792_v27 = vpop.permute.xlu0 %791  ;;  %v2020_v33 = vadd.f32 %v4527_v7, %v4532_v3  ;;  %v2059_v13 = vmul.f32 %v4532_v3, %v4532_v3 }
  0xeb   : > { %877 = vst.msk [vmem:[#allocation2 + $0x3f] sm:$0xfe] %vm869_vm5, %v792_v27 }
  0xec   : > { %v794_v36 = vpop.permute.xlu1 %793  ;;  %v2091_v14 = vadd.f32 %v2060_v30, %v2059_v13  ;;  %v4541_v38 = vpop.f32.mrb[2].mxu0  ;;  %1539 = vrot.lane.b32.xlu0 %v4108_v25, %s3876_s10 }
  0xed   : > { %878 = vst.msk [vmem:[#allocation2 + $0x47] sm:$0xff] %vm871_vm6, %v794_v36  ;;  %v4546_v40 = vpop.f32.mrb[3].mxu0  ;;  %v2062_v42 = vmul.f32 %v4541_v38, %v4541_v38  ;;  %v2400_v36 = vld [vmem:[%s5684_s3 + $0x20] sm:$0xff] }
  0xee   : > { %1541 = vrot.lane.b32.xlu1 %v4121_v28, %s3876_s10  ;;  %v2021_v19 = vadd.f32 %v2020_v33, %v4546_v40  ;;  %v2061_v21 = vmul.f32 %v4546_v40, %v4546_v40  ;;  %v796_v50 = vpop.permute.xlu0 %795 }
  0xef   : > { %879 = vst.msk [vmem:[#allocation2 + $0x4f] sm:$0xfe] %vm869_vm5, %v796_v50 }
  0xf0   : > { %v2092_v47 = vadd.f32 %v2091_v14, %v2061_v21  ;;  %v798_v53 = vpop.permute.xlu1 %797  ;;  %v4556_v23 = vpop.f32.mrb[4].mxu0  ;;  %1170 = vrot.lane.b32.xlu0 %v4108_v25, %s3873_s7  ;;  %v2022_v61 = vadd.f32 %v4541_v38, %v2021_v19  ;;  %v2401_v14 = vld [vmem:[%s5684_s3 + $0x28] sm:$0xff] }
  0xf1   : > { %880 = vst.msk [vmem:[#allocation2 + $0x57] sm:$0xff] %vm871_vm6, %v798_v53  ;;  %v4568_v54 = vpop.f32.mrb[5].mxu0  ;;  %v2064_v25 = vmul.f32 %v4556_v23, %v4556_v23  ;;  %v3535_v19 = vpack.c.bf16 %v2401_v14, %v2400_v36 }
  0xf2   : > { %1172 = vrot.lane.b32.xlu1 %v4121_v28, %s3873_s7  ;;  %v2023_v2 = vadd.f32 %v2022_v61, %v4568_v54  ;;  %v2063_v22 = vmul.f32 %v4568_v54, %v4568_v54  ;;  %v2093_v26 = vadd.f32 %v2092_v47, %v2062_v42  ;;  %v800_v63 = vpop.permute.xlu0 %799 }
  0xf3   : > { %881 = vst.msk [vmem:[#allocation2 + $0x5f] sm:$0xfe] %vm869_vm5, %v800_v63  ;;  %3569 = vmatprep.subr.bf16.mxu1 %v3535_v19  ;;  %3536 = vmatprep.subr.bf16.mxu0 %v3535_v19 }
  0xf4   : > { %v2094_v6 = vadd.f32 %v2093_v26, %v2063_v22  ;;  %v802_v29 = vpop.permute.xlu1 %801  ;;  %v4578_v62 = vpop.f32.mrb[6].mxu0  ;;  %1300 = vrot.lane.b32.xlu0 %v4130_v31, %s3874_s8  ;;  %v2024_v28 = vadd.f32 %v4556_v23, %v2023_v2  ;;  %3577 = vmatpush3.bf16.msra.mxu1 %v3535_v19  ;;  %v2402_v2 = vld [vmem:[%s5684_s3 + $0x30] sm:$0xff]  ;;  %v2403_v22 = vld [vmem:[%s5684_s3 + $0x38] sm:$0xff] }
  0xf5   : > { %882 = vst.msk [vmem:[#allocation2 + $0x67] sm:$0xff] %vm871_vm6, %v802_v29  ;;  %v4590_v35 = vpop.f32.mrb[7].mxu0  ;;  %v2066_v10 = vmul.f32 %v4578_v62, %v4578_v62  ;;  %v3539_v63 = vpack.c.bf16 %v2403_v22, %v2402_v2  ;;  %3538 = vmatpush3.bf16.msra.mxu0 %v3535_v19 }
  0xf6   : > { %1302 = vrot.lane.b32.xlu1 %v4141_v34, %s3874_s8  ;;  %v2025_v12 = vadd.f32 %v2024_v28, %v4590_v35  ;;  %v2065_v16 = vmul.f32 %v4590_v35, %v4590_v35  ;;  %v2095_v20 = vadd.f32 %v2094_v6, %v2064_v25  ;;  %v804_v17 = vpop.permute.xlu0 %803 }
  0xf7   : > { %883 = vst.msk [vmem:[#allocation2 + $0x6f] sm:$0xfe] %vm869_vm5, %v804_v17  ;;  %3570 = vmatprep.subr.bf16.mxu1 %v3539_v63  ;;  %3540 = vmatprep.subr.bf16.mxu0 %v3539_v63  ;;  %v2405_v17 = vld [vmem:[%s5684_s3 + $0x48] sm:$0xff] }
  0xf8   : > { %v2096_v30 = vadd.f32 %v2095_v20, %v2065_v16  ;;  %v806_v27 = vpop.permute.xlu1 %805  ;;  %v4600_v33 = vpop.f32.mrb[8].mxu0  ;;  %1422 = vrot.lane.b32.xlu0 %v4130_v31, %s3875_s9  ;;  %v2026_v13 = vadd.f32 %v4578_v62, %v2025_v12  ;;  %3578 = vmatpush3.bf16.msra.mxu1 %v3539_v63  ;;  %v2404_v20 = vld [vmem:[%s5684_s3 + $0x40] sm:$0xff] }
  0xf9   : > { %884 = vst.msk [vmem:[#allocation2 + $0x77] sm:$0xff] %vm871_vm6, %v806_v27  ;;  %v4612_v42 = vpop.f32.mrb[9].mxu0  ;;  %v2068_v21 = vmul.f32 %v4600_v33, %v4600_v33  ;;  %v3543_v27 = vpack.c.bf16 %v2405_v17, %v2404_v20  ;;  %3542 = vmatpush3.bf16.msra.mxu0 %v3539_v63 }
  0xfa   : > { %1424 = vrot.lane.b32.xlu1 %v4141_v34, %s3875_s9  ;;  %v2027_v50 = vadd.f32 %v2026_v13, %v4612_v42  ;;  %v2067_v47 = vmul.f32 %v4612_v42, %v4612_v42  ;;  %v2097_v53 = vadd.f32 %v2096_v30, %v2066_v10  ;;  %v808_v61 = vpop.permute.xlu0 %807 }
  0xfb   : > { %885 = vst.msk [vmem:[#allocation2 + $0x7f] sm:$0xfe] %vm869_vm5, %v808_v61  ;;  %3571 = vmatprep.subr.bf16.mxu1 %v3543_v27  ;;  %3544 = vmatprep.subr.bf16.mxu0 %v3543_v27 }
  0xfc   : > { %v2098_v51 = vadd.f32 %v2097_v53, %v2067_v47  ;;  %v810_v4 = vpop.permute.xlu1 %809  ;;  %v4622_v55 = vpop.f32.mrb[10].mxu0  ;;  %1045 = vrot.lane.b32.xlu0 %v4130_v31, %s3872_s6  ;;  %v2028_v25 = vadd.f32 %v4600_v33, %v2027_v50  ;;  %3579 = vmatpush3.bf16.msra.mxu1 %v3543_v27 }
  0xfd   : > { %886 = vst.msk [vmem:[#allocation2 + $0x87] sm:$0xff] %vm871_vm6, %v810_v4  ;;  %v4634_v26 = vpop.f32.mrb[11].mxu0  ;;  %v2070_v6 = vmul.f32 %v4622_v55, %v4622_v55  ;;  %v2407_v4 = vld [vmem:[%s5684_s3 + $0x58] sm:$0xff]  ;;  %3546 = vmatpush3.bf16.msra.mxu0 %v3543_v27 }
  0xfe   : > { %1047 = vrot.lane.b32.xlu1 %v4141_v34, %s3872_s6  ;;  %v2029_v29 = vadd.f32 %v2028_v25, %v4634_v26  ;;  %v2069_v28 = vmul.f32 %v4634_v26, %v4634_v26  ;;  %v2099_v32 = vadd.f32 %v2098_v51, %v2068_v21  ;;  %v812_v0 = vpop.permute.xlu0 %811  ;;  %v2406_v51 = vld [vmem:[%s5684_s3 + $0x50] sm:$0xff] }
  0xff   : > { %887 = vst.msk [vmem:[#allocation2 + $0x8f] sm:$0xfe] %vm869_vm5, %v812_v0  ;;  %v3547_v2 = vpack.c.bf16 %v2407_v4, %v2406_v51  ;;  %v2411_v51 = vld [vmem:[%s5684_s3 + $0x78] sm:$0xff] }
 0x100   : > { %v2100_v5 = vadd.f32 %v2099_v32, %v2069_v28  ;;  %v814_v10 = vpop.permute.xlu1 %813  ;;  %v4644_v12 = vpop.f32.mrb[12].mxu0  ;;  %1543 = vrot.lane.b32.xlu0 %v4130_v31, %s3876_s10  ;;  %v2030_v16 = vadd.f32 %v4622_v55, %v2029_v29 }
 0x101   : > { %888 = vst.msk [vmem:[#allocation2 + $0x97] sm:$0xff] %vm871_vm6, %v814_v10  ;;  %v4656_v30 = vpop.f32.mrb[13].mxu0  ;;  %v2072_v13 = vmul.f32 %v4644_v12, %v4644_v12  ;;  %3572 = vmatprep.subr.bf16.mxu1 %v3547_v2  ;;  %3548 = vmatprep.subr.bf16.mxu0 %v3547_v2  ;;  %v2409_v10 = vld [vmem:[%s5684_s3 + $0x68] sm:$0xff] }
 0x102   : > { %1545 = vrot.lane.b32.xlu1 %v4141_v34, %s3876_s10  ;;  %v2031_v36 = vadd.f32 %v2030_v16, %v4656_v30  ;;  %v2071_v14 = vmul.f32 %v4656_v30, %v4656_v30  ;;  %v2101_v19 = vadd.f32 %v2100_v5, %v2070_v6  ;;  %v816_v21 = vpop.permute.xlu0 %815  ;;  %3580 = vmatpush3.bf16.msra.mxu1 %v3547_v2  ;;  %v2408_v5 = vld [vmem:[%s5684_s3 + $0x60] sm:$0xff] }
 0x103   : > { %889 = vst.msk [vmem:[#allocation2 + $0x9f] sm:$0xfe] %vm869_vm5, %v816_v21  ;;  %v3551_v20 = vpack.c.bf16 %v2409_v10, %v2408_v5  ;;  %3550 = vmatpush3.bf16.msra.mxu0 %v3547_v2 }
 0x104   : > { %v2102_v50 = vadd.f32 %v2101_v19, %v2071_v14  ;;  %v818_v47 = vpop.permute.xlu1 %817  ;;  %v4666_v53 = vpop.f32.mrb[14].mxu0  ;;  %1174 = vrot.lane.b32.xlu0 %v4130_v31, %s3873_s7  ;;  %v2032_v61 = vadd.f32 %v4644_v12, %v2031_v36 }
 0x105   : > { %890 = vst.msk [vmem:[#allocation2 + $0xa7] sm:$0xff] %vm871_vm6, %v818_v47  ;;  %v4678_v25 = vpop.f32.mrb[15].mxu0  ;;  %v2074_v31 = vmul.f32 %v4666_v53, %v4666_v53  ;;  %3573 = vmatprep.subr.bf16.mxu1 %v3551_v20  ;;  %3552 = vmatprep.subr.bf16.mxu0 %v3551_v20 }
 0x106   : > { %1176 = vrot.lane.b32.xlu1 %v4141_v34, %s3873_s7  ;;  %v2033_v22 = vadd.f32 %v2032_v61, %v4678_v25  ;;  %v2073_v63 = vmul.f32 %v4678_v25, %v4678_v25  ;;  %v2103_v6 = vadd.f32 %v2102_v50, %v2072_v13  ;;  %v820_v29 = vpop.permute.xlu0 %819  ;;  %3581 = vmatpush3.bf16.msra.mxu1 %v3551_v20  ;;  %v2410_v61 = vld [vmem:[%s5684_s3 + $0x70] sm:$0xff] }
 0x107   : > { %891 = vst.msk [vmem:[#allocation2 + $0xaf] sm:$0xfe] %vm869_vm5, %v820_v29  ;;  %v3555_v2 = vpack.c.bf16 %v2411_v51, %v2410_v61  ;;  %3554 = vmatpush3.bf16.msra.mxu0 %v3551_v20 }
 0x108   : > { %v2104_v28 = vadd.f32 %v2103_v6, %v2073_v63  ;;  %v822_v32 = vpop.permute.xlu1 %821  ;;  %v4688_v0 = vpop.f32.mrb[16].mxu0  ;;  %1304 = vrot.lane.b32.xlu0 %v4152_v37, %s3874_s8  ;;  %v2034_v34 = vadd.f32 %v4666_v53, %v2033_v22 }
 0x109   : > { %892 = vst.msk [vmem:[#allocation2 + $0xb7] sm:$0xff] %vm871_vm6, %v822_v32  ;;  %v4700_v16 = vpop.f32.mrb[17].mxu0  ;;  %v2076_v17 = vmul.f32 %v4688_v0, %v4688_v0  ;;  %3574 = vmatprep.subr.bf16.mxu1 %v3555_v2  ;;  %3556 = vmatprep.subr.bf16.mxu0 %v3555_v2 }
 0x10a   : > { %1306 = vrot.lane.b32.xlu1 %v4162_v39, %s3874_s8  ;;  %v2035_v27 = vadd.f32 %v2034_v34, %v4700_v16  ;;  %v2075_v13 = vmul.f32 %v4700_v16, %v4700_v16  ;;  %v2105_v36 = vadd.f32 %v2104_v28, %v2074_v31  ;;  %v824_v14 = vpop.permute.xlu0 %823  ;;  %3582 = vmatpush3.bf16.msra.mxu1 %v3555_v2 }
 0x10b   : > { %893 = vst.msk [vmem:[#allocation2 + $0xbf] sm:$0xfe] %vm869_vm5, %v824_v14  ;;  %3558 = vmatpush3.bf16.msra.mxu0 %v3555_v2 }
 0x10c   : > { %v2106_v19 = vadd.f32 %v2105_v36, %v2075_v13  ;;  %v826_v21 = vpop.permute.xlu1 %825  ;;  %v4710_v50 = vpop.f32.mrb[18].mxu0  ;;  %1426 = vrot.lane.b32.xlu0 %v4152_v37, %s3875_s9  ;;  %v2036_v47 = vadd.f32 %v4688_v0, %v2035_v27 }
 0x10d   : > { %894 = vst.msk [vmem:[#allocation2 + $0xc7] sm:$0xff] %vm871_vm6, %v826_v21  ;;  %v4722_v4 = vpop.f32.mrb[19].mxu0  ;;  %v2078_v31 = vmul.f32 %v4710_v50, %v4710_v50 }
 0x10e   : > { %1428 = vrot.lane.b32.xlu1 %v4162_v39, %s3875_s9  ;;  %v2037_v22 = vadd.f32 %v2036_v47, %v4722_v4  ;;  %v2077_v63 = vmul.f32 %v4722_v4, %v4722_v4  ;;  %v2107_v6 = vadd.f32 %v2106_v19, %v2076_v17  ;;  %v828_v29 = vpop.permute.xlu0 %827 }
 0x10f   : > { %895 = vst.msk [vmem:[#allocation2 + $0xcf] sm:$0xfe] %vm869_vm5, %v828_v29 }
 0x110   : > { %v2108_v28 = vadd.f32 %v2107_v6, %v2077_v63  ;;  %v830_v32 = vpop.permute.xlu1 %829  ;;  %v4732_v34 = vpop.f32.mrb[20].mxu0  ;;  %1049 = vrot.lane.b32.xlu0 %v4152_v37, %s3872_s6  ;;  %v2038_v5 = vadd.f32 %v4710_v50, %v2037_v22 }
 0x111   : > { %896 = vst.msk [vmem:[#allocation2 + $0xd7] sm:$0xff] %vm871_vm6, %v830_v32  ;;  %v4738_v10 = vpop.f32.mrb[21].mxu0  ;;  %v2080_v20 = vmul.f32 %v4732_v34, %v4732_v34 }
 0x112   : > { %1051 = vrot.lane.b32.xlu1 %v4162_v39, %s3872_s6  ;;  %v2039_v17 = vadd.f32 %v2038_v5, %v4738_v10  ;;  %v2079_v27 = vmul.f32 %v4738_v10, %v4738_v10  ;;  %v2109_v13 = vadd.f32 %v2108_v28, %v2078_v31  ;;  %v832_v36 = vpop.permute.xlu0 %831 }
 0x113   : > { %897 = vst.msk [vmem:[#allocation2 + $0xdf] sm:$0xfe] %vm869_vm5, %v832_v36 }
 0x114   : > { %v2110_v14 = vadd.f32 %v2109_v13, %v2079_v27  ;;  %v834_v19 = vpop.permute.xlu1 %833  ;;  %v4748_v21 = vpop.f32.mrb[22].mxu0  ;;  %1547 = vrot.lane.b32.xlu0 %v4152_v37, %s3876_s10  ;;  %v2040_v47 = vadd.f32 %v4732_v34, %v2039_v17 }
 0x115   : > { %898 = vst.msk [vmem:[#allocation2 + $0xe7] sm:$0xff] %vm871_vm6, %v834_v19  ;;  %v4754_v61 = vpop.f32.mrb[23].mxu0  ;;  %v2082_v51 = vmul.f32 %v4748_v21, %v4748_v21 }
 0x116   : > { %1549 = vrot.lane.b32.xlu1 %v4162_v39, %s3876_s10  ;;  %v2041_v2 = vadd.f32 %v2040_v47, %v4754_v61  ;;  %v2081_v31 = vmul.f32 %v4754_v61, %v4754_v61  ;;  %v2111_v22 = vadd.f32 %v2110_v14, %v2080_v20  ;;  %v836_v63 = vpop.permute.xlu0 %835 }
 0x117   : > { %899 = vst.msk [vmem:[#allocation2 + $0xef] sm:$0xfe] %vm869_vm5, %v836_v63 }
 0x118   : > { %v2112_v6 = vadd.f32 %v2111_v22, %v2081_v31  ;;  %v838_v29 = vpop.permute.xlu1 %837  ;;  %v4764_v28 = vpop.f32.mrb[24].mxu0  ;;  %1178 = vrot.lane.b32.xlu0 %v4152_v37, %s3873_s7  ;;  %v2042_v32 = vadd.f32 %v4748_v21, %v2041_v2 }
 0x119   : > { %900 = vst.msk [vmem:[#allocation2 + $0xf7] sm:$0xff] %vm871_vm6, %v838_v29  ;;  %v4770_v5 = vpop.f32.mrb[25].mxu0  ;;  %v2084_v20 = vmul.f32 %v4764_v28, %v4764_v28 }
 0x11a   : > { %1180 = vrot.lane.b32.xlu1 %v4162_v39, %s3873_s7  ;;  %v2043_v17 = vadd.f32 %v2042_v32, %v4770_v5  ;;  %v2083_v27 = vmul.f32 %v4770_v5, %v4770_v5  ;;  %v2113_v37 = vadd.f32 %v2112_v6, %v2082_v51  ;;  %v904_v13 = vpop.permute.xlu0 %903 }
 0x11b   : > { %1000 = vst.msk [vmem:[#allocation2 + $0x1] sm:$0xff] %vm999_vm7, %v904_v13 }
 0x11c   : > { %v2114_v36 = vadd.f32 %v2113_v37, %v2083_v27  ;;  %v906_v14 = vpop.permute.xlu1 %905  ;;  %v4780_v19 = vpop.f32.mrb[26].mxu0  ;;  %1308 = vrot.lane.b32.xlu0 %v4168_v41, %s3874_s8  ;;  %v2044_v39 = vadd.f32 %v4764_v28, %v2043_v17 }
 0x11d   : > { %1002 = vst.msk [vmem:[#allocation2 + $0x9] sm:$0x7f] %vm1001_vm8, %v906_v14  ;;  %v4786_v47 = vpop.f32.mrb[27].mxu0  ;;  %v2086_v51 = vmul.f32 %v4780_v19, %v4780_v19 }
 0x11e   : > { %1310 = vrot.lane.b32.xlu1 %v4176_v43, %s3874_s8  ;;  %v2045_v2 = vadd.f32 %v2044_v39, %v4786_v47  ;;  %v2085_v31 = vmul.f32 %v4786_v47, %v4786_v47  ;;  %v2115_v22 = vadd.f32 %v2114_v36, %v2084_v20  ;;  %v908_v63 = vpop.permute.xlu0 %907  ;;  %v1689_v39 = vld [vmem:[%s5682_s1] sm:$0xff] }
 0x11f   : > { %1003 = vst.msk [vmem:[#allocation2 + $0x11] sm:$0xff] %vm999_vm7, %v908_v63 }
 0x120   : > { %v2116_v6 = vadd.f32 %v2115_v22, %v2085_v31  ;;  %v910_v29 = vpop.permute.xlu1 %909  ;;  %v4796_v32 = vpop.f32.mrb[28].mxu0  ;;  %1430 = vrot.lane.b32.xlu0 %v4168_v41, %s3875_s9  ;;  %v2046_v17 = vadd.f32 %v4780_v19, %v2045_v2  ;;  %v1690_v2 = vld [vmem:[%s5682_s1 + $0x8] sm:$0xff] }
 0x121   : > { %1004 = vst.msk [vmem:[#allocation2 + $0x19] sm:$0x7f] %vm1001_vm8, %v910_v29  ;;  %v4802_v27 = vpop.f32.mrb[29].mxu0  ;;  %v2088_v20 = vmul.f32 %v4796_v32, %v4796_v32 }
 0x122   : > { %1432 = vrot.lane.b32.xlu1 %v4176_v43, %s3875_s9  ;;  %v2047_v37 = vadd.f32 %v2046_v17, %v4802_v27  ;;  %v2087_v13 = vmul.f32 %v4802_v27, %v4802_v27  ;;  %v2117_v36 = vadd.f32 %v2116_v6, %v2086_v51  ;;  %v912_v14 = vpop.permute.xlu0 %911  ;;  %v4823_v6 = vpack.c.bf16 %v1690_v2, %v1689_v39 }
 0x123   : > { %1005 = vst.msk [vmem:[#allocation2 + $0x21] sm:$0xff] %vm999_vm7, %v912_v14 }
 0x124   : > { %v2118_v31 = vadd.f32 %v2117_v36, %v2087_v13  ;;  %v914_v22 = vpop.permute.xlu1 %913  ;;  %v4818_v63 = vpop.f32.mrb[30].mxu0  ;;  %1053 = vrot.lane.b32.xlu0 %v4168_v41, %s3872_s6  ;;  %v2048_v51 = vadd.f32 %v4796_v32, %v2047_v37  ;;  %3560 = vmatprep.subr.bf16.mxu1 %v4823_v6 }
 0x125   : > { %1006 = vst.msk [vmem:[#allocation2 + $0x29] sm:$0x7f] %vm1001_vm8, %v914_v22  ;;  %v2090_v29 = vmul.f32 %v4818_v63, %v4818_v63  ;;  %v4828_v17 = vpop.f32.mrb[31].mxu0 }
 0x126   : > { %1055 = vrot.lane.b32.xlu1 %v4176_v43, %s3872_s6  ;;  %v2049_v13 = vadd.f32 %v2048_v51, %v4828_v17  ;;  %v2089_v36 = vmul.f32 %v4828_v17, %v4828_v17  ;;  %v2119_v14 = vadd.f32 %v2118_v31, %v2088_v20  ;;  %v916_v11 = vpop.permute.xlu0 %915 }
 0x127   : > { %1007 = vst.msk [vmem:[#allocation2 + $0x31] sm:$0xff] %vm999_vm7, %v916_v11 }
 0x128   : > { %v2050_v37 = vadd.f32 %v4818_v63, %v2049_v13  ;;  %v2120_v39 = vadd.f32 %v2119_v14, %v2089_v36  ;;  %v918_v2 = vpop.permute.xlu1 %917  ;;  %1551 = vrot.lane.b32.xlu0 %v4168_v41, %s3876_s10 }
 0x129   : > { %1008 = vst.msk [vmem:[#allocation2 + $0x39] sm:$0x7f] %vm1001_vm8, %v918_v2 }
 0x12a   : > { %v2051_v22 = vrot.slane %v2050_v37, 4  ;;  %v2121_v51 = vadd.f32 %v2120_v39, %v2090_v29  ;;  %1553 = vrot.lane.b32.xlu1 %v4176_v43, %s3876_s10  ;;  %v920_v20 = vpop.permute.xlu0 %919 }
 0x12b   : > { %1009 = vst.msk [vmem:[#allocation2 + $0x41] sm:$0xff] %vm999_vm7, %v920_v20 }
 0x12c   : > { %v2052_v31 = vadd.f32 %v2051_v22, %v2050_v37  ;;  %v2122_v9 = vrot.slane %v2121_v51, 4  ;;  %v922_v11 = vpop.permute.xlu1 %921  ;;  %1182 = vrot.lane.b32.xlu0 %v4168_v41, %s3873_s7 }
 0x12d   : > { %1010 = vst.msk [vmem:[#allocation2 + $0x49] sm:$0x7f] %vm1001_vm8, %v922_v11 }
 0x12e   : > { %v2053_v13 = vrot.slane %v2052_v31, 2  ;;  %v2123_v36 = vadd.f32 %v2122_v9, %v2121_v51  ;;  %1184 = vrot.lane.b32.xlu1 %v4176_v43, %s3873_s7  ;;  %v924_v29 = vpop.permute.xlu0 %923 }
 0x12f   : > { %1011 = vst.msk [vmem:[#allocation2 + $0x51] sm:$0xff] %vm999_vm7, %v924_v29 }
 0x130   : > { %v2054_v14 = vadd.f32 %v2053_v13, %v2052_v31  ;;  %v2124_v39 = vrot.slane %v2123_v36, 2  ;;  %v926_v2 = vpop.permute.xlu1 %925  ;;  %1312 = vrot.lane.b32.xlu0 %v4183_v44, %s3874_s8 }
 0x131   : > { %1012 = vst.msk [vmem:[#allocation2 + $0x59] sm:$0x7f] %vm1001_vm8, %v926_v2 }
 0x132   : > { %v2055_v37 = vrot.slane %v2054_v14, 1  ;;  %v2125_v41 = vadd.f32 %v2124_v39, %v2123_v36  ;;  %1314 = vrot.lane.b32.xlu1 %v4234_v15, %s3874_s8  ;;  %v928_v9 = vpop.permute.xlu0 %927 }
 0x133   : > { %1013 = vst.msk [vmem:[#allocation2 + $0x61] sm:$0xff] %vm999_vm7, %v928_v9 }
 0x134   : > { %v2056_v43 = vadd.f32 %v2055_v37, %v2054_v14  ;;  %v2126_v22 = vrot.slane %v2125_v41, 1  ;;  %v930_v51 = vpop.permute.xlu1 %929  ;;  %1434 = vrot.lane.b32.xlu0 %v4183_v44, %s3875_s9 }
 0x135   : > { %1014 = vst.msk [vmem:[#allocation2 + $0x69] sm:$0x7f] %vm1001_vm8, %v930_v51 }
 0x136   : > { %v4859_v20 = vmul.f32 0.00390625, %v2056_v43  ;;  %v2127_v31 = vadd.f32 %v2126_v22, %v2125_v41  ;;  %1436 = vrot.lane.b32.xlu1 %v4234_v15, %s3875_s9  ;;  %v1034_v11 = vpop.permute.xlu0 %1033 }
 0x137   : > { %1130 = vst.msk [vmem:[#allocation2] sm:$0xff] %vm1129_vm9, %v1034_v11 }
 0x138   : > { %v2128_v13 = vmul.f32 0.00390625, %v2127_v31  ;;  %v2129_v36 = vmul.f32 %v4859_v20, %v4859_v20  ;;  %v2161_v29 = vsub.f32 %v4828_v17, %v4859_v20  ;;  %v2131_v14 = vsub.f32 %v4532_v3, %v4859_v20  ;;  %v1036_v39 = vpop.permute.xlu1 %1035  ;;  %1057 = vrot.lane.b32.xlu0 %v4183_v44, %s3872_s6 }
 0x139   : > { %v2132_v2 = vsub.f32 %v4527_v7, %v4859_v20  ;;  %v2133_v37 = vsub.f32 %v4546_v40, %v4859_v20  ;;  %v2134_v41 = vsub.f32 %v4541_v38, %v4859_v20  ;;  %v2135_v9 = vsub.f32 %v4568_v54, %v4859_v20  ;;  %1131 = vst.msk [vmem:[#allocation2 + $0x8] sm:$0xff] %vm1129_vm9, %v1036_v39 }
 0x13a   : > { %v2130_v43 = vsub.f32 %v2128_v13, %v2129_v36  ;;  %v2136_v22 = vsub.f32 %v4556_v23, %v4859_v20  ;;  %v2137_v51 = vsub.f32 %v4590_v35, %v4859_v20  ;;  %1059 = vrot.lane.b32.xlu1 %v4234_v15, %s3872_s6  ;;  %v1163_v40 = vpop.permute.xlu0 %1162  ;;  %v2139_v31 = vsub.f32 %v4612_v42, %v4859_v20 }
 0x13b   : > { %v2140_v11 = vsub.f32 %v4600_v33, %v4859_v20  ;;  %v2141_v13 = vsub.f32 %v4634_v26, %v4859_v20  ;;  %v2142_v23 = vsub.f32 %v4622_v55, %v4859_v20  ;;  %1259 = vst.msk [vmem:[#allocation2 - $0x1] sm:$0xfe] %vm1258_vm11, %v1163_v40  ;;  %v2143_v36 = vsub.f32 %v4656_v30, %v4859_v20 }
 0x13c   : > { %v2163_v35 = vadd.f32 1e-05, %v2130_v43  ;;  %v2144_v39 = vsub.f32 %v4644_v12, %v4859_v20  ;;  %v2145_v42 = vsub.f32 %v4678_v25, %v4859_v20  ;;  %v1165_v7 = vpop.permute.xlu1 %1164  ;;  %1555 = vrot.lane.b32.xlu0 %v4183_v44, %s3876_s10  ;;  %v2146_v33 = vsub.f32 %v4666_v53, %v4859_v20 }
 0x13d   : > { %v2147_v55 = vsub.f32 %v4700_v16, %v4859_v20  ;;  %v2148_v26 = vsub.f32 %v4688_v0, %v4859_v20  ;;  %v2149_v30 = vsub.f32 %v4722_v4, %v4859_v20  ;;  %1261 = vst.msk [vmem:[#allocation2 + $0x7] sm:$0xff] %vm1260_vm10, %v1165_v7  ;;  %v2150_v12 = vsub.f32 %v4710_v50, %v4859_v20 }
 0x13e   : > { %3768 = vrsqrt.f32 %v2163_v35  ;;  %v2151_v25 = vsub.f32 %v4738_v10, %v4859_v20  ;;  %v2152_v53 = vsub.f32 %v4732_v34, %v4859_v20  ;;  %1557 = vrot.lane.b32.xlu1 %v4234_v15, %s3876_s10  ;;  %v1293_v16 = vpop.permute.xlu0 %1292  ;;  %v2153_v0 = vsub.f32 %v4754_v61, %v4859_v20 }
 0x13f   : > { %v2154_v4 = vsub.f32 %v4748_v21, %v4859_v20  ;;  %v2155_v43 = vsub.f32 %v4770_v5, %v4859_v20  ;;  %v2156_v50 = vsub.f32 %v4764_v28, %v4859_v20  ;;  %1383 = vst.msk [vmem:[#allocation2 + $0x1] sm:$0xff] %vm1382_vm13, %v1293_v16  ;;  %v2157_v34 = vsub.f32 %v4786_v47, %v4859_v20 }
 0x140   : > { %v2158_v10 = vsub.f32 %v4780_v19, %v4859_v20  ;;  %v2159_v61 = vsub.f32 %v4802_v27, %v4859_v20  ;;  %v2160_v21 = vsub.f32 %v4796_v32, %v4859_v20  ;;  %v1295_v7 = vpop.permute.xlu1 %1294  ;;  %1186 = vrot.lane.b32.xlu0 %v4183_v44, %s3873_s7  ;;  %v2162_v28 = vsub.f32 %v4818_v63, %v4859_v20 }
 0x141   : > { %1385 = vst.msk [vmem:[#allocation2 + $0x9] sm:$0x7f] %vm1384_vm12, %v1295_v7 }
 0x142   : > { %1188 = vrot.lane.b32.xlu1 %v4234_v15, %s3873_s7  ;;  %v1415_v5 = vpop.permute.xlu0 %1414 }
 0x143   : > { %1505 = vst.msk [vmem:[#allocation2] sm:$0xff] %vm1504_vm14, %v1415_v5 }
 0x144   : > { %v1417_v19 = vpop.permute.xlu1 %1416  ;;  %1316 = vrot.lane.b32.xlu0 %v4240_v18, %s3874_s8 }
 0x145   : > { %1506 = vst.msk [vmem:[#allocation2 + $0x8] sm:$0xff] %vm1504_vm14, %v1417_v19 }
 0x146   : > { %1318 = vrot.lane.b32.xlu1 %v4246_v46, %s3874_s8  ;;  %v1038_v44 = vpop.permute.xlu0 %1037 }
 0x147   : > { %1132 = vst.msk [vmem:[#allocation2 + $0x10] sm:$0xff] %vm1129_vm9, %v1038_v44 }
 0x148   : > { %v3769_v47 = vpop.eup %3768  ;;  %v1040_v32 = vpop.permute.xlu1 %1039  ;;  %931 = vrot.lane.b32.xlu0 %v4240_v18, %s3871_s30 }
 0x149   : > { %v4959_v15 = vmul.f32 %v3769_v47, %v2161_v29  ;;  %v4964_v27 = vmul.f32 %v3769_v47, %v2131_v14  ;;  %v4966_v63 = vmul.f32 %v3769_v47, %v2132_v2  ;;  %v4968_v40 = vmul.f32 %v3769_v47, %v2133_v37  ;;  %1133 = vst.msk [vmem:[#allocation2 + $0x18] sm:$0xff] %vm1129_vm9, %v1040_v32 }
 0x14a   : > { %v4974_v35 = vmul.f32 %v3769_v47, %v2134_v41  ;;  %v4979_v17 = vmul.f32 %v3769_v47, %v2135_v9  ;;  %v4981_v29 = vmul.f32 %v3769_v47, %v2136_v22  ;;  %v4983_v3 = vmul.f32 %v3769_v47, %v2137_v51  ;;  %933 = vrot.lane.b32.xlu1 %v4246_v46, %s3871_s30  ;;  %v1536_v14 = vpop.permute.xlu0 %1535 }
 0x14b   : > { %v5693_v2 = vsub.f32 %v4578_v62, %v4859_v20  ;;  %v4992_v38 = vmul.f32 %v3769_v47, %v2139_v31  ;;  %v4994_v41 = vmul.f32 %v3769_v47, %v2140_v11  ;;  %1626 = vst.msk [vmem:[#allocation2 - $0x1] sm:$0xfe] %vm1625_vm1, %v1536_v14  ;;  %v4997_v54 = vmul.f32 %v3769_v47, %v2141_v13 }
 0x14c   : > { %v4999_v9 = vmul.f32 %v3769_v47, %v2142_v23  ;;  %v5001_v22 = vmul.f32 %v3769_v47, %v2143_v36  ;;  %v5003_v51 = vmul.f32 %v3769_v47, %v2144_v39  ;;  %v1538_v16 = vpop.permute.xlu1 %1537  ;;  %1438 = vrot.lane.b32.xlu0 %v4240_v18, %s3875_s9  ;;  %v5007_v62 = vmul.f32 %v3769_v47, %v2145_v42 }
 0x14d   : > { %v4990_v37 = vmul.f32 %v3769_v47, %v5693_v2  ;;  %v5009_v20 = vmul.f32 %v3769_v47, %v2146_v33  ;;  %v5011_v31 = vmul.f32 %v3769_v47, %v2147_v55  ;;  %1628 = vst.msk [vmem:[#allocation2 + $0x7] sm:$0xff] %vm1627_vm15, %v1538_v16  ;;  %v5014_v11 = vmul.f32 %v3769_v47, %v2148_v26 }
 0x14e   : > { %v5016_v13 = vmul.f32 %v3769_v47, %v2149_v30  ;;  %v5018_v23 = vmul.f32 %v3769_v47, %v2150_v12  ;;  %v5020_v36 = vmul.f32 %v3769_v47, %v2151_v25  ;;  %1440 = vrot.lane.b32.xlu1 %v4246_v46, %s3875_s9  ;;  %v1167_v39 = vpop.permute.xlu0 %1166  ;;  %v5024_v42 = vmul.f32 %v3769_v47, %v2152_v53 }
 0x14f   : > { %v5026_v33 = vmul.f32 %v3769_v47, %v2153_v0  ;;  %v5028_v55 = vmul.f32 %v3769_v47, %v2154_v4  ;;  %1262 = vst.msk [vmem:[#allocation2 + $0xf] sm:$0xfe] %vm1258_vm11, %v1167_v39  ;;  %v5031_v26 = vmul.f32 %v3769_v47, %v2155_v43  ;;  %v5033_v30 = vmul.f32 %v3769_v47, %v2156_v50 }
 0x150   : > { %v5035_v12 = vmul.f32 %v3769_v47, %v2157_v34  ;;  %v5037_v25 = vmul.f32 %v3769_v47, %v2158_v10  ;;  %v1169_v7 = vpop.permute.xlu1 %1168  ;;  %1061 = vrot.lane.b32.xlu0 %v4240_v18, %s3872_s6  ;;  %v5041_v53 = vmul.f32 %v3769_v47, %v2159_v61  ;;  %v5043_v0 = vmul.f32 %v3769_v47, %v2160_v21 }
 0x151   : > { %v5045_v4 = vmul.f32 %v3769_v47, %v2162_v28  ;;  %1263 = vst.msk [vmem:[#allocation2 + $0x17] sm:$0xff] %vm1260_vm10, %v1169_v7 }
 0x152   : > { %1063 = vrot.lane.b32.xlu1 %v4246_v46, %s3872_s6  ;;  %v1297_v43 = vpop.permute.xlu0 %1296 }
 0x153   : > { %1386 = vst.msk [vmem:[#allocation2 + $0x11] sm:$0xff] %vm1382_vm13, %v1297_v43 }
 0x154   : > { %v1299_v50 = vpop.permute.xlu1 %1298  ;;  %1559 = vrot.lane.b32.xlu0 %v4240_v18, %s3876_s10 }
 0x155   : > { %1387 = vst.msk [vmem:[#allocation2 + $0x19] sm:$0x7f] %vm1384_vm12, %v1299_v50 }
 0x156   : > { %1561 = vrot.lane.b32.xlu1 %v4246_v46, %s3876_s10  ;;  %v1419_v34 = vpop.permute.xlu0 %1418 }
 0x157   : > { %1507 = vst.msk [vmem:[#allocation2 + $0x10] sm:$0xff] %vm1504_vm14, %v1419_v34 }
 0x158   : > { %v1421_v10 = vpop.permute.xlu1 %1420  ;;  %1190 = vrot.lane.b32.xlu0 %v4240_v18, %s3873_s7  ;;  %v5071_v18 = vld [vmem:[%s5685_s4] ss:$0 sm:$0xff] }
 0x159   : > { %1508 = vst.msk [vmem:[#allocation2 + $0x18] sm:$0xff] %vm1504_vm14, %v1421_v10  ;;  %v2205_v5 = vsub.f32 %v4966_v63, %v5071_v18  ;;  %v2206_v44 = vsub.f32 %v4968_v40, %v5071_v18  ;;  %v2207_v47 = vsub.f32 %v4974_v35, %v5071_v18  ;;  %v2208_v32 = vsub.f32 %v4979_v17, %v5071_v18 }
 0x15a   : > { %1192 = vrot.lane.b32.xlu1 %v4246_v46, %s3873_s7  ;;  %v1042_v61 = vpop.permute.xlu0 %1041  ;;  %v2204_v46 = vsub.f32 %v4964_v27, %v5071_v18  ;;  %v2209_v40 = vsub.f32 %v4981_v29, %v5071_v18  ;;  %v2210_v17 = vsub.f32 %v4983_v3, %v5071_v18  ;;  %v2211_v29 = vsub.f32 %v4990_v37, %v5071_v18 }
 0x15b   : > { %1134 = vst.msk [vmem:[#allocation2 + $0x20] sm:$0xff] %vm1129_vm9, %v1042_v61  ;;  %v2237_v14 = vmul.f32 1.75, %v2205_v5  ;;  %v2238_v35 = vmul.f32 1.75, %v2206_v44  ;;  %v2239_v16 = vmul.f32 1.75, %v2207_v47  ;;  %v2240_v39 = vmul.f32 1.75, %v2208_v32 }
 0x15c   : > { %v1044_v21 = vpop.permute.xlu1 %1043  ;;  %1320 = vrot.lane.b32.xlu0 %v4255_v45, %s3874_s8  ;;  %v2236_v63 = vmul.f32 1.75, %v2204_v46  ;;  %v2241_v10 = vmul.f32 1.75, %v2209_v40  ;;  %v2212_v3 = vsub.f32 %v4992_v38, %v5071_v18  ;;  %v2214_v37 = vsub.f32 %v4997_v54, %v5071_v18 }
 0x15d   : > { %1135 = vst.msk [vmem:[#allocation2 + $0x28] sm:$0xff] %vm1129_vm9, %v1044_v21  ;;  %v2269_v50 = vmul.f32 %v2237_v14, %v2237_v14  ;;  %v2270_v61 = vmul.f32 %v2238_v35, %v2238_v35  ;;  %v2271_v21 = vmul.f32 %v2239_v16, %v2239_v16  ;;  %v2272_v46 = vmul.f32 %v2240_v39, %v2240_v39 }
 0x15e   : > { %1322 = vrot.lane.b32.xlu1 %v4261_v48, %s3874_s8  ;;  %v1540_v28 = vpop.permute.xlu0 %1539  ;;  %v2268_v43 = vmul.f32 %v2236_v63, %v2236_v63  ;;  %v2243_v38 = vmul.f32 1.75, %v2211_v29  ;;  %v2215_v54 = vsub.f32 %v4999_v9, %v5071_v18  ;;  %v2216_v16 = vsub.f32 %v5001_v22, %v5071_v18 }
 0x15f   : > { %1629 = vst.msk [vmem:[#allocation2 + $0xf] sm:$0xfe] %vm1625_vm1, %v1540_v28  ;;  %v2242_v28 = vmul.f32 1.75, %v2210_v17  ;;  %v2301_v47 = vsub.f32 0.0, %v2269_v50  ;;  %v2302_v63 = vsub.f32 0.0, %v2270_v61  ;;  %v2303_v14 = vsub.f32 0.0, %v2271_v21 }
 0x160   : > { %v1542_v19 = vpop.permute.xlu1 %1541  ;;  %935 = vrot.lane.b32.xlu0 %v4255_v45, %s3871_s30  ;;  %v2300_v44 = vsub.f32 0.0, %v2268_v43  ;;  %v2304_v35 = vsub.f32 0.0, %v2272_v46  ;;  %v2246_v39 = vmul.f32 1.75, %v2214_v37  ;;  %v2218_v46 = vsub.f32 %v5007_v62, %v5071_v18 }
 0x161   : > { %1630 = vst.msk [vmem:[#allocation2 + $0x17] sm:$0xff] %vm1627_vm15, %v1542_v19  ;;  %v2213_v19 = vsub.f32 %v4994_v41, %v5071_v18  ;;  %v2274_v40 = vmul.f32 %v2242_v28, %v2242_v28  ;;  %v2334_v43 = vmul.f32 1.442695, %v2301_v47  ;;  %v2338_v61 = vmul.f32 1.442695, %v2303_v14 }
 0x162   : > { %937 = vrot.lane.b32.xlu1 %v4261_v48, %s3871_s30  ;;  %v1171_v27 = vpop.permute.xlu0 %1170  ;;  %v2234_v28 = vsub.f32 %v4959_v15, %v5071_v18  ;;  %v2278_v15 = vmul.f32 %v2246_v39, %v2246_v39  ;;  %v2227_v14 = vsub.f32 %v5028_v55, %v5071_v18  ;;  %v2221_v55 = vsub.f32 %v5014_v11, %v5071_v18 }
 0x163   : > { %1264 = vst.msk [vmem:[#allocation2 + $0x1f] sm:$0xfe] %vm1258_vm11, %v1171_v27  ;;  %v2273_v27 = vmul.f32 %v2241_v10, %v2241_v10  ;;  %v2245_v17 = vmul.f32 1.75, %v2213_v19  ;;  %v2336_v10 = vmul.f32 1.442695, %v2302_v63  ;;  %v2306_v21 = vsub.f32 0.0, %v2274_v40 }
 0x164   : > { %v1173_v2 = vpop.permute.xlu1 %1172  ;;  %1442 = vrot.lane.b32.xlu0 %v4255_v45, %s3875_s9  ;;  %v2248_v19 = vmul.f32 1.75, %v2216_v16  ;;  %v2220_v63 = vsub.f32 %v5011_v31, %v5071_v18  ;;  %v2250_v40 = vmul.f32 1.75, %v2218_v46 }
 0x165   : > { %1265 = vst.msk [vmem:[#allocation2 + $0x27] sm:$0xff] %vm1260_vm10, %v1173_v2  ;;  %v2244_v2 = vmul.f32 1.75, %v2212_v3  ;;  %v2305_v29 = vsub.f32 0.0, %v2273_v27  ;;  %v2340_v3 = vmul.f32 1.442695, %v2304_v35  ;;  %v2219_v27 = vsub.f32 %v5009_v20, %v5071_v18 }
 0x166   : > { %1444 = vrot.lane.b32.xlu1 %v4261_v48, %s3875_s9  ;;  %v1301_v7 = vpop.permute.xlu0 %1300  ;;  %v2280_v20 = vmul.f32 %v2248_v19, %v2248_v19 }
 0x167   : > { %1388 = vst.msk [vmem:[#allocation2 + $0x21] sm:$0xff] %vm1382_vm13, %v1301_v7  ;;  %v2332_v7 = vmul.f32 1.442695, %v2300_v44  ;;  %v2276_v9 = vmul.f32 %v2244_v2, %v2244_v2  ;;  %v2342_v47 = vmul.f32 1.442695, %v2305_v29  ;;  %v2251_v29 = vmul.f32 1.75, %v2219_v27 }
 0x168   : > { %v1303_v34 = vpop.permute.xlu1 %1302  ;;  %1065 = vrot.lane.b32.xlu0 %v4255_v45, %s3872_s6  ;;  %v2312_v46 = vsub.f32 0.0, %v2280_v20  ;;  %v2232_v20 = vsub.f32 %v5041_v53, %v5071_v18 }
 0x169   : > { %1389 = vst.msk [vmem:[#allocation2 + $0x29] sm:$0x7f] %vm1384_vm12, %v1303_v34  ;;  %v2275_v34 = vmul.f32 %v2243_v38, %v2243_v38  ;;  %3770 = vpow2.f32 %v2332_v7  ;;  %v5141_v38 = vmul.f32 1.75, %v2234_v28  ;;  %v2222_v7 = vsub.f32 %v5016_v13, %v5071_v18 }
 0x16a   : > { %1067 = vrot.lane.b32.xlu1 %v4261_v48, %s3872_s6  ;;  %v1423_v5 = vpop.permute.xlu0 %1422  ;;  %3772 = vpow2.f32 %v2334_v43  ;;  %v2223_v43 = vsub.f32 %v5018_v23, %v5071_v18 }
 0x16b   : > { %1509 = vst.msk [vmem:[#allocation2 + $0x20] sm:$0xff] %vm1504_vm14, %v1423_v5  ;;  %v2247_v5 = vmul.f32 1.75, %v2215_v54  ;;  %3774 = vpow2.f32 %v2336_v10  ;;  %v2307_v44 = vsub.f32 0.0, %v2275_v34  ;;  %v2252_v10 = vmul.f32 1.75, %v2220_v63 }
 0x16c   : > { %v1425_v32 = vpop.permute.xlu1 %1424  ;;  %1563 = vrot.lane.b32.xlu0 %v4255_v45, %s3876_s10  ;;  %3776 = vpow2.f32 %v2338_v61  ;;  %v2259_v61 = vmul.f32 1.75, %v2227_v14 }
 0x16d   : > { %1510 = vst.msk [vmem:[#allocation2 + $0x28] sm:$0xff] %vm1504_vm14, %v1425_v32  ;;  %v2344_v32 = vmul.f32 1.442695, %v2306_v21  ;;  %3778 = vpow2.f32 %v2340_v3  ;;  %v2346_v16 = vmul.f32 1.442695, %v2307_v44  ;;  %v2229_v44 = vsub.f32 %v5033_v30, %v5071_v18 }
 0x16e   : > { %1565 = vrot.lane.b32.xlu1 %v4261_v48, %s3876_s10  ;;  %v1046_v41 = vpop.permute.xlu0 %1045  ;;  %3780 = vpow2.f32 %v2342_v47  ;;  %v2284_v14 = vmul.f32 %v2252_v10, %v2252_v10  ;;  %v2291_v30 = vmul.f32 %v2259_v61, %v2259_v61 }
 0x16f   : > { %1136 = vst.msk [vmem:[#allocation2 + $0x30] sm:$0xff] %vm1129_vm9, %v1046_v41  ;;  %v2279_v41 = vmul.f32 %v2247_v5, %v2247_v5  ;;  %3782 = vpow2.f32 %v2344_v32  ;;  %v2253_v32 = vmul.f32 1.75, %v2221_v55  ;;  %v2233_v55 = vsub.f32 %v5043_v0, %v5071_v18 }
 0x170   : > { %v1048_v50 = vpop.permute.xlu1 %1047  ;;  %1194 = vrot.lane.b32.xlu0 %v4255_v45, %s3873_s7  ;;  %v2217_v45 = vsub.f32 %v5003_v51, %v5071_v18  ;;  %v2308_v51 = vsub.f32 0.0, %v2276_v9  ;;  %v2226_v9 = vsub.f32 %v5026_v33, %v5071_v18  ;;  %3784 = vpow2.f32 %v2346_v16 }
 0x171   : > { %1137 = vst.msk [vmem:[#allocation2 + $0x38] sm:$0xff] %vm1129_vm9, %v1048_v50  ;;  %v2228_v50 = vsub.f32 %v5031_v26, %v5071_v18  ;;  %v2231_v16 = vsub.f32 %v5037_v25, %v5071_v18  ;;  %v2254_v25 = vmul.f32 1.75, %v2222_v7  ;;  %v2316_v53 = vsub.f32 0.0, %v2284_v14 }
 0x172   : > { %1196 = vrot.lane.b32.xlu1 %v4261_v48, %s3873_s7  ;;  %v1544_v22 = vpop.permute.xlu0 %1543  ;;  %v2277_v48 = vmul.f32 %v2245_v17, %v2245_v17  ;;  %v2249_v2 = vmul.f32 1.75, %v2217_v45  ;;  %v2310_v17 = vsub.f32 0.0, %v2278_v15  ;;  %v2348_v39 = vmul.f32 1.442695, %v2308_v51 }
 0x173   : > { %1631 = vst.msk [vmem:[#allocation2 + $0x1f] sm:$0xfe] %vm1625_vm1, %v1544_v22  ;;  %v3771_v34 = vpop.eup %3770  ;;  %v2311_v22 = vsub.f32 0.0, %v2279_v41  ;;  %v2282_v45 = vmul.f32 %v2250_v40, %v2250_v40  ;;  %v2260_v47 = vmul.f32 1.75, %v2228_v50  ;;  %v2230_v51 = vsub.f32 %v5035_v12, %v5071_v18 }
 0x174   : > { %v1546_v37 = vpop.permute.xlu1 %1545  ;;  %1324 = vrot.lane.b32.xlu0 %v4268_v57, %s3874_s8  ;;  %v2309_v54 = vsub.f32 0.0, %v2277_v48  ;;  %v3773_v11 = vpop.eup %3772  ;;  %v2281_v3 = vmul.f32 %v2249_v2, %v2249_v2  ;;  %3421 = vmatprep.mubr.f32.mxu0 %v3771_v34  ;;  %v2352_v5 = vmul.f32 1.442695, %v2310_v17  ;;  %3786 = vpow2.f32 %v2348_v39 }
 0x175   : > { %1632 = vst.msk [vmem:[#allocation2 + $0x27] sm:$0xff] %vm1627_vm15, %v1546_v37  ;;  %v3775_v26 = vpop.eup %3774  ;;  %3422 = vmatmul.mubr.f32.vlgmr.msra.gmra.mrb[32].mxu0 %v3773_v11  ;;  %v2224_v37 = vsub.f32 %v5020_v36, %v5071_v18  ;;  %v2225_v48 = vsub.f32 %v5024_v42, %v5071_v18  ;;  %v2258_v27 = vmul.f32 1.75, %v2226_v9  ;;  %v2354_v40 = vmul.f32 1.442695, %v2311_v22 }
 0x176   : > { %1326 = vrot.lane.b32.xlu1 %v4275_v49, %s3874_s8  ;;  %v1175_v62 = vpop.permute.xlu0 %1174  ;;  %v2350_v28 = vmul.f32 1.442695, %v2309_v54  ;;  %v3777_v19 = vpop.eup %3776  ;;  %3424 = vmatprep.mubr.f32.mxu0 %v3775_v26  ;;  %v2313_v2 = vsub.f32 0.0, %v2281_v3  ;;  %v2356_v41 = vmul.f32 1.442695, %v2312_v46  ;;  %v2261_v17 = vmul.f32 1.75, %v2229_v44 }
 0x177   : > { %1266 = vst.msk [vmem:[#allocation2 + $0x2f] sm:$0xfe] %vm1258_vm11, %v1175_v62  ;;  %v3779_v15 = vpop.eup %3778  ;;  %v2283_v62 = vmul.f32 %v2251_v29, %v2251_v29  ;;  %v2292_v39 = vmul.f32 %v2260_v47, %v2260_v47  ;;  %v2262_v50 = vmul.f32 1.75, %v2230_v51  ;;  %v2290_v29 = vmul.f32 %v2258_v27, %v2258_v27 }
 0x178   : > { %v1177_v35 = vpop.permute.xlu1 %1176  ;;  %939 = vrot.lane.b32.xlu0 %v4268_v57, %s3871_s30  ;;  %3788 = vpow2.f32 %v2350_v28  ;;  %v3781_v54 = vpop.eup %3780  ;;  %v2358_v61 = vmul.f32 1.442695, %v2313_v2  ;;  %v2285_v9 = vmul.f32 %v2253_v32, %v2253_v32  ;;  %v2235_v22 = vsub.f32 %v5045_v4, %v5071_v18 }
 0x179   : > { %1267 = vst.msk [vmem:[#allocation2 + $0x37] sm:$0xff] %vm1260_vm10, %v1177_v35  ;;  %v2314_v35 = vsub.f32 0.0, %v2282_v45  ;;  %3790 = vpow2.f32 %v2352_v5  ;;  %3425 = vmatmul.mubr.f32.gmra.mrb[34].mxu0 %v3777_v19  ;;  %v2315_v34 = vsub.f32 0.0, %v2283_v62  ;;  %v2263_v13 = vmul.f32 1.75, %v2231_v16 }
 0x17a   : > { %941 = vrot.lane.b32.xlu1 %v4275_v49, %s3871_s30  ;;  %v1305_v31 = vpop.permute.xlu0 %1304  ;;  %3427 = vmatprep.mubr.f32.mxu0 %v3779_v15  ;;  %3792 = vpow2.f32 %v2354_v40  ;;  %v2293_v7 = vmul.f32 %v2261_v17, %v2261_v17  ;;  %v2324_v28 = vsub.f32 0.0, %v2292_v39  ;;  %v2264_v45 = vmul.f32 1.75, %v2232_v20 }
 0x17b   : > { %1390 = vst.msk [vmem:[#allocation2 + $0x31] sm:$0xff] %vm1382_vm13, %v1305_v31  ;;  %v3783_v31 = vpop.eup %3782  ;;  %v2360_v11 = vmul.f32 1.442695, %v2314_v35  ;;  %3794 = vpow2.f32 %v2356_v41  ;;  %v2294_v46 = vmul.f32 %v2262_v50, %v2262_v50  ;;  %v2362_v5 = vmul.f32 1.442695, %v2315_v34 }
 0x17c   : > { %v1307_v21 = vpop.permute.xlu1 %1306  ;;  %1446 = vrot.lane.b32.xlu0 %v4268_v57, %s3875_s9  ;;  %v3785_v3 = vpop.eup %3784  ;;  %v2255_v44 = vmul.f32 1.75, %v2223_v43  ;;  %v2256_v4 = vmul.f32 1.75, %v2224_v37  ;;  %v2364_v47 = vmul.f32 1.442695, %v2316_v53  ;;  %3796 = vpow2.f32 %v2358_v61 }
 0x17d   : > { %1391 = vst.msk [vmem:[#allocation2 + $0x39] sm:$0x7f] %vm1384_vm12, %v1307_v21  ;;  %v2323_v21 = vsub.f32 0.0, %v2291_v30  ;;  %3428 = vmatmul.mubr.f32.gmra.mrb[36].mxu0 %v3781_v54  ;;  %v2286_v15 = vmul.f32 %v2254_v25, %v2254_v25  ;;  %v2317_v51 = vsub.f32 0.0, %v2285_v9  ;;  %3798 = vpow2.f32 %v2360_v11 }
 0x17e   : > { %1448 = vrot.lane.b32.xlu1 %v4275_v49, %s3875_s9  ;;  %v1427_v33 = vpop.permute.xlu0 %1426  ;;  %3430 = vmatprep.mubr.f32.mxu0 %v3783_v31  ;;  %v3787_v26 = vpop.eup %3786  ;;  %v2265_v23 = vmul.f32 1.75, %v2233_v55  ;;  %v2295_v43 = vmul.f32 %v2263_v13, %v2263_v13  ;;  %v2325_v27 = vsub.f32 0.0, %v2293_v7  ;;  %v2296_v37 = vmul.f32 %v2264_v45, %v2264_v45 }
 0x17f   : > { %1511 = vst.msk [vmem:[#allocation2 + $0x30] sm:$0xff] %vm1504_vm14, %v1427_v33  ;;  %v2322_v33 = vsub.f32 0.0, %v2290_v29  ;;  %v2378_v32 = vmul.f32 1.442695, %v2323_v21  ;;  %v2326_v14 = vsub.f32 0.0, %v2294_v46  ;;  %3800 = vpow2.f32 %v2362_v5 }
 0x180   : > { %v1429_v63 = vpop.permute.xlu1 %1428  ;;  %1069 = vrot.lane.b32.xlu0 %v4268_v57, %s3872_s6  ;;  %v2267_v30 = vmul.f32 1.75, %v2235_v22  ;;  %v2287_v35 = vmul.f32 %v2255_v44, %v2255_v44  ;;  %3802 = vpow2.f32 %v2364_v47  ;;  %v2288_v41 = vmul.f32 %v2256_v4, %v2256_v4  ;;  %v1692_v44 = vld [vmem:[%s5682_s1 + $0x18] sm:$0xff] }
 0x181   : > { %1512 = vst.msk [vmem:[#allocation2 + $0x38] sm:$0xff] %vm1504_vm14, %v1429_v63  ;;  %3431 = vmatmul.mubr.f32.gmra.mrb[38].mxu0 %v3785_v3  ;;  %v2380_v63 = vmul.f32 1.442695, %v2324_v28  ;;  %v2376_v2 = vmul.f32 1.442695, %v2322_v33  ;;  %3804 = vpow2.f32 %v2378_v32  ;;  %v2297_v17 = vmul.f32 %v2265_v23, %v2265_v23 }
 0x182   : > { %1071 = vrot.lane.b32.xlu1 %v4275_v49, %s3872_s6  ;;  %v1050_v12 = vpop.permute.xlu0 %1049  ;;  %v3789_v62 = vpop.eup %3788  ;;  %3433 = vmatprep.mubr.f32.mxu0 %v3787_v26  ;;  %v2366_v54 = vmul.f32 1.442695, %v2317_v51  ;;  %v2327_v39 = vsub.f32 0.0, %v2295_v43  ;;  %v2382_v31 = vmul.f32 1.442695, %v2325_v27  ;;  %v2298_v18 = vmul.f32 %v5141_v38, %v5141_v38 }
 0x183   : > { %1138 = vst.msk [vmem:[#allocation2 + $0x40] sm:$0xff] %vm1129_vm9, %v1050_v12  ;;  %v3791_v36 = vpop.eup %3790  ;;  %v2318_v12 = vsub.f32 0.0, %v2286_v15  ;;  %3806 = vpow2.f32 %v2380_v63  ;;  %v2384_v55 = vmul.f32 1.442695, %v2326_v14  ;;  %v2319_v29 = vsub.f32 0.0, %v2287_v35 }
 0x184   : > { %v1052_v10 = vpop.permute.xlu1 %1051  ;;  %1567 = vrot.lane.b32.xlu0 %v4268_v57, %s3876_s10  ;;  %v3793_v20 = vpop.eup %3792  ;;  %3808 = vpow2.f32 %v2376_v2  ;;  %v2299_v61 = vmul.f32 %v2267_v30, %v2267_v30  ;;  %v2329_v9 = vsub.f32 0.0, %v2297_v17  ;;  %v2386_v21 = vmul.f32 1.442695, %v2327_v39  ;;  %v1693_v2 = vld [vmem:[%s5682_s1 + $0x20] sm:$0xf] }
 0x185   : > { %1139 = vst.msk [vmem:[#allocation2 + $0x48] sm:$0xff] %vm1129_vm9, %v1052_v10  ;;  %3434 = vmatmul.mubr.f32.gmra.mrb[40].mxu0 %v3789_v62  ;;  %v3795_v42 = vpop.eup %3794  ;;  %v2320_v10 = vsub.f32 0.0, %v2288_v41  ;;  %v2368_v25 = vmul.f32 1.442695, %v2318_v12  ;;  %3810 = vpow2.f32 %v2366_v54  ;;  %v2370_v7 = vmul.f32 1.442695, %v2319_v29 }
 0x186   : > { %1569 = vrot.lane.b32.xlu1 %v4275_v49, %s3876_s10  ;;  %v1548_v0 = vpop.permute.xlu0 %1547  ;;  %3436 = vmatprep.mubr.f32.mxu0 %v3791_v36  ;;  %v3797_v38 = vpop.eup %3796  ;;  %3812 = vpow2.f32 %v2382_v31  ;;  %v2331_v5 = vsub.f32 0.0, %v2299_v61  ;;  %v2390_v33 = vmul.f32 1.442695, %v2329_v9  ;;  %v1661_v29 = vld [vmem:[#allocation2 + $0x20] sm:$0xff]  ;;  %v1662_v9 = vld [vmem:[#allocation2 + $0x28] sm:$0xff] }
 0x187   : > { %1633 = vst.msk [vmem:[#allocation2 + $0x2f] sm:$0xfe] %vm1625_vm1, %v1548_v0  ;;  %v3799_v11 = vpop.eup %3798  ;;  %v2330_v0 = vsub.f32 0.0, %v2298_v18  ;;  %3814 = vpow2.f32 %v2384_v55  ;;  %v2372_v26 = vmul.f32 1.442695, %v2320_v10  ;;  %v1658_v55 = vld [vmem:[#allocation2 + $0x8] sm:$0xff] }
 0x188   : > { %v1550_v19 = vpop.permute.xlu1 %1549  ;;  %1198 = vrot.lane.b32.xlu0 %v4268_v57, %s3873_s7  ;;  %3816 = vpow2.f32 %v2368_v25  ;;  %v2394_v43 = vmul.f32 1.442695, %v2331_v5  ;;  %v1660_v25 = vld [vmem:[#allocation2 + $0x18] sm:$0xff] }
 0x189   : > { %1634 = vst.msk [vmem:[#allocation2 + $0x37] sm:$0xff] %vm1627_vm15, %v1550_v19  ;;  %3437 = vmatmul.mubr.f32.gmra.mrb[42].mxu0 %v3793_v20  ;;  %v3801_v28 = vpop.eup %3800  ;;  %3818 = vpow2.f32 %v2386_v21  ;;  %v1691_v19 = vld [vmem:[%s5682_s1 + $0x10] sm:$0xff]  ;;  %v2392_v47 = vmul.f32 1.442695, %v2330_v0 }
 0x18a   : > { %1200 = vrot.lane.b32.xlu1 %v4275_v49, %s3873_s7  ;;  %v1179_v57 = vpop.permute.xlu0 %1178  ;;  %v2257_v49 = vmul.f32 1.75, %v2225_v48  ;;  %v2328_v48 = vsub.f32 0.0, %v2296_v37  ;;  %3439 = vmatprep.mubr.f32.mxu0 %v3795_v42  ;;  %v3803_v46 = vpop.eup %3802  ;;  %v3563_v62 = vpack.c.bf16 %v1692_v44, %v1691_v19  ;;  %v1657_v42 = vld [vmem:[#allocation2] sm:$0xff] }
 0x18b   : > { %1268 = vst.msk [vmem:[#allocation2 + $0x3f] sm:$0xfe] %vm1258_vm11, %v1179_v57  ;;  %v3805_v4 = vpop.eup %3804 }
 0x18c   : > { %v1181_v40 = vpop.permute.xlu1 %1180  ;;  %1328 = vrot.lane.b32.xlu0 %v4284_v52, %s3874_s8  ;;  %v2289_v34 = vmul.f32 %v2257_v49, %v2257_v49  ;;  %v2388_v3 = vmul.f32 1.442695, %v2328_v48 }
 0x18d   : > { %1269 = vst.msk [vmem:[#allocation2 + $0x47] sm:$0xff] %vm1260_vm10, %v1181_v40  ;;  %3440 = vmatmul.mubr.f32.gmra.mrb[44].mxu0 %v3797_v38  ;;  %v3807_v51 = vpop.eup %3806 }
 0x18e   : > { %1330 = vrot.lane.b32.xlu1 %v4289_v1, %s3874_s8  ;;  %v1309_v16 = vpop.permute.xlu0 %1308  ;;  %v2321_v13 = vsub.f32 0.0, %v2289_v34  ;;  %3442 = vmatprep.mubr.f32.mxu0 %v3799_v11  ;;  %3820 = vpow2.f32 %v2388_v3  ;;  %v3809_v57 = vpop.eup %3808 }
 0x18f   : > { %1392 = vst.msk [vmem:[#allocation2 + $0x41] sm:$0xff] %vm1382_vm13, %v1309_v16  ;;  %3822 = vpow2.f32 %v2370_v7  ;;  %3454 = vmatprep.mubr.f32.mxu1 %v3809_v57  ;;  %v3811_v27 = vpop.eup %3810 }
 0x190   : > { %v1311_v50 = vpop.permute.xlu1 %1310  ;;  %943 = vrot.lane.b32.xlu0 %v4284_v52, %s3871_s30  ;;  %v2374_v32 = vmul.f32 1.442695, %v2321_v13  ;;  %3824 = vpow2.f32 %v2372_v26  ;;  %3455 = vmatmul.mubr.f32.vlgmr.msra.gmra.mrb[0].mxu1 %v3805_v4  ;;  %v3813_v36 = vpop.eup %3812  ;;  %v1663_v38 = vld [vmem:[#allocation2 + $0x30] sm:$0xff]  ;;  %v1664_v11 = vld [vmem:[#allocation2 + $0x38] sm:$0xff] }
 0x191   : > { %1393 = vst.msk [vmem:[#allocation2 + $0x49] sm:$0x7f] %vm1384_vm12, %v1311_v50  ;;  %3443 = vmatmul.mubr.f32.gmra.mrb[46].mxu0 %v3801_v28  ;;  %3826 = vpow2.f32 %v2390_v33  ;;  %3457 = vmatprep.mubr.f32.mxu1 %v3807_v51  ;;  %v3815_v37 = vpop.eup %3814  ;;  %v1659_v50 = vld [vmem:[#allocation2 + $0x10] sm:$0xff] }
 0x192   : > { %945 = vrot.lane.b32.xlu1 %v4289_v1, %s3871_s30  ;;  %v1431_v53 = vpop.permute.xlu0 %1430  ;;  %3445 = vmatprep.mubr.f32.mxu0 %v3803_v46  ;;  %3828 = vpow2.f32 %v2392_v47  ;;  %v3817_v40 = vpop.eup %3816 }
 0x193   : > { %1513 = vst.msk [vmem:[#allocation2 + $0x40] sm:$0xff] %vm1504_vm14, %v1431_v53  ;;  %3830 = vpow2.f32 %v2374_v32  ;;  %3562 = vmatpush3.bf16.msra.mxu1 %v4823_v6  ;;  %v3819_v6 = vpop.eup %3818 }
 0x194   : > { %v1433_v22 = vpop.permute.xlu1 %1432  ;;  %1450 = vrot.lane.b32.xlu0 %v4284_v52, %s3875_s9  ;;  %3564 = vmatprep.subr.bf16.mxu1 %v3563_v62  ;;  %3832 = vpow2.f32 %v2394_v43 }
 0x195   : > { %1514 = vst.msk [vmem:[#allocation2 + $0x48] sm:$0xff] %vm1504_vm14, %v1433_v22  ;;  %3446 = vmatmul.mubr.f32.gmra.mrb[48].mxu0 %v3811_v27  ;;  %3458 = vmatmul.mubr.f32.gmra.mrb[2].mxu1 %v3813_v36 }
 0x196   : > { %1452 = vrot.lane.b32.xlu1 %v4289_v1, %s3875_s9  ;;  %v1054_v45 = vpop.permute.xlu0 %1053  ;;  %3460 = vmatprep.mubr.f32.mxu1 %v3815_v37 }
 0x197   : > { %1140 = vst.msk [vmem:[#allocation2 + $0x50] sm:$0xff] %vm1129_vm9, %v1054_v45  ;;  %3566 = vmatpush3.bf16.msra.mxu1 %v3563_v62  ;;  %3448 = vmatprep.mubr.f32.mxu0 %v3817_v40 }
 0x198   : > { %v1056_v15 = vpop.permute.xlu1 %1055  ;;  %1073 = vrot.lane.b32.xlu0 %v4284_v52, %s3872_s6  ;;  %v3821_v30 = vpop.eup %3820  ;;  %3477 = vmatprep.subr.msk.mxu1 %vm1791_vm0, %v1693_v2 }
 0x199   : > { %1141 = vst.msk [vmem:[#allocation2 + $0x58] sm:$0xff] %vm1129_vm9, %v1056_v15  ;;  %v3823_v41 = vpop.eup %3822  ;;  %3461 = vmatmul.mubr.f32.gmra.mrb[4].mxu1 %v3819_v6 }
 0x19a   : > { %1075 = vrot.lane.b32.xlu1 %v4289_v1, %s3872_s6  ;;  %v1552_v23 = vpop.permute.xlu0 %1551  ;;  %v3825_v12 = vpop.eup %3824  ;;  %3463 = vmatprep.mubr.f32.mxu1 %v3821_v30 }
 0x19b   : > { %1635 = vst.msk [vmem:[#allocation2 + $0x3f] sm:$0xfe] %vm1625_vm1, %v1552_v23  ;;  %3478 = vmatpush3.msk.msra.mxu1 %vm1791_vm0, %v1693_v2  ;;  %3449 = vmatmul.mubr.f32.gmra.mrb[50].mxu0 %v3823_v41  ;;  %v5370_v23 = vld [vmem:[%s3938_s27 + $0xf0] sm:$0xff]  ;;  %vm2961_vm0 = vcmask 64512  }
 0x19c   : > { %v1554_v63 = vpop.permute.xlu1 %1553  ;;  %1571 = vrot.lane.b32.xlu0 %v4284_v52, %s3876_s10  ;;  %3451 = vmatprep.mubr.f32.mxu0 %v3825_v12  ;;  %v3148_v43 = vmul.f32 -1.442695, %v5370_v23 }
 0x19d   : > { %1636 = vst.msk [vmem:[#allocation2 + $0x47] sm:$0xff] %vm1627_vm15, %v1554_v63  ;;  %v5377_v63 = vld [vmem:[%s3938_s27 + $0xf8] sm:$0xff] }
 0x19e   : > { %1573 = vrot.lane.b32.xlu1 %v4289_v1, %s3876_s10  ;;  %v1183_v14 = vpop.permute.xlu0 %1182  ;;  %v3149_v36 = vmul.f32 -1.442695, %v5377_v63  ;;  %3834 = vpow2.f32 %v3148_v43 }
 0x19f   : > { %1270 = vst.msk [vmem:[#allocation2 + $0x4f] sm:$0xfe] %vm1258_vm11, %v1183_v14 }
 0x1a0   : > { %v1185_v49 = vpop.permute.xlu1 %1184  ;;  %1202 = vrot.lane.b32.xlu0 %v4284_v52, %s3873_s7  ;;  %v3827_v52 = vpop.eup %3826  ;;  %3836 = vpow2.f32 %v3149_v36 }
 0x1a1   : > { %1271 = vst.msk [vmem:[#allocation2 + $0x57] sm:$0xff] %vm1260_vm10, %v1185_v49  ;;  %v3829_v16 = vpop.eup %3828  ;;  %3464 = vmatmul.mubr.f32.gmra.mrb[6].mxu1 %v3827_v52  ;;  %v5695_v52 = vld [vmem:[#allocation4_spill] sm:$0xff] }
 0x1a2   : > { %1204 = vrot.lane.b32.xlu1 %v4289_v1, %s3873_s7  ;;  %v1313_v35 = vpop.permute.xlu0 %1312  ;;  %v3831_v20 = vpop.eup %3830  ;;  %3466 = vmatprep.mubr.f32.mxu1 %v3829_v16 }
 0x1a3   : > { %1394 = vst.msk [vmem:[#allocation2 + $0x51] sm:$0xff] %vm1382_vm13, %v1313_v35  ;;  %v3833_v39 = vpop.eup %3832  ;;  %3452 = vmatmul.mubr.f32.gmra.mrb[52].mxu0 %v3831_v20 }
 0x1a4   : > { %v1315_v54 = vpop.permute.xlu1 %1314  ;;  %1332 = vrot.lane.b32.xlu0 %v4296_v56, %s3874_s8  ;;  %v1665_v0 = vld [vmem:[#allocation2 + $0x40] sm:$0xff] }
 0x1a5   : > { %1395 = vst.msk [vmem:[#allocation2 + $0x59] sm:$0x7f] %vm1384_vm12, %v1315_v54  ;;  %3467 = vmatmul.mubr.f32.gmra.mrb[8].mxu1 %v3833_v39  ;;  %v5694_v54 = vld [vmem:[#allocation3_spill] sm:$0xff] }
 0x1a6   : > { %1334 = vrot.lane.b32.xlu1 %v4302_v58, %s3874_s8  ;;  %v1435_v1 = vpop.permute.xlu0 %1434  ;;  %3479 = vmatprep.mubr.msk.f32.mxu1 %vm562_vm2, %v1657_v42 }
 0x1a7   : > { %1515 = vst.msk [vmem:[#allocation2 + $0x50] sm:$0xff] %vm1504_vm14, %v1435_v1 }
 0x1a8   : > { %v1437_v17 = vpop.permute.xlu1 %1436  ;;  %947 = vrot.lane.b32.xlu0 %v4296_v56, %s3871_s30  ;;  %v3835_v41 = vpop.eup %3834 }
 0x1a9   : > { %1516 = vst.msk [vmem:[#allocation2 + $0x58] sm:$0xff] %vm1504_vm14, %v1437_v17  ;;  %3480 = vmatmul.mubr.msk.f32.vlgmr.msra.gmra.mrb[10].mxu1 %vm562_vm2, %v1658_v55  ;;  %v464_v1 = vadd.f32 1.0, %v3835_v41 }
 0x1aa   : > { %949 = vrot.lane.b32.xlu1 %v4302_v58, %s3871_s30  ;;  %v1058_v31 = vpop.permute.xlu0 %1057  ;;  %3482 = vmatprep.mubr.msk.f32.mxu1 %vm562_vm2, %v1659_v50 }
 0x1ab   : > { %1142 = vst.msk [vmem:[#allocation2 + $0x60] sm:$0xff] %vm1129_vm9, %v1058_v31  ;;  %3838 = vrcp.f32 %v464_v1 }
 0x1ac   : > { %v1060_v18 = vpop.permute.xlu1 %1059  ;;  %1454 = vrot.lane.b32.xlu0 %v4296_v56, %s3875_s9 }
 0x1ad   : > { %1143 = vst.msk [vmem:[#allocation2 + $0x68] sm:$0xff] %vm1129_vm9, %v1060_v18  ;;  %3483 = vmatmul.mubr.msk.f32.gmra.mrb[12].mxu1 %vm562_vm2, %v1660_v25 }
 0x1ae   : > { %1456 = vrot.lane.b32.xlu1 %v4302_v58, %s3875_s9  ;;  %v1556_v48 = vpop.permute.xlu0 %1555  ;;  %3485 = vmatprep.mubr.msk.f32.mxu1 %vm562_vm2, %v1661_v29 }
 0x1af   : > { %1637 = vst.msk [vmem:[#allocation2 + $0x4f] sm:$0xfe] %vm1625_vm1, %v1556_v48 }
 0x1b0   : > { %v1558_v34 = vpop.permute.xlu1 %1557  ;;  %1077 = vrot.lane.b32.xlu0 %v4296_v56, %s3872_s6 }
 0x1b1   : > { %1638 = vst.msk [vmem:[#allocation2 + $0x57] sm:$0xff] %vm1627_vm15, %v1558_v34  ;;  %3486 = vmatmul.mubr.msk.f32.gmra.mrb[14].mxu1 %vm562_vm2, %v1662_v9 }
 0x1b2   : > { %1079 = vrot.lane.b32.xlu1 %v4302_v58, %s3872_s6  ;;  %v1187_v10 = vpop.permute.xlu0 %1186  ;;  %3488 = vmatprep.mubr.msk.f32.mxu1 %vm562_vm2, %v1663_v38 }
 0x1b3   : > { %1272 = vst.msk [vmem:[#allocation2 + $0x5f] sm:$0xfe] %vm1258_vm11, %v1187_v10 }
 0x1b4   : > { %v1189_v53 = vpop.permute.xlu1 %1188  ;;  %1575 = vrot.lane.b32.xlu0 %v4296_v56, %s3876_s10 }
 0x1b5   : > { %1273 = vst.msk [vmem:[#allocation2 + $0x67] sm:$0xff] %vm1260_vm10, %v1189_v53  ;;  %3489 = vmatmul.mubr.msk.f32.gmra.mrb[16].mxu1 %vm562_vm2, %v1664_v11 }
 0x1b6   : > { %1577 = vrot.lane.b32.xlu1 %v4302_v58, %s3876_s10  ;;  %v1317_v61 = vpop.permute.xlu0 %1316  ;;  %3491 = vmatprep.mubr.msk.f32.mxu1 %vm562_vm2, %v1665_v0 }
 0x1b7   : > { %1396 = vst.msk [vmem:[#allocation2 + $0x61] sm:$0xff] %vm1382_vm13, %v1317_v61 }
 0x1b8   : > { %v1319_v21 = vpop.permute.xlu1 %1318  ;;  %1206 = vrot.lane.b32.xlu0 %v4296_v56, %s3873_s7  ;;  %v1666_v56 = vld [vmem:[#allocation2 + $0x48] sm:$0xff]  ;;  %v1667_v13 = vld [vmem:[#allocation2 + $0x50] sm:$0xff]  ;;  %v1668_v28 = vld [vmem:[#allocation2 + $0x58] sm:$0xff] }
 0x1b9   : > { %1397 = vst.msk [vmem:[#allocation2 + $0x69] sm:$0x7f] %vm1384_vm12, %v1319_v21  ;;  %3492 = vmatmul.mubr.msk.f32.gmra.mrb[18].mxu1 %vm562_vm2, %v1666_v56 }
 0x1ba   : > { %1208 = vrot.lane.b32.xlu1 %v4302_v58, %s3873_s7  ;;  %v932_v3 = vpop.permute.xlu0 %931  ;;  %3494 = vmatprep.mubr.msk.f32.mxu1 %vm562_vm2, %v1667_v13 }
 0x1bb   : > { %1015 = vst.msk [vmem:[#allocation2 + $0x71] sm:$0xff] %vm999_vm7, %v932_v3 }
 0x1bc   : > { %v934_v22 = vpop.permute.xlu1 %933  ;;  %1336 = vrot.lane.b32.xlu0 %v4309_v59, %s3874_s8 }
 0x1bd   : > { %1016 = vst.msk [vmem:[#allocation2 + $0x79] sm:$0x7f] %vm1001_vm8, %v934_v22  ;;  %3495 = vmatmul.mubr.msk.f32.gmra.mrb[20].mxu1 %vm562_vm2, %v1668_v28 }
 0x1be   : > { %1338 = vrot.lane.b32.xlu1 %v4314_v60, %s3874_s8  ;;  %v1439_v7 = vpop.permute.xlu0 %1438 }
 0x1bf   : > { %1517 = vst.msk [vmem:[#allocation2 + $0x60] sm:$0xff] %vm1504_vm14, %v1439_v7 }
 0x1c0   : > { %v1441_v58 = vpop.permute.xlu1 %1440  ;;  %951 = vrot.lane.b32.xlu0 %v4309_v59, %s3871_s30 }
 0x1c1   : > { %1518 = vst.msk [vmem:[#allocation2 + $0x68] sm:$0xff] %vm1504_vm14, %v1441_v58 }
 0x1c2   : > { %953 = vrot.lane.b32.xlu1 %v4314_v60, %s3871_s30  ;;  %v1062_v26 = vpop.permute.xlu0 %1061 }
 0x1c3   : > { %1144 = vst.msk [vmem:[#allocation2 + $0x70] sm:$0xff] %vm1129_vm9, %v1062_v26 }
 0x1c4   : > { %v1064_v45 = vpop.permute.xlu1 %1063  ;;  %1458 = vrot.lane.b32.xlu0 %v4309_v59, %s3875_s9 }
 0x1c5   : > { %1145 = vst.msk [vmem:[#allocation2 + $0x78] sm:$0xff] %vm1129_vm9, %v1064_v45 }
 0x1c6   : > { %1460 = vrot.lane.b32.xlu1 %v4314_v60, %s3875_s9  ;;  %v1560_v46 = vpop.permute.xlu0 %1559 }
 0x1c7   : > { %1639 = vst.msk [vmem:[#allocation2 + $0x5f] sm:$0xfe] %vm1625_vm1, %v1560_v46 }
 0x1c8   : > { %v1562_v5 = vpop.permute.xlu1 %1561  ;;  %1081 = vrot.lane.b32.xlu0 %v4309_v59, %s3872_s6 }
 0x1c9   : > { %1640 = vst.msk [vmem:[#allocation2 + $0x67] sm:$0xff] %vm1627_vm15, %v1562_v5 }
 0x1ca   : > { %1083 = vrot.lane.b32.xlu1 %v4314_v60, %s3872_s6  ;;  %v1191_v33 = vpop.permute.xlu0 %1190 }
 0x1cb   : > { %1274 = vst.msk [vmem:[#allocation2 + $0x6f] sm:$0xfe] %vm1258_vm11, %v1191_v33 }
 0x1cc   : > { %v1193_v19 = vpop.permute.xlu1 %1192  ;;  %1579 = vrot.lane.b32.xlu0 %v4309_v59, %s3876_s10 }
 0x1cd   : > { %1275 = vst.msk [vmem:[#allocation2 + $0x77] sm:$0xff] %vm1260_vm10, %v1193_v19 }
 0x1ce   : > { %1581 = vrot.lane.b32.xlu1 %v4314_v60, %s3876_s10  ;;  %v1321_v44 = vpop.permute.xlu0 %1320 }
 0x1cf   : > { %1398 = vst.msk [vmem:[#allocation2 + $0x71] sm:$0xff] %vm1382_vm13, %v1321_v44 }
 0x1d0   : > { %v1323_v4 = vpop.permute.xlu1 %1322  ;;  %v1669_v47 = vld [vmem:[#allocation2 + $0x60] sm:$0xff]  ;;  %1210 = vrot.lane.b32.xlu0 %v4309_v59, %s3873_s7  ;;  %v1670_v15 = vld [vmem:[#allocation2 + $0x68] sm:$0xff] }
 0x1d1   : > { %1399 = vst.msk [vmem:[#allocation2 + $0x79] sm:$0x7f] %vm1384_vm12, %v1323_v4  ;;  %3497 = vmatprep.mubr.msk.f32.mxu1 %vm562_vm2, %v1669_v47 }
 0x1d2   : > { %1212 = vrot.lane.b32.xlu1 %v4314_v60, %s3873_s7  ;;  %3498 = vmatmul.mubr.msk.f32.gmra.mrb[22].mxu1 %vm562_vm2, %v1670_v15  ;;  %v936_v51 = vpop.permute.xlu0 %935 }
 0x1d3   : > { %1017 = vst.msk [vmem:[#allocation2 + $0x81] sm:$0xff] %vm999_vm7, %v936_v51 }
 0x1d4   : > { %v938_v32 = vpop.permute.xlu1 %937  ;;  %1340 = vrot.lane.b32.xlu0 %v4337_v24, %s3874_s8 }
 0x1d5   : > { %1018 = vst.msk [vmem:[#allocation2 + $0x89] sm:$0x7f] %vm1001_vm8, %v938_v32 }
 0x1d6   : > { %1342 = vrot.lane.b32.xlu1 %v4342_v8, %s3874_s8  ;;  %v1443_v59 = vpop.permute.xlu0 %1442 }
 0x1d7   : > { %1519 = vst.msk [vmem:[#allocation2 + $0x70] sm:$0xff] %vm1504_vm14, %v1443_v59 }
 0x1d8   : > { %v1445_v60 = vpop.permute.xlu1 %1444  ;;  %955 = vrot.lane.b32.xlu0 %v4337_v24, %s3871_s30 }
 0x1d9   : > { %1520 = vst.msk [vmem:[#allocation2 + $0x78] sm:$0xff] %vm1504_vm14, %v1445_v60 }
 0x1da   : > { %957 = vrot.lane.b32.xlu1 %v4342_v8, %s3871_s30  ;;  %v1066_v57 = vpop.permute.xlu0 %1065 }
 0x1db   : > { %1146 = vst.msk [vmem:[#allocation2 + $0x80] sm:$0xff] %vm1129_vm9, %v1066_v57 }
 0x1dc   : > { %v1068_v62 = vpop.permute.xlu1 %1067  ;;  %1462 = vrot.lane.b32.xlu0 %v4337_v24, %s3875_s9 }
 0x1dd   : > { %1147 = vst.msk [vmem:[#allocation2 + $0x88] sm:$0xff] %vm1129_vm9, %v1068_v62 }
 0x1de   : > { %1464 = vrot.lane.b32.xlu1 %v4342_v8, %s3875_s9  ;;  %v1564_v27 = vpop.permute.xlu0 %1563 }
 0x1df   : > { %1641 = vst.msk [vmem:[#allocation2 + $0x6f] sm:$0xfe] %vm1625_vm1, %v1564_v27 }
 0x1e0   : > { %v1566_v37 = vpop.permute.xlu1 %1565  ;;  %1085 = vrot.lane.b32.xlu0 %v4337_v24, %s3872_s6 }
 0x1e1   : > { %1642 = vst.msk [vmem:[#allocation2 + $0x77] sm:$0xff] %vm1627_vm15, %v1566_v37 }
 0x1e2   : > { %1087 = vrot.lane.b32.xlu1 %v4342_v8, %s3872_s6  ;;  %v1195_v14 = vpop.permute.xlu0 %1194 }
 0x1e3   : > { %1276 = vst.msk [vmem:[#allocation2 + $0x7f] sm:$0xfe] %vm1258_vm11, %v1195_v14 }
 0x1e4   : > { %v1197_v2 = vpop.permute.xlu1 %1196  ;;  %1583 = vrot.lane.b32.xlu0 %v4337_v24, %s3876_s10 }
 0x1e5   : > { %1277 = vst.msk [vmem:[#allocation2 + $0x87] sm:$0xff] %vm1260_vm10, %v1197_v2 }
 0x1e6   : > { %1585 = vrot.lane.b32.xlu1 %v4342_v8, %s3876_s10  ;;  %v1325_v40 = vpop.permute.xlu0 %1324 }
 0x1e7   : > { %1400 = vst.msk [vmem:[#allocation2 + $0x81] sm:$0xff] %vm1382_vm13, %v1325_v40 }
 0x1e8   : > { %v1327_v49 = vpop.permute.xlu1 %1326  ;;  %v1671_v6 = vld [vmem:[#allocation2 + $0x70] sm:$0xff]  ;;  %1214 = vrot.lane.b32.xlu0 %v4337_v24, %s3873_s7  ;;  %v1672_v30 = vld [vmem:[#allocation2 + $0x78] sm:$0xff]  ;;  %v3837_v24 = vpop.eup %3836 }
 0x1e9   : > { %1401 = vst.msk [vmem:[#allocation2 + $0x89] sm:$0x7f] %vm1384_vm12, %v1327_v49  ;;  %3500 = vmatprep.mubr.msk.f32.mxu1 %vm562_vm2, %v1671_v6  ;;  %v465_v20 = vadd.f32 1.0, %v3837_v24  ;;  %v3839_v55 = vpop.eup %3838 }
 0x1ea   : > { %1216 = vrot.lane.b32.xlu1 %v4342_v8, %s3873_s7  ;;  %3501 = vmatmul.mubr.msk.f32.gmra.mrb[24].mxu1 %vm562_vm2, %v1672_v30  ;;  %v940_v35 = vpop.permute.xlu0 %939  ;;  %v560_v29 = vmul.f32 %v5370_v23, %v3839_v55 }
 0x1eb   : > { %1019 = vst.msk [vmem:[#allocation2 + $0x91] sm:$0xff] %vm999_vm7, %v940_v35  ;;  %3840 = vrcp.f32 %v465_v20 }
 0x1ec   : > { %v942_v12 = vpop.permute.xlu1 %941  ;;  %1344 = vrot.lane.b32.xlu0 %v5694_v54, %s3874_s8 }
 0x1ed   : > { %1020 = vst.msk [vmem:[#allocation2 + $0x99] sm:$0x7f] %vm1001_vm8, %v942_v12 }
 0x1ee   : > { %1346 = vrot.lane.b32.xlu1 %v5695_v52, %s3874_s8  ;;  %v1447_v16 = vpop.permute.xlu0 %1446 }
 0x1ef   : > { %1521 = vst.msk [vmem:[#allocation2 + $0x80] sm:$0xff] %vm1504_vm14, %v1447_v16 }
 0x1f0   : > { %v1449_v8 = vpop.permute.xlu1 %1448  ;;  %959 = vrot.lane.b32.xlu0 %v5694_v54, %s3871_s30 }
 0x1f1   : > { %1522 = vst.msk [vmem:[#allocation2 + $0x88] sm:$0xff] %vm1504_vm14, %v1449_v8 }
 0x1f2   : > { %961 = vrot.lane.b32.xlu1 %v5695_v52, %s3871_s30  ;;  %v1070_v17 = vpop.permute.xlu0 %1069 }
 0x1f3   : > { %1148 = vst.msk [vmem:[#allocation2 + $0x90] sm:$0xff] %vm1129_vm9, %v1070_v17 }
 0x1f4   : > { %v1072_v39 = vpop.permute.xlu1 %1071  ;;  %1466 = vrot.lane.b32.xlu0 %v5694_v54, %s3875_s9 }
 0x1f5   : > { %1149 = vst.msk [vmem:[#allocation2 + $0x98] sm:$0xff] %vm1129_vm9, %v1072_v39  ;;  %v3841_v34 = vpop.eup %3840 }
 0x1f6   : > { %1468 = vrot.lane.b32.xlu1 %v5695_v52, %s3875_s9  ;;  %v1568_v31 = vpop.permute.xlu0 %1567  ;;  %v561_v38 = vmul.f32 %v5377_v63, %v3841_v34 }
 0x1f7   : > { %1643 = vst.msk [vmem:[#allocation2 + $0x7f] sm:$0xfe] %vm1625_vm1, %v1568_v31 }
 0x1f8   : > { %v1570_v42 = vpop.permute.xlu1 %1569  ;;  %1089 = vrot.lane.b32.xlu0 %v5694_v54, %s3872_s6 }
 0x1f9   : > { %1644 = vst.msk [vmem:[#allocation2 + $0x87] sm:$0xff] %vm1627_vm15, %v1570_v42 }
 0x1fa   : > { %1091 = vrot.lane.b32.xlu1 %v5695_v52, %s3872_s6  ;;  %v1199_v18 = vpop.permute.xlu0 %1198 }
 0x1fb   : > { %1278 = vst.msk [vmem:[#allocation2 + $0x8f] sm:$0xfe] %vm1258_vm11, %v1199_v18 }
 0x1fc   : > { %v1201_v48 = vpop.permute.xlu1 %1200  ;;  %1587 = vrot.lane.b32.xlu0 %v5694_v54, %s3876_s10 }
 0x1fd   : > { %1279 = vst.msk [vmem:[#allocation2 + $0x97] sm:$0xff] %vm1260_vm10, %v1201_v48 }
 0x1fe   : > { %1589 = vrot.lane.b32.xlu1 %v5695_v52, %s3876_s10  ;;  %v1329_v50 = vpop.permute.xlu0 %1328 }
 0x1ff   : > { %1402 = vst.msk [vmem:[#allocation2 + $0x91] sm:$0xff] %vm1382_vm13, %v1329_v50 }
 0x200   : > { %v1331_v10 = vpop.permute.xlu1 %1330  ;;  %v1673_v25 = vld [vmem:[#allocation2 + $0x80] sm:$0xff]  ;;  %1218 = vrot.lane.b32.xlu0 %v5694_v54, %s3873_s7  ;;  %v1674_v53 = vld [vmem:[#allocation2 + $0x88] sm:$0xff] }
 0x201   : > { %1403 = vst.msk [vmem:[#allocation2 + $0x99] sm:$0x7f] %vm1384_vm12, %v1331_v10  ;;  %3503 = vmatprep.mubr.msk.f32.mxu1 %vm562_vm2, %v1673_v25 }
 0x202   : > { %1220 = vrot.lane.b32.xlu1 %v5695_v52, %s3873_s7  ;;  %3504 = vmatmul.mubr.msk.f32.gmra.mrb[26].mxu1 %vm562_vm2, %v1674_v53  ;;  %v944_v61 = vpop.permute.xlu0 %943 }
 0x203   : > { %1021 = vst.msk [vmem:[#allocation2 + $0xa1] sm:$0xff] %vm999_vm7, %v944_v61 }
 0x204   : > { %v946_v9 = vpop.permute.xlu1 %945  ;;  %1348 = vrot.lane.b32.xlu0 %v560_v29, %s3874_s8 }
 0x205   : > { %1022 = vst.msk [vmem:[#allocation2 + $0xa9] sm:$0x7f] %vm1001_vm8, %v946_v9 }
 0x206   : > { %1350 = vrot.lane.b32.xlu1 %v561_v38, %s3874_s8  ;;  %v1451_v21 = vpop.permute.xlu0 %1450 }
 0x207   : > { %1523 = vst.msk [vmem:[#allocation2 + $0x90] sm:$0xff] %vm1504_vm14, %v1451_v21 }
 0x208   : > { %v1453_v11 = vpop.permute.xlu1 %1452  ;;  %1470 = vrot.lane.b32.xlu0 %v560_v29, %s3875_s9 }
 0x209   : > { %1524 = vst.msk [vmem:[#allocation2 + $0x98] sm:$0xff] %vm1504_vm14, %v1453_v11 }
 0x20a   : > { %1472 = vrot.lane.b32.xlu1 %v561_v38, %s3875_s9  ;;  %v1074_v0 = vpop.permute.xlu0 %1073 }
 0x20b   : > { %1150 = vst.msk [vmem:[#allocation2 + $0xa0] sm:$0xff] %vm1129_vm9, %v1074_v0 }
 0x20c   : > { %v1076_v3 = vpop.permute.xlu1 %1075  ;;  %1591 = vrot.lane.b32.xlu0 %v560_v29, %s3876_s10 }
 0x20d   : > { %1151 = vst.msk [vmem:[#allocation2 + $0xa8] sm:$0xff] %vm1129_vm9, %v1076_v3 }
 0x20e   : > { %1593 = vrot.lane.b32.xlu1 %v561_v38, %s3876_s10  ;;  %v1572_v22 = vpop.permute.xlu0 %1571 }
 0x20f   : > { %1645 = vst.msk [vmem:[#allocation2 + $0x8f] sm:$0xfe] %vm1625_vm1, %v1572_v22 }
 0x210   : > { %v1574_v56 = vpop.permute.xlu1 %1573  ;;  %963 = vrot.lane.b32.xlu0 %v560_v29, %s3871_s30 }
 0x211   : > { %1646 = vst.msk [vmem:[#allocation2 + $0x97] sm:$0xff] %vm1627_vm15, %v1574_v56 }
 0x212   : > { %965 = vrot.lane.b32.xlu1 %v561_v38, %s3871_s30  ;;  %v1203_v13 = vpop.permute.xlu0 %1202 }
 0x213   : > { %1280 = vst.msk [vmem:[#allocation2 + $0x9f] sm:$0xfe] %vm1258_vm11, %v1203_v13 }
 0x214   : > { %v1205_v7 = vpop.permute.xlu1 %1204  ;;  %1093 = vrot.lane.b32.xlu0 %v560_v29, %s3872_s6 }
 0x215   : > { %1281 = vst.msk [vmem:[#allocation2 + $0xa7] sm:$0xff] %vm1260_vm10, %v1205_v7 }
 0x216   : > { %1095 = vrot.lane.b32.xlu1 %v561_v38, %s3872_s6  ;;  %v1333_v58 = vpop.permute.xlu0 %1332  ;;  %s5574_s6 = scalar_lea.vmem %s5686_s5, %s3219_s24 }
 0x217   : > { %1404 = vst.msk [vmem:[#allocation2 + $0xa1] sm:$0xff] %vm1382_vm13, %v1333_v58 }
 0x218   : > { %v1335_v28 = vpop.permute.xlu1 %1334  ;;  %v1675_v26 = vld [vmem:[#allocation2 + $0x90] sm:$0xff]  ;;  %1222 = vrot.lane.b32.xlu0 %v560_v29, %s3873_s7  ;;  %v1676_v45 = vld [vmem:[#allocation2 + $0x98] sm:$0xff] }
 0x219   : > { %1405 = vst.msk [vmem:[#allocation2 + $0xa9] sm:$0x7f] %vm1384_vm12, %v1335_v28  ;;  %3506 = vmatprep.mubr.msk.f32.mxu1 %vm562_vm2, %v1675_v26 }
 0x21a   : > { %1224 = vrot.lane.b32.xlu1 %v561_v38, %s3873_s7  ;;  %3507 = vmatmul.mubr.msk.f32.gmra.mrb[28].mxu1 %vm562_vm2, %v1676_v45  ;;  %v948_v46 = vpop.permute.xlu0 %947 }
 0x21b   : > { %1023 = vst.msk [vmem:[#allocation2 + $0xb1] sm:$0xff] %vm999_vm7, %v948_v46 }
 0x21c   : > { %v950_v5 = vpop.permute.xlu1 %949 }
 0x21d   : > { %1024 = vst.msk [vmem:[#allocation2 + $0xb9] sm:$0x7f] %vm1001_vm8, %v950_v5 }
 0x21e   : > { %v1455_v33 = vpop.permute.xlu0 %1454 }
 0x21f   : > { %1525 = vst.msk [vmem:[#allocation2 + $0xa0] sm:$0xff] %vm1504_vm14, %v1455_v33 }
 0x220   : > { %v1457_v19 = vpop.permute.xlu1 %1456 }
 0x221   : > { %1526 = vst.msk [vmem:[#allocation2 + $0xa8] sm:$0xff] %vm1504_vm14, %v1457_v19 }
 0x222   : > { %v1078_v44 = vpop.permute.xlu0 %1077 }
 0x223   : > { %1152 = vst.msk [vmem:[#allocation2 + $0xb0] sm:$0xff] %vm1129_vm9, %v1078_v44 }
 0x224   : > { %v1080_v4 = vpop.permute.xlu1 %1079 }
 0x225   : > { %1153 = vst.msk [vmem:[#allocation2 + $0xb8] sm:$0xff] %vm1129_vm9, %v1080_v4 }
 0x226   : > { %v1576_v47 = vpop.permute.xlu0 %1575 }
 0x227   : > { %1647 = vst.msk [vmem:[#allocation2 + $0x9f] sm:$0xfe] %vm1625_vm1, %v1576_v47 }
 0x228   : > { %v1578_v15 = vpop.permute.xlu1 %1577 }
 0x229   : > { %1648 = vst.msk [vmem:[#allocation2 + $0xa7] sm:$0xff] %vm1627_vm15, %v1578_v15 }
 0x22a   : > { %v1207_v51 = vpop.permute.xlu0 %1206 }
 0x22b   : > { %1282 = vst.msk [vmem:[#allocation2 + $0xaf] sm:$0xfe] %vm1258_vm11, %v1207_v51 }
 0x22c   : > { %v1209_v32 = vpop.permute.xlu1 %1208 }
 0x22d   : > { %1283 = vst.msk [vmem:[#allocation2 + $0xb7] sm:$0xff] %vm1260_vm10, %v1209_v32 }
 0x22e   : > { %v1337_v59 = vpop.permute.xlu0 %1336 }
 0x22f   : > { %1406 = vst.msk [vmem:[#allocation2 + $0xb1] sm:$0xff] %vm1382_vm13, %v1337_v59 }
 0x230   : > { %v1339_v60 = vpop.permute.xlu1 %1338  ;;  %v1677_v57 = vld [vmem:[#allocation2 + $0xa0] sm:$0xff]  ;;  %v1678_v62 = vld [vmem:[#allocation2 + $0xa8] sm:$0xff] }
 0x231   : > { %1407 = vst.msk [vmem:[#allocation2 + $0xb9] sm:$0x7f] %vm1384_vm12, %v1339_v60  ;;  %3509 = vmatprep.mubr.msk.f32.mxu1 %vm562_vm2, %v1677_v57 }
 0x232   : > { %3510 = vmatmul.mubr.msk.f32.gmra.mrb[30].mxu1 %vm562_vm2, %v1678_v62  ;;  %v952_v23 = vpop.permute.xlu0 %951 }
 0x233   : > { %1025 = vst.msk [vmem:[#allocation2 + $0xc1] sm:$0xff] %vm999_vm7, %v952_v23 }
 0x234   : > { %v954_v43 = vpop.permute.xlu1 %953 }
 0x235   : > { %1026 = vst.msk [vmem:[#allocation2 + $0xc9] sm:$0x7f] %vm1001_vm8, %v954_v43 }
 0x236   : > { %v1459_v27 = vpop.permute.xlu0 %1458 }
 0x237   : > { %1527 = vst.msk [vmem:[#allocation2 + $0xb0] sm:$0xff] %vm1504_vm14, %v1459_v27 }
 0x238   : > { %v1461_v63 = vpop.permute.xlu1 %1460 }
 0x239   : > { %1528 = vst.msk [vmem:[#allocation2 + $0xb8] sm:$0xff] %vm1504_vm14, %v1461_v63 }
 0x23a   : > { %v1082_v36 = vpop.permute.xlu0 %1081 }
 0x23b   : > { %1154 = vst.msk [vmem:[#allocation2 + $0xc0] sm:$0xff] %vm1129_vm9, %v1082_v36 }
 0x23c   : > { %v1084_v37 = vpop.permute.xlu1 %1083 }
 0x23d   : > { %1155 = vst.msk [vmem:[#allocation2 + $0xc8] sm:$0xff] %vm1129_vm9, %v1084_v37 }
 0x23e   : > { %v1580_v14 = vpop.permute.xlu0 %1579 }
 0x23f   : > { %1649 = vst.msk [vmem:[#allocation2 + $0xaf] sm:$0xfe] %vm1625_vm1, %v1580_v14 }
 0x240   : > { %v1582_v2 = vpop.permute.xlu1 %1581 }
 0x241   : > { %1650 = vst.msk [vmem:[#allocation2 + $0xb7] sm:$0xff] %vm1627_vm15, %v1582_v2 }
 0x242   : > { %v1211_v40 = vpop.permute.xlu0 %1210 }
 0x243   : > { %1284 = vst.msk [vmem:[#allocation2 + $0xbf] sm:$0xfe] %vm1258_vm11, %v1211_v40 }
 0x244   : > { %v1213_v49 = vpop.permute.xlu1 %1212 }
 0x245   : > { %1285 = vst.msk [vmem:[#allocation2 + $0xc7] sm:$0xff] %vm1260_vm10, %v1213_v49 }
 0x246   : > { %v1341_v6 = vpop.permute.xlu0 %1340 }
 0x247   : > { %1408 = vst.msk [vmem:[#allocation2 + $0xc1] sm:$0xff] %vm1382_vm13, %v1341_v6 }
 0x248   : > { %v1343_v30 = vpop.permute.xlu1 %1342  ;;  %v1679_v35 = vld [vmem:[#allocation2 + $0xb0] sm:$0xff]  ;;  %v1680_v41 = vld [vmem:[#allocation2 + $0xb8] sm:$0xff]  ;;  %v5496_v16 = vpop.f32.mrb[32].mxu0 }
 0x249   : > { %1409 = vst.msk [vmem:[#allocation2 + $0xc9] sm:$0x7f] %vm1384_vm12, %v1343_v30  ;;  %3512 = vmatprep.mubr.msk.f32.mxu1 %vm562_vm2, %v1679_v35  ;;  %v5499_v1 = vpop.f32.mrb[33].mxu0 }
 0x24a   : > { %3513 = vmatmul.mubr.msk.f32.gmra.mrb[0].mxu1 %vm562_vm2, %v1680_v41  ;;  %v956_v12 = vpop.permute.xlu0 %955 }
 0x24b   : > { %1027 = vst.msk [vmem:[#allocation2 + $0xd1] sm:$0xff] %vm999_vm7, %v956_v12 }
 0x24c   : > { %v958_v54 = vpop.permute.xlu1 %957  ;;  %v5502_v17 = vpop.f32.mrb[34].mxu0 }
 0x24d   : > { %1028 = vst.msk [vmem:[#allocation2 + $0xd9] sm:$0x7f] %vm1001_vm8, %v958_v54  ;;  %v5505_v39 = vpop.f32.mrb[35].mxu0 }
 0x24e   : > { %v1463_v24 = vpop.permute.xlu0 %1462 }
 0x24f   : > { %1529 = vst.msk [vmem:[#allocation2 + $0xc0] sm:$0xff] %vm1504_vm14, %v1463_v24 }
 0x250   : > { %v1465_v52 = vpop.permute.xlu1 %1464  ;;  %v5508_v18 = vpop.f32.mrb[36].mxu0 }
 0x251   : > { %1530 = vst.msk [vmem:[#allocation2 + $0xc8] sm:$0xff] %vm1504_vm14, %v1465_v52  ;;  %v5511_v48 = vpop.f32.mrb[37].mxu0 }
 0x252   : > { %v1086_v8 = vpop.permute.xlu0 %1085 }
 0x253   : > { %1156 = vst.msk [vmem:[#allocation2 + $0xd0] sm:$0xff] %vm1129_vm9, %v1086_v8 }
 0x254   : > { %v1088_v20 = vpop.permute.xlu1 %1087  ;;  %v5515_v34 = vpop.f32.mrb[38].mxu0 }
 0x255   : > { %1157 = vst.msk [vmem:[#allocation2 + $0xd8] sm:$0xff] %vm1129_vm9, %v1088_v20  ;;  %v5517_v10 = vpop.f32.mrb[39].mxu0 }
 0x256   : > { %v1584_v31 = vpop.permute.xlu0 %1583 }
 0x257   : > { %1651 = vst.msk [vmem:[#allocation2 + $0xbf] sm:$0xfe] %vm1625_vm1, %v1584_v31 }
 0x258   : > { %v1586_v42 = vpop.permute.xlu1 %1585  ;;  %v5522_v61 = vpop.f32.mrb[40].mxu0 }
 0x259   : > { %1652 = vst.msk [vmem:[#allocation2 + $0xc7] sm:$0xff] %vm1627_vm15, %v1586_v42  ;;  %v5525_v21 = vpop.f32.mrb[41].mxu0 }
 0x25a   : > { %v1215_v55 = vpop.permute.xlu0 %1214 }
 0x25b   : > { %1286 = vst.msk [vmem:[#allocation2 + $0xcf] sm:$0xfe] %vm1258_vm11, %v1215_v55 }
 0x25c   : > { %v1217_v50 = vpop.permute.xlu1 %1216  ;;  %v5529_v0 = vpop.f32.mrb[42].mxu0 }
 0x25d   : > { %1287 = vst.msk [vmem:[#allocation2 + $0xd7] sm:$0xff] %vm1260_vm10, %v1217_v50  ;;  %v5531_v22 = vpop.f32.mrb[43].mxu0 }
 0x25e   : > { %v1345_v29 = vpop.permute.xlu0 %1344 }
 0x25f   : > { %1410 = vst.msk [vmem:[#allocation2 + $0xd1] sm:$0xff] %vm1382_vm13, %v1345_v29 }
 0x260   : > { %v1347_v25 = vpop.permute.xlu1 %1346  ;;  %v1681_v53 = vld [vmem:[#allocation2 + $0xc0] sm:$0xff]  ;;  %v1682_v38 = vld [vmem:[#allocation2 + $0xc8] sm:$0xff]  ;;  %v5535_v13 = vpop.f32.mrb[44].mxu0 }
 0x261   : > { %1411 = vst.msk [vmem:[#allocation2 + $0xd9] sm:$0x7f] %vm1384_vm12, %v1347_v25  ;;  %3515 = vmatprep.mubr.msk.f32.mxu1 %vm562_vm2, %v1681_v53  ;;  %v5537_v58 = vpop.f32.mrb[45].mxu0 }
 0x262   : > { %3516 = vmatmul.mubr.msk.f32.gmra.mrb[2].mxu1 %vm562_vm2, %v1682_v38  ;;  %v960_v9 = vpop.permute.xlu0 %959 }
 0x263   : > { %1029 = vst.msk [vmem:[#allocation2 + $0xe1] sm:$0xff] %vm999_vm7, %v960_v9 }
 0x264   : > { %v962_v11 = vpop.permute.xlu1 %961  ;;  %v5541_v26 = vpop.f32.mrb[46].mxu0 }
 0x265   : > { %1030 = vst.msk [vmem:[#allocation2 + $0xe9] sm:$0x7f] %vm1001_vm8, %v962_v11  ;;  %v5543_v46 = vpop.f32.mrb[47].mxu0 }
 0x266   : > { %v1467_v3 = vpop.permute.xlu0 %1466 }
 0x267   : > { %1531 = vst.msk [vmem:[#allocation2 + $0xd0] sm:$0xff] %vm1504_vm14, %v1467_v3 }
 0x268   : > { %v1469_v56 = vpop.permute.xlu1 %1468  ;;  %v5547_v19 = vpop.f32.mrb[48].mxu0 }
 0x269   : > { %1532 = vst.msk [vmem:[#allocation2 + $0xd8] sm:$0xff] %vm1504_vm14, %v1469_v56  ;;  %v5550_v44 = vpop.f32.mrb[49].mxu0 }
 0x26a   : > { %v1090_v7 = vpop.permute.xlu0 %1089 }
 0x26b   : > { %1158 = vst.msk [vmem:[#allocation2 + $0xe0] sm:$0xff] %vm1129_vm9, %v1090_v7 }
 0x26c   : > { %v1092_v28 = vpop.permute.xlu1 %1091 }
 0x26d   : > { %1159 = vst.msk [vmem:[#allocation2 + $0xe8] sm:$0xff] %vm1129_vm9, %v1092_v28 }
 0x26e   : > { %v1588_v45 = vpop.permute.xlu0 %1587  ;;  %v5556_v59 = vpop.f32.mrb[50].mxu0 }
 0x26f   : > { %1653 = vst.msk [vmem:[#allocation2 + $0xcf] sm:$0xfe] %vm1625_vm1, %v1588_v45  ;;  %v5559_v57 = vpop.f32.mrb[51].mxu0 }
 0x270   : > { %v1590_v5 = vpop.permute.xlu1 %1589 }
 0x271   : > { %1654 = vst.msk [vmem:[#allocation2 + $0xd7] sm:$0xff] %vm1627_vm15, %v1590_v5 }
 0x272   : > { %v1219_v33 = vpop.permute.xlu0 %1218 }
 0x273   : > { %1288 = vst.msk [vmem:[#allocation2 + $0xdf] sm:$0xfe] %vm1258_vm11, %v1219_v33 }
 0x274   : > { %v1221_v4 = vpop.permute.xlu1 %1220 }
 0x275   : > { %1289 = vst.msk [vmem:[#allocation2 + $0xe7] sm:$0xff] %vm1260_vm10, %v1221_v4 }
 0x276   : > { %v1349_v47 = vpop.permute.xlu0 %1348  ;;  %v5563_v23 = vpop.f32.mrb[52].mxu0 }
 0x277   : > { %1412 = vst.msk [vmem:[#allocation2 + $0xe1] sm:$0xff] %vm1382_vm13, %v1349_v47  ;;  %v5565_v27 = vpop.f32.mrb[53].mxu0 }
 0x278   : > { %v1351_v15 = vpop.permute.xlu1 %1350  ;;  %v1683_v51 = vld [vmem:[#allocation2 + $0xd0] sm:$0xff]  ;;  %v1684_v32 = vld [vmem:[#allocation2 + $0xd8] sm:$0xff] }
 0x279   : > { %1413 = vst.msk [vmem:[#allocation2 + $0xe9] sm:$0x7f] %vm1384_vm12, %v1351_v15  ;;  %3518 = vmatprep.mubr.msk.f32.mxu1 %vm562_vm2, %v1683_v51 }
 0x27a   : > { %3519 = vmatmul.mubr.msk.f32.gmra.mrb[4].mxu1 %vm562_vm2, %v1684_v32  ;;  %v1471_v60 = vpop.permute.xlu0 %1470 }
 0x27b   : > { %1533 = vst.msk [vmem:[#allocation2 + $0xe0] sm:$0xff] %vm1504_vm14, %v1471_v60 }
 0x27c   : > { %v1473_v62 = vpop.permute.xlu1 %1472  ;;  %v3481_v37 = vpop.f32.mrb[10].mxu1 }
 0x27d   : > { %1534 = vst.msk [vmem:[#allocation2 + $0xe8] sm:$0xff] %vm1504_vm14, %v1473_v62  ;;  %v2808_v14 = vadd.f32 %v3481_v37, %v5496_v16  ;;  %v2802_v2 = vpop.f32.mrb[11].mxu1 }
 0x27e   : > { %v1592_v43 = vpop.permute.xlu0 %1591  ;;  %v2803_v49 = vadd.f32 %v2802_v2, %v5499_v1 }
 0x27f   : > { %1655 = vst.msk [vmem:[#allocation2 + $0xdf] sm:$0xfe] %vm1625_vm1, %v1592_v43 }
 0x280   : > { %v1594_v63 = vpop.permute.xlu1 %1593  ;;  %2963 = vst.msk [vmem:[%s5574_s6 + $0x8] sm:$0xff] %vm2961_vm0, %v2808_v14  ;;  %2962 = vst.msk [vmem:[%s5574_s6] sm:$0xff] %vm2961_vm0, %v2803_v49  ;;  %v3484_v30 = vpop.f32.mrb[12].mxu1 }
 0x281   : > { %1656 = vst.msk [vmem:[#allocation2 + $0xe7] sm:$0xff] %vm1627_vm15, %v1594_v63  ;;  %v2818_v35 = vadd.f32 %v3484_v30, %v5502_v17  ;;  %v2812_v41 = vpop.f32.mrb[13].mxu1 }
 0x282   : > { %v964_v36 = vpop.permute.xlu0 %963  ;;  %v2813_v52 = vadd.f32 %v2812_v41, %v5505_v39 }
 0x283   : > { %1031 = vst.msk [vmem:[#allocation2 + $0xf1] sm:$0xff] %vm999_vm7, %v964_v36 }
 0x284   : > { %v966_v40 = vpop.permute.xlu1 %965  ;;  %2965 = vst.msk [vmem:[%s5574_s6 + $0x18] sm:$0xff] %vm2961_vm0, %v2818_v35  ;;  %2964 = vst.msk [vmem:[%s5574_s6 + $0x10] sm:$0xff] %vm2961_vm0, %v2813_v52  ;;  %v3487_v1 = vpop.f32.mrb[14].mxu1 }
 0x285   : > { %1032 = vst.msk [vmem:[#allocation2 + $0xf9] sm:$0x7f] %vm1001_vm8, %v966_v40  ;;  %v2828_v8 = vadd.f32 %v3487_v1, %v5508_v18  ;;  %v2822_v20 = vpop.f32.mrb[15].mxu1 }
 0x286   : > { %v1094_v6 = vpop.permute.xlu0 %1093  ;;  %v2823_v39 = vadd.f32 %v2822_v20, %v5511_v48 }
 0x287   : > { %1160 = vst.msk [vmem:[#allocation2 + $0xf0] sm:$0xff] %vm1129_vm9, %v1094_v6 }
 0x288   : > { %v1096_v12 = vpop.permute.xlu1 %1095  ;;  %v1685_v54 = vld [vmem:[#allocation2 + $0xe0] sm:$0xff]  ;;  %v1686_v24 = vld [vmem:[#allocation2 + $0xe8] sm:$0xff]  ;;  %2967 = vst.msk [vmem:[%s5574_s6 + $0x28] sm:$0xff] %vm2961_vm0, %v2828_v8  ;;  %2966 = vst.msk [vmem:[%s5574_s6 + $0x20] sm:$0xff] %vm2961_vm0, %v2823_v39  ;;  %v3490_v31 = vpop.f32.mrb[16].mxu1 }
 0x289   : > { %1161 = vst.msk [vmem:[#allocation2 + $0xf8] sm:$0xff] %vm1129_vm9, %v1096_v12  ;;  %3521 = vmatprep.mubr.msk.f32.mxu1 %vm562_vm2, %v1685_v54  ;;  %v2838_v42 = vadd.f32 %v3490_v31, %v5515_v34  ;;  %v2832_v55 = vpop.f32.mrb[17].mxu1 }
 0x28a   : > { %3522 = vmatmul.mubr.msk.f32.gmra.mrb[6].mxu1 %vm562_vm2, %v1686_v24  ;;  %v1223_v16 = vpop.permute.xlu0 %1222  ;;  %v2833_v50 = vadd.f32 %v2832_v55, %v5517_v10 }
 0x28b   : > { %1290 = vst.msk [vmem:[#allocation2 + $0xef] sm:$0xfe] %vm1258_vm11, %v1223_v16 }
 0x28c   : > { %v1225_v17 = vpop.permute.xlu1 %1224  ;;  %2969 = vst.msk [vmem:[%s5574_s6 + $0x38] sm:$0xff] %vm2961_vm0, %v2838_v42  ;;  %2968 = vst.msk [vmem:[%s5574_s6 + $0x30] sm:$0xff] %vm2961_vm0, %v2833_v50  ;;  %v3493_v18 = vpop.f32.mrb[18].mxu1 }
 0x28d   : > { %1291 = vst.msk [vmem:[#allocation2 + $0xf7] sm:$0xff] %vm1260_vm10, %v1225_v17  ;;  %v2848_v48 = vadd.f32 %v3493_v18, %v5522_v61  ;;  %v2842_v29 = vpop.f32.mrb[19].mxu1 }
 0x28e   : > { %v2843_v38 = vadd.f32 %v2842_v29, %v5525_v21 }
 0x28f   : > { %2971 = vst.msk [vmem:[%s5574_s6 + $0x48] sm:$0xff] %vm2961_vm0, %v2848_v48 }
 0x290   : > { %2970 = vst.msk [vmem:[%s5574_s6 + $0x40] sm:$0xff] %vm2961_vm0, %v2843_v38  ;;  %v3496_v34 = vpop.f32.mrb[20].mxu1 }
 0x291   : > { %v2858_v10 = vadd.f32 %v3496_v34, %v5529_v0  ;;  %v2852_v61 = vpop.f32.mrb[21].mxu1 }
 0x292   : > { %v2853_v9 = vadd.f32 %v2852_v61, %v5531_v22 }
 0x293   : > { %2973 = vst.msk [vmem:[%s5574_s6 + $0x58] sm:$0xff] %vm2961_vm0, %v2858_v10 }
 0x294   : > { %v1687_v25 = vld [vmem:[#allocation2 + $0xf0] sm:$0xff]  ;;  %v1688_v53 = vld [vmem:[#allocation2 + $0xf8] sm:$0xff]  ;;  %2972 = vst.msk [vmem:[%s5574_s6 + $0x50] sm:$0xff] %vm2961_vm0, %v2853_v9 }
 0x295   : > { %3524 = vmatprep.mubr.msk.f32.mxu1 %vm562_vm2, %v1687_v25 }
 0x296   : > { %3525 = vmatmul.mubr.msk.f32.gmra.mrb[8].mxu1 %vm562_vm2, %v1688_v53 }
 0x2a5   : > { %v3499_v21 = vpop.f32.mrb[22].mxu1 }
 0x2a6   : > { %v2868_v11 = vadd.f32 %v3499_v21, %v5535_v13  ;;  %v2862_v3 = vpop.f32.mrb[23].mxu1 }
 0x2a7   : > { %v2863_v56 = vadd.f32 %v2862_v3, %v5537_v58 }
 0x2a8   : > { %2975 = vst.msk [vmem:[%s5574_s6 + $0x68] sm:$0xff] %vm2961_vm0, %v2868_v11 }
 0x2a9   : > { %2974 = vst.msk [vmem:[%s5574_s6 + $0x60] sm:$0xff] %vm2961_vm0, %v2863_v56 }
 0x2bd   : > { %v3502_v0 = vpop.f32.mrb[24].mxu1 }
 0x2be   : > { %v2878_v22 = vadd.f32 %v3502_v0, %v5541_v26  ;;  %v2872_v7 = vpop.f32.mrb[25].mxu1 }
 0x2bf   : > { %v2873_v28 = vadd.f32 %v2872_v7, %v5543_v46 }
 0x2c0   : > { %2977 = vst.msk [vmem:[%s5574_s6 + $0x78] sm:$0xff] %vm2961_vm0, %v2878_v22 }
 0x2c1   : > { %2976 = vst.msk [vmem:[%s5574_s6 + $0x70] sm:$0xff] %vm2961_vm0, %v2873_v28 }
 0x2d5   : > { %v3505_v13 = vpop.f32.mrb[26].mxu1 }
 0x2d6   : > { %v2888_v58 = vadd.f32 %v3505_v13, %v5547_v19  ;;  %v2882_v45 = vpop.f32.mrb[27].mxu1 }
 0x2d7   : > { %v2883_v5 = vadd.f32 %v2882_v45, %v5550_v44 }
 0x2d8   : > { %2979 = vst.msk [vmem:[%s5574_s6 + $0x88] sm:$0xff] %vm2961_vm0, %v2888_v58 }
 0x2d9   : > { %2978 = vst.msk [vmem:[%s5574_s6 + $0x80] sm:$0xff] %vm2961_vm0, %v2883_v5 }
 0x2ed   : > { %v3508_v26 = vpop.f32.mrb[28].mxu1 }
 0x2ee   : > { %v2898_v46 = vadd.f32 %v3508_v26, %v5556_v59  ;;  %v2892_v33 = vpop.f32.mrb[29].mxu1 }
 0x2ef   : > { %v2893_v4 = vadd.f32 %v2892_v33, %v5559_v57 }
 0x2f0   : > { %2981 = vst.msk [vmem:[%s5574_s6 + $0x98] sm:$0xff] %vm2961_vm0, %v2898_v46 }
 0x2f1   : > { %2980 = vst.msk [vmem:[%s5574_s6 + $0x90] sm:$0xff] %vm2961_vm0, %v2893_v4 }
 0x305   : > { %v3511_v19 = vpop.f32.mrb[30].mxu1 }
 0x306   : > { %v2908_v44 = vadd.f32 %v3511_v19, %v5563_v23  ;;  %v2902_v47 = vpop.f32.mrb[31].mxu1 }
 0x307   : > { %v2903_v15 = vadd.f32 %v2902_v47, %v5565_v27 }
 0x308   : > { %2983 = vst.msk [vmem:[%s5574_s6 + $0xa8] sm:$0xff] %vm2961_vm0, %v2908_v44 }
 0x309   : > { %2982 = vst.msk [vmem:[%s5574_s6 + $0xa0] sm:$0xff] %vm2961_vm0, %v2903_v15 }
 0x31d   : > { %v3514_v51 = vpop.f32.mrb[0].mxu1 }
 0x31e   : > { %2985 = vst.msk [vmem:[%s5574_s6 + $0xb8] sm:$0xff] %vm2961_vm0, %v3514_v51  ;;  %v2912_v32 = vpop.f32.mrb[1].mxu1 }
 0x31f   : > { %2984 = vst.msk [vmem:[%s5574_s6 + $0xb0] sm:$0xff] %vm2961_vm0, %v2912_v32 }
 0x335   : > { %v3517_v59 = vpop.f32.mrb[2].mxu1 }
 0x336   : > { %2987 = vst.msk [vmem:[%s5574_s6 + $0xc8] sm:$0xff] %vm2961_vm0, %v3517_v59  ;;  %v2922_v60 = vpop.f32.mrb[3].mxu1 }
 0x337   : > { %2986 = vst.msk [vmem:[%s5574_s6 + $0xc0] sm:$0xff] %vm2961_vm0, %v2922_v60 }
 0x34d   : > { %v3520_v57 = vpop.f32.mrb[4].mxu1 }
 0x34e   : > { %2989 = vst.msk [vmem:[%s5574_s6 + $0xd8] sm:$0xff] %vm2961_vm0, %v3520_v57  ;;  %v2932_v62 = vpop.f32.mrb[5].mxu1 }
 0x34f   : > { %2988 = vst.msk [vmem:[%s5574_s6 + $0xd0] sm:$0xff] %vm2961_vm0, %v2932_v62 }
 0x35d   : > { %v3523_v23 = vpop.f32.mrb[6].mxu1 }
 0x35e   : > { %2991 = vst.msk [vmem:[%s5574_s6 + $0xe8] sm:$0xff] %vm2961_vm0, %v3523_v23  ;;  %v2942_v43 = vpop.f32.mrb[7].mxu1 }
 0x35f   : > { %2990 = vst.msk [vmem:[%s5574_s6 + $0xe0] sm:$0xff] %vm2961_vm0, %v2942_v43 }
 0x369   : > { %v3526_v27 = vpop.f32.mrb[8].mxu1 }
 0x36a   : > { %2993 = vst.msk [vmem:[%s5574_s6 + $0xf8] sm:$0xff] %vm2961_vm0, %v3526_v27  ;;  %v2952_v63 = vpop.f32.mrb[9].mxu1 }
 0x36b   : > { %2992 = vst.msk [vmem:[%s5574_s6 + $0xf0] sm:$0xff] %vm2961_vm0, %v2952_v63 }
 0x36c PF: > { %s15_s20 = sadd.s32 1, %s3866_s20   ;;  %s5696_s18 = smov %s3862_s19 }
 0x36d   : > { %p12_p5 = scmp.ge.s32.totalorder %s15_s20, 4   ;;  %s5697_s19 = smov %s5699_s21 }
 0x36f   :  { %14 = sbr.rel (!%p12_p5) target bundleno = 2 (0x2), region = 80 }

</bundles_post_ra>
